<compile_context>
chip_gen: v5e
topology: v5e:2x2
jax: 0.10.0
libtpu: 0.0.40
codegen_flags: <defaults>
</compile_context>

<pallas_src>
import functools
import math

import jax
import jax.numpy as jnp
from jax.experimental import pallas as pl
from jax.experimental.pallas import tpu as pltpu

jax.config.update("jax_default_matmul_precision", "highest")


# ------------------------------------------------------------------ kernel

def _cross_attn_kernel(x_ref, y_ref, w_in_ref, b_in_ref, wo_ref, bo_ref,
                       ln1g_ref, ln1b_ref, w1_ref, b1_ref, w2_ref, b2_ref,
                       ln2g_ref, ln2b_ref, o_ref, ctx_ref, *, num_heads, scale):
    H = num_heads
    L = x_ref.shape[1]
    E = x_ref.shape[2]
    Dh = E // H
    cdt = x_ref.dtype                       # MXU operand dtype (bf16-native friendly)
    dn = (((1,), (1,)), ((), ()))           # contract last dims:  a @ b.T

    xb = x_ref[0]                           # (L, E)
    yb = y_ref[0]                           # (L, E)
    z = jnp.concatenate([xb, yb], axis=0)   # (2L, E) rows: [x; y]   (VMEM only)

    # ---- shared QKV projection for BOTH directions: one wide (2L, 3E) GEMM ----
    qkv = jax.lax.dot_general(z, w_in_ref[...], dn,
                              preferred_element_type=jnp.float32)
    qkv = qkv + b_in_ref[...].astype(jnp.float32)           # (2L, 3E), f32 accum
    q = (qkv[:, :E] * scale).astype(cdt)                    # softmax scale folded into q
    k = qkv[:, E:2 * E].astype(cdt)
    v = qkv[:, 2 * E:].astype(cdt)

    # ---- head-batched attention over all (direction, head) pairs ----
    # batch index i = d*H + h ; K/V take the opposite direction (cross attention).
    def split_heads(t, swap_dirs):
        parts = []
        for d in ((1, 0) if swap_dirs else (0, 1)):
            for h in range(H):
                parts.append(t[d * L:(d + 1) * L, h * Dh:(h + 1) * Dh])
        return jnp.stack(parts, axis=0)                      # (2H, L, Dh)

    qh = split_heads(q, swap_dirs=False)
    kh = split_heads(k, swap_dirs=True)                      # dir0: x attends y; dir1: y attends x
    vh = split_heads(v, swap_dirs=True)

    s = jnp.einsum('bqd,bkd->bqk', qh, kh,
                   preferred_element_type=jnp.float32)       # (2H, L, L)
    s = s - jnp.max(s, axis=-1, keepdims=True)
    p = jnp.exp(s)
    p = p / jnp.sum(p, axis=-1, keepdims=True)               # exact softmax (parity w/ torch)
    ctx = jnp.einsum('bqk,bkd->bqd', p.astype(cdt), vh,
                     preferred_element_type=jnp.float32)     # (2H, L, Dh)

    # scatter per-(direction, head) context into the (2L, E) scratch (no lane concat)
    for d in range(2):
        for h in range(H):
            ctx_ref[d * L:(d + 1) * L, h * Dh:(h + 1) * Dh] = ctx[d * H + h]
    ctx2 = ctx_ref[...].astype(cdt)                          # (2L, E)

    # ---- output projection + residual + LayerNorm1 (per-direction gamma/beta) ----
    out = jax.lax.dot_general(ctx2, wo_ref[...], dn,
                              preferred_element_type=jnp.float32)
    out = out + bo_ref[...].astype(jnp.float32)              # (2L, E)
    t = out + z.astype(jnp.float32)
    mu = jnp.mean(t, axis=-1, keepdims=True)
    var = jnp.mean((t - mu) ** 2, axis=-1, keepdims=True)
    n = (t - mu) * jax.lax.rsqrt(var + 1e-5)
    g1 = ln1g_ref[...].astype(jnp.float32)                   # (2, E): row0=norm1_x, row1=norm1_y
    b1n = ln1b_ref[...].astype(jnp.float32)
    x1 = n[:L] * g1[0:1, :] + b1n[0:1, :]                    # (L, E)
    y1 = n[L:] * g1[1:2, :] + b1n[1:2, :]                    # (L, E)
    fused = jnp.concatenate([x1, y1], axis=-1)               # (L, 2E) residual / FFN input

    # ---- FFN (full-width GEMMs) + residual + LayerNorm2 ----
    h1 = jax.lax.dot_general(fused.astype(cdt), w1_ref[...], dn,
                             preferred_element_type=jnp.float32)
    h1 = jnp.maximum(h1 + b1_ref[...].astype(jnp.float32), 0.0)   # (L, FF)
    f = jax.lax.dot_general(h1.astype(cdt), w2_ref[...], dn,
                            preferred_element_type=jnp.float32)
    f = f + b2_ref[...].astype(jnp.float32)                  # (L, 2E)
    t2 = f + fused
    mu2 = jnp.mean(t2, axis=-1, keepdims=True)
    var2 = jnp.mean((t2 - mu2) ** 2, axis=-1, keepdims=True)
    n2 = (t2 - mu2) * jax.lax.rsqrt(var2 + 1e-5)
    o_ref[0] = (n2 * ln2g_ref[...].astype(jnp.float32)
                + ln2b_ref[...].astype(jnp.float32)).astype(o_ref.dtype)
    # TODO(synk): nn.Dropout(0.1) is treated as eval-mode identity (no stochastic masking).


# ------------------------------------------------------------------ forward

def cross_attention_forward(x, y, params, num_heads):
    B, L, E = x.shape
    assert y.shape == (B, L, E)              # torch.cat along dim=-1 needs matching shapes
    H = num_heads
    Dh = E // H
    scale = 1.0 / math.sqrt(Dh)
    FF = params["w1"].shape[0]
    dtype = x.dtype

    return pl.pallas_call(
        functools.partial(_cross_attn_kernel, num_heads=H, scale=scale),
        grid=(B,),
        in_specs=[
            pl.BlockSpec((1, L, E), lambda b: (b, 0, 0)),        # x
            pl.BlockSpec((1, L, E), lambda b: (b, 0, 0)),        # y
            pl.BlockSpec((3 * E, E), lambda b: (0, 0)),          # packed in-proj [Wq;Wk;Wv]
            pl.BlockSpec((1, 3 * E), lambda b: (0, 0)),          # packed in-proj bias
            pl.BlockSpec((E, E), lambda b: (0, 0)),              # wo
            pl.BlockSpec((1, E), lambda b: (0, 0)),              # bo
            pl.BlockSpec((2, E), lambda b: (0, 0)),              # LN1 gamma (x row0, y row1)
            pl.BlockSpec((2, E), lambda b: (0, 0)),              # LN1 beta
            pl.BlockSpec((FF, 2 * E), lambda b: (0, 0)),         # w1
            pl.BlockSpec((1, FF), lambda b: (0, 0)),             # b1
            pl.BlockSpec((2 * E, FF), lambda b: (0, 0)),         # w2
            pl.BlockSpec((1, 2 * E), lambda b: (0, 0)),          # b2
            pl.BlockSpec((1, 2 * E), lambda b: (0, 0)),          # LN2 gamma
            pl.BlockSpec((1, 2 * E), lambda b: (0, 0)),          # LN2 beta
        ],
        out_specs=pl.BlockSpec((1, L, 2 * E), lambda b: (b, 0, 0)),
        out_shape=jax.ShapeDtypeStruct((B, L, 2 * E), dtype),
        scratch_shapes=[pltpu.VMEM((2 * L, E), jnp.float32)],    # per-head ctx assembly
        compiler_params=pltpu.CompilerParams(dimension_semantics=("parallel",)),
    )(x, y,
      params["w_in"], params["b_in"], params["wo"], params["bo"],
      params["ln1_g"], params["ln1_b"],
      params["w1"], params["b1"], params["w2"], params["b2"],
      params["ln2_g"], params["ln2_b"])


# ------------------------------------------------------------------ params

def make_params(key, embed_dim, num_heads, ff_dim, dtype=jnp.float32):
    ks = jax.random.split(key, 4)
    E, FF = embed_dim, ff_dim
    std = 0.02
    return {
        # nn.MultiheadAttention in_proj_weight ([Wq; Wk; Wv]) pre-packed once (no per-call concat)
        "w_in": std * jax.random.normal(ks[0], (3 * E, E), dtype),
        "b_in": jnp.zeros((1, 3 * E), dtype),
        "wo": std * jax.random.normal(ks[1], (E, E), dtype),
        "bo": jnp.zeros((1, E), dtype),
        # ffn: Linear(2E -> FF), ReLU, Linear(FF -> 2E)
        "w1": std * jax.random.normal(ks[2], (FF, 2 * E), dtype),
        "b1": jnp.zeros((1, FF), dtype),
        "w2": std * jax.random.normal(ks[3], (2 * E, FF), dtype),
        "b2": jnp.zeros((1, 2 * E), dtype),
        # layer norms: row 0 = norm1_x, row 1 = norm1_y
        "ln1_g": jnp.ones((2, E), dtype), "ln1_b": jnp.zeros((2, E), dtype),
        "ln2_g": jnp.ones((1, 2 * E), dtype), "ln2_b": jnp.zeros((1, 2 * E), dtype),
    }


# ------------------------------------------------------------------ reference (plain JAX)

def _reference(x, y, params, num_heads):
    E = x.shape[-1]
    H = num_heads
    Dh = E // H
    inv = 1.0 / math.sqrt(Dh)

    def mha(q_in, kv_in):
        B, L, _ = q_in.shape
        w_in, b_in = params["w_in"], params["b_in"][0]
        q = q_in @ w_in[:E].T + b_in[:E]
        k = kv_in @ w_in[E:2 * E].T + b_in[E:2 * E]
        v = kv_in @ w_in[2 * E:].T + b_in[2 * E:]
        heads = lambda t: t.reshape(B, L, H, Dh).transpose(0, 2, 1, 3)
        s = jnp.einsum('bhqd,bhkd->bhqk', heads(q), heads(k)) * inv
        p = jax.nn.softmax(s, axis=-1)
        ctx = jnp.einsum('bhqk,bhkd->bhqd', p, heads(v))
        ctx = ctx.transpose(0, 2, 1, 3).reshape(B, L, E)
        return ctx @ params["wo"].T + params["bo"][0]

    def ln(t, g, b):
        mu = t.mean(-1, keepdims=True)
        var = ((t - mu) ** 2).mean(-1, keepdims=True)
        return (t - mu) / jnp.sqrt(var + 1e-5) * g + b

    x1 = ln(x + mha(x, y), params["ln1_g"][0], params["ln1_b"][0])
    y1 = ln(y + mha(y, x), params["ln1_g"][1], params["ln1_b"][1])
    fused = jnp.concatenate([x1, y1], axis=-1)
    h = jax.nn.relu(fused @ params["w1"].T + params["b1"][0])
    f = h @ params["w2"].T + params["b2"][0]
    return ln(f + fused, params["ln2_g"][0], params["ln2_b"][0])


# ------------------------------------------------------------------ main

if __name__ == "__main__":
    EMBED_DIM, NUM_HEADS, FF_DIM = 32, 4, 64
    B, L = 2, 8

    root = jax.random.PRNGKey(0)
    kx, ky, kp = jax.random.split(root, 3)
    x = jax.random.normal(kx, (B, L, EMBED_DIM), jnp.float32)
    y = jax.random.normal(ky, (B, L, EMBED_DIM), jnp.float32)
    params = make_params(kp, EMBED_DIM, NUM_HEADS, FF_DIM)

    fwd = jax.jit(functools.partial(cross_attention_forward, num_heads=NUM_HEADS))
    out = fwd(x, y, params)
    out = jax.block_until_ready(out)
    assert out.shape == (B, L, 2 * EMBED_DIM)

    ref = jax.block_until_ready(_reference(x, y, params, NUM_HEADS))
    max_err = float(jnp.max(jnp.abs(out - ref)))
    assert max_err < 2e-3, f"mismatch vs reference: {max_err}"

    print("KERNEL_OK")
</pallas_src>

<mosaic_0001>
module attributes {stable_mosaic.version = 11 : i64} {
  func.func @_cross_attn_kernel(%arg0: i32, %arg1: memref<1x8x32xf32, #tpu.memory_space<vmem>>, %arg2: memref<1x8x32xf32, #tpu.memory_space<vmem>>, %arg3: memref<96x32xf32, #tpu.memory_space<vmem>>, %arg4: memref<1x96xf32, #tpu.memory_space<vmem>>, %arg5: memref<32x32xf32, #tpu.memory_space<vmem>>, %arg6: memref<1x32xf32, #tpu.memory_space<vmem>>, %arg7: memref<2x32xf32, #tpu.memory_space<vmem>>, %arg8: memref<2x32xf32, #tpu.memory_space<vmem>>, %arg9: memref<64x64xf32, #tpu.memory_space<vmem>>, %arg10: memref<1x64xf32, #tpu.memory_space<vmem>>, %arg11: memref<64x64xf32, #tpu.memory_space<vmem>>, %arg12: memref<1x64xf32, #tpu.memory_space<vmem>>, %arg13: memref<1x64xf32, #tpu.memory_space<vmem>>, %arg14: memref<1x64xf32, #tpu.memory_space<vmem>>, %arg15: memref<1x8x64xf32, #tpu.memory_space<vmem>>, %arg16: memref<16x32xf32, #tpu.memory_space<vmem>>) attributes {dimension_semantics = [#tpu.dimension_semantics<parallel>], iteration_bounds = array<i64: 2>, scalar_prefetch = 0 : i64, scratch_operands = 1 : i64, tpu.core_type = #tpu.core_type<tc>, window_params = [{transform_indices = @transform_0, window_bounds = array<i64: 1, 8, 32>}, {transform_indices = @transform_1, window_bounds = array<i64: 1, 8, 32>}, {pipeline_mode = #tpu.pipeline_mode<synchronous>, transform_indices = @transform_2, window_bounds = array<i64: 96, 32>}, {pipeline_mode = #tpu.pipeline_mode<synchronous>, transform_indices = @transform_3, window_bounds = array<i64: 1, 96>}, {pipeline_mode = #tpu.pipeline_mode<synchronous>, transform_indices = @transform_4, window_bounds = array<i64: 32, 32>}, {pipeline_mode = #tpu.pipeline_mode<synchronous>, transform_indices = @transform_5, window_bounds = array<i64: 1, 32>}, {pipeline_mode = #tpu.pipeline_mode<synchronous>, transform_indices = @transform_6, window_bounds = array<i64: 2, 32>}, {pipeline_mode = #tpu.pipeline_mode<synchronous>, transform_indices = @transform_7, window_bounds = array<i64: 2, 32>}, {pipeline_mode = #tpu.pipeline_mode<synchronous>, transform_indices = @transform_8, window_bounds = array<i64: 64, 64>}, {pipeline_mode = #tpu.pipeline_mode<synchronous>, transform_indices = @transform_9, window_bounds = array<i64: 1, 64>}, {pipeline_mode = #tpu.pipeline_mode<synchronous>, transform_indices = @transform_10, window_bounds = array<i64: 64, 64>}, {pipeline_mode = #tpu.pipeline_mode<synchronous>, transform_indices = @transform_11, window_bounds = array<i64: 1, 64>}, {pipeline_mode = #tpu.pipeline_mode<synchronous>, transform_indices = @transform_12, window_bounds = array<i64: 1, 64>}, {pipeline_mode = #tpu.pipeline_mode<synchronous>, transform_indices = @transform_13, window_bounds = array<i64: 1, 64>}, {transform_indices = @transform_14, window_bounds = array<i64: 1, 8, 64>}]} {
    %c0 = arith.constant 0 : index
    %c0_0 = arith.constant 0 : index
    %c0_1 = arith.constant 0 : index
    %0 = vector.load %arg1[%c0, %c0_0, %c0_1] : memref<1x8x32xf32, #tpu.memory_space<vmem>>, vector<1x8x32xf32>
    %1 = vector.shape_cast %0 : vector<1x8x32xf32> to vector<8x32xf32>
    %c0_2 = arith.constant 0 : index
    %c0_3 = arith.constant 0 : index
    %c0_4 = arith.constant 0 : index
    %2 = vector.load %arg2[%c0_2, %c0_3, %c0_4] : memref<1x8x32xf32, #tpu.memory_space<vmem>>, vector<1x8x32xf32>
    %3 = vector.shape_cast %2 : vector<1x8x32xf32> to vector<8x32xf32>
    %4 = tpu.concatenate %1, %3 in 0 : vector<8x32xf32>, vector<8x32xf32> -> vector<16x32xf32>
    %c0_5 = arith.constant 0 : index
    %c0_6 = arith.constant 0 : index
    %5 = vector.load %arg3[%c0_5, %c0_6] : memref<96x32xf32, #tpu.memory_space<vmem>>, vector<96x32xf32>
    %cst = arith.constant dense<0.000000e+00> : vector<16x96xf32>
    %6 = tpu.matmul %4, %5, %cst {dimension_numbers = #tpu.dot_dimension_numbers<[1], [1], [0], [0], [0, 0, 1, 0], [], []>, precision = #tpu.contract_precision<fp32>} : vector<16x32xf32>, vector<96x32xf32>, vector<16x96xf32> -> vector<16x96xf32>
    %c0_7 = arith.constant 0 : index
    %c0_8 = arith.constant 0 : index
    %7 = vector.load %arg4[%c0_7, %c0_8] : memref<1x96xf32, #tpu.memory_space<vmem>>, vector<1x96xf32>
    %8 = vector.broadcast %7 : vector<1x96xf32> to vector<16x96xf32>
    %9 = arith.addf %6, %8 : vector<16x96xf32>
    %10 = vector.extract_strided_slice %9 {offsets = [0, 0], sizes = [16, 32], strides = [1, 1]} : vector<16x96xf32> to vector<16x32xf32>
    %cst_9 = arith.constant 0.353553385 : f32
    %11 = vector.broadcast %cst_9 : f32 to vector<16x32xf32>
    %12 = arith.mulf %10, %11 : vector<16x32xf32>
    %13 = vector.extract_strided_slice %9 {offsets = [0, 32], sizes = [16, 32], strides = [1, 1]} : vector<16x96xf32> to vector<16x32xf32>
    %14 = vector.extract_strided_slice %9 {offsets = [0, 64], sizes = [16, 32], strides = [1, 1]} : vector<16x96xf32> to vector<16x32xf32>
    %15 = vector.extract_strided_slice %12 {offsets = [0, 0], sizes = [8, 8], strides = [1, 1]} : vector<16x32xf32> to vector<8x8xf32>
    %16 = vector.extract_strided_slice %12 {offsets = [0, 8], sizes = [8, 8], strides = [1, 1]} : vector<16x32xf32> to vector<8x8xf32>
    %17 = vector.extract_strided_slice %12 {offsets = [0, 16], sizes = [8, 8], strides = [1, 1]} : vector<16x32xf32> to vector<8x8xf32>
    %18 = vector.extract_strided_slice %12 {offsets = [0, 24], sizes = [8, 8], strides = [1, 1]} : vector<16x32xf32> to vector<8x8xf32>
    %19 = vector.extract_strided_slice %12 {offsets = [8, 0], sizes = [8, 8], strides = [1, 1]} : vector<16x32xf32> to vector<8x8xf32>
    %20 = vector.extract_strided_slice %12 {offsets = [8, 8], sizes = [8, 8], strides = [1, 1]} : vector<16x32xf32> to vector<8x8xf32>
    %21 = vector.extract_strided_slice %12 {offsets = [8, 16], sizes = [8, 8], strides = [1, 1]} : vector<16x32xf32> to vector<8x8xf32>
    %22 = vector.extract_strided_slice %12 {offsets = [8, 24], sizes = [8, 8], strides = [1, 1]} : vector<16x32xf32> to vector<8x8xf32>
    %23 = vector.shape_cast %15 : vector<8x8xf32> to vector<1x8x8xf32>
    %24 = vector.shape_cast %16 : vector<8x8xf32> to vector<1x8x8xf32>
    %25 = vector.shape_cast %17 : vector<8x8xf32> to vector<1x8x8xf32>
    %26 = vector.shape_cast %18 : vector<8x8xf32> to vector<1x8x8xf32>
    %27 = vector.shape_cast %19 : vector<8x8xf32> to vector<1x8x8xf32>
    %28 = vector.shape_cast %20 : vector<8x8xf32> to vector<1x8x8xf32>
    %29 = vector.shape_cast %21 : vector<8x8xf32> to vector<1x8x8xf32>
    %30 = vector.shape_cast %22 : vector<8x8xf32> to vector<1x8x8xf32>
    %31 = tpu.concatenate %23, %24, %25, %26, %27, %28, %29, %30 in 0 : vector<1x8x8xf32>, vector<1x8x8xf32>, vector<1x8x8xf32>, vector<1x8x8xf32>, vector<1x8x8xf32>, vector<1x8x8xf32>, vector<1x8x8xf32>, vector<1x8x8xf32> -> vector<8x8x8xf32>
    %32 = vector.extract_strided_slice %13 {offsets = [8, 0], sizes = [8, 8], strides = [1, 1]} : vector<16x32xf32> to vector<8x8xf32>
    %33 = vector.extract_strided_slice %13 {offsets = [8, 8], sizes = [8, 8], strides = [1, 1]} : vector<16x32xf32> to vector<8x8xf32>
    %34 = vector.extract_strided_slice %13 {offsets = [8, 16], sizes = [8, 8], strides = [1, 1]} : vector<16x32xf32> to vector<8x8xf32>
    %35 = vector.extract_strided_slice %13 {offsets = [8, 24], sizes = [8, 8], strides = [1, 1]} : vector<16x32xf32> to vector<8x8xf32>
    %36 = vector.extract_strided_slice %13 {offsets = [0, 0], sizes = [8, 8], strides = [1, 1]} : vector<16x32xf32> to vector<8x8xf32>
    %37 = vector.extract_strided_slice %13 {offsets = [0, 8], sizes = [8, 8], strides = [1, 1]} : vector<16x32xf32> to vector<8x8xf32>
    %38 = vector.extract_strided_slice %13 {offsets = [0, 16], sizes = [8, 8], strides = [1, 1]} : vector<16x32xf32> to vector<8x8xf32>
    %39 = vector.extract_strided_slice %13 {offsets = [0, 24], sizes = [8, 8], strides = [1, 1]} : vector<16x32xf32> to vector<8x8xf32>
    %40 = vector.shape_cast %32 : vector<8x8xf32> to vector<1x8x8xf32>
    %41 = vector.shape_cast %33 : vector<8x8xf32> to vector<1x8x8xf32>
    %42 = vector.shape_cast %34 : vector<8x8xf32> to vector<1x8x8xf32>
    %43 = vector.shape_cast %35 : vector<8x8xf32> to vector<1x8x8xf32>
    %44 = vector.shape_cast %36 : vector<8x8xf32> to vector<1x8x8xf32>
    %45 = vector.shape_cast %37 : vector<8x8xf32> to vector<1x8x8xf32>
    %46 = vector.shape_cast %38 : vector<8x8xf32> to vector<1x8x8xf32>
    %47 = vector.shape_cast %39 : vector<8x8xf32> to vector<1x8x8xf32>
    %48 = tpu.concatenate %40, %41, %42, %43, %44, %45, %46, %47 in 0 : vector<1x8x8xf32>, vector<1x8x8xf32>, vector<1x8x8xf32>, vector<1x8x8xf32>, vector<1x8x8xf32>, vector<1x8x8xf32>, vector<1x8x8xf32>, vector<1x8x8xf32> -> vector<8x8x8xf32>
    %49 = vector.extract_strided_slice %14 {offsets = [8, 0], sizes = [8, 8], strides = [1, 1]} : vector<16x32xf32> to vector<8x8xf32>
    %50 = vector.extract_strided_slice %14 {offsets = [8, 8], sizes = [8, 8], strides = [1, 1]} : vector<16x32xf32> to vector<8x8xf32>
    %51 = vector.extract_strided_slice %14 {offsets = [8, 16], sizes = [8, 8], strides = [1, 1]} : vector<16x32xf32> to vector<8x8xf32>
    %52 = vector.extract_strided_slice %14 {offsets = [8, 24], sizes = [8, 8], strides = [1, 1]} : vector<16x32xf32> to vector<8x8xf32>
    %53 = vector.extract_strided_slice %14 {offsets = [0, 0], sizes = [8, 8], strides = [1, 1]} : vector<16x32xf32> to vector<8x8xf32>
    %54 = vector.extract_strided_slice %14 {offsets = [0, 8], sizes = [8, 8], strides = [1, 1]} : vector<16x32xf32> to vector<8x8xf32>
    %55 = vector.extract_strided_slice %14 {offsets = [0, 16], sizes = [8, 8], strides = [1, 1]} : vector<16x32xf32> to vector<8x8xf32>
    %56 = vector.extract_strided_slice %14 {offsets = [0, 24], sizes = [8, 8], strides = [1, 1]} : vector<16x32xf32> to vector<8x8xf32>
    %57 = vector.shape_cast %49 : vector<8x8xf32> to vector<1x8x8xf32>
    %58 = vector.shape_cast %50 : vector<8x8xf32> to vector<1x8x8xf32>
    %59 = vector.shape_cast %51 : vector<8x8xf32> to vector<1x8x8xf32>
    %60 = vector.shape_cast %52 : vector<8x8xf32> to vector<1x8x8xf32>
    %61 = vector.shape_cast %53 : vector<8x8xf32> to vector<1x8x8xf32>
    %62 = vector.shape_cast %54 : vector<8x8xf32> to vector<1x8x8xf32>
    %63 = vector.shape_cast %55 : vector<8x8xf32> to vector<1x8x8xf32>
    %64 = vector.shape_cast %56 : vector<8x8xf32> to vector<1x8x8xf32>
    %65 = tpu.concatenate %57, %58, %59, %60, %61, %62, %63, %64 in 0 : vector<1x8x8xf32>, vector<1x8x8xf32>, vector<1x8x8xf32>, vector<1x8x8xf32>, vector<1x8x8xf32>, vector<1x8x8xf32>, vector<1x8x8xf32>, vector<1x8x8xf32> -> vector<8x8x8xf32>
    "tpu.trace_start"() <{level = 10 : i32, message = "bqd,bkd->bqk"}> : () -> ()
    %cst_10 = arith.constant dense<0.000000e+00> : vector<8x8x8xf32>
    %66 = tpu.matmul %31, %48, %cst_10 {dimension_numbers = #tpu.dot_dimension_numbers<[2], [2], [1], [1], [0, 0, 0, 1, 1, 1], [0], [0]>, precision = #tpu.contract_precision<fp32>} : vector<8x8x8xf32>, vector<8x8x8xf32>, vector<8x8x8xf32> -> vector<8x8x8xf32>
    "tpu.trace_stop"() : () -> ()
    %cst_11 = arith.constant dense<0xFF800000> : vector<8x8xf32>
    %67 = vector.multi_reduction <maximumf>, %66, %cst_11 [2] : vector<8x8x8xf32> to vector<8x8xf32>
    %68 = vector.shape_cast %67 : vector<8x8xf32> to vector<8x8x1xf32>
    %69 = vector.broadcast %68 : vector<8x8x1xf32> to vector<8x8x8xf32>
    %70 = arith.subf %66, %69 : vector<8x8x8xf32>
    %71 = math.exp %70 : vector<8x8x8xf32>
    %cst_12 = arith.constant dense<0.000000e+00> : vector<8x8xf32>
    %72 = vector.multi_reduction <add>, %71, %cst_12 [2] : vector<8x8x8xf32> to vector<8x8xf32>
    %73 = vector.shape_cast %72 : vector<8x8xf32> to vector<8x8x1xf32>
    %74 = vector.broadcast %73 : vector<8x8x1xf32> to vector<8x8x8xf32>
    %75 = arith.divf %71, %74 : vector<8x8x8xf32>
    "tpu.trace_start"() <{level = 10 : i32, message = "bqk,bkd->bqd"}> : () -> ()
    %cst_13 = arith.constant dense<0.000000e+00> : vector<8x8x8xf32>
    %76 = tpu.matmul %75, %65, %cst_13 {dimension_numbers = #tpu.dot_dimension_numbers<[2], [1], [1], [2], [0, 0, 0, 1, 1, 2], [0], [0]>, precision = #tpu.contract_precision<fp32>} : vector<8x8x8xf32>, vector<8x8x8xf32>, vector<8x8x8xf32> -> vector<8x8x8xf32>
    "tpu.trace_stop"() : () -> ()
    %77 = vector.extract_strided_slice %76 {offsets = [0, 0, 0], sizes = [1, 8, 8], strides = [1, 1, 1]} : vector<8x8x8xf32> to vector<1x8x8xf32>
    %78 = vector.shape_cast %77 : vector<1x8x8xf32> to vector<8x8xf32>
    %c0_14 = arith.constant 0 : index
    %c0_15 = arith.constant 0 : index
    %79 = vector.load %arg16[%c0_14, %c0_15] : memref<16x32xf32, #tpu.memory_space<vmem>>, vector<8x8xf32>
    tpu.vector_store %arg16[%c0_14, %c0_15], %78 {strides = array<i32>} : memref<16x32xf32, #tpu.memory_space<vmem>>, vector<8x8xf32>,
    %80 = vector.extract_strided_slice %76 {offsets = [1, 0, 0], sizes = [1, 8, 8], strides = [1, 1, 1]} : vector<8x8x8xf32> to vector<1x8x8xf32>
    %81 = vector.shape_cast %80 : vector<1x8x8xf32> to vector<8x8xf32>
    %c0_16 = arith.constant 0 : index
    %c8 = arith.constant 8 : index
    %82 = vector.load %arg16[%c0_16, %c8] : memref<16x32xf32, #tpu.memory_space<vmem>>, vector<8x8xf32>
    tpu.vector_store %arg16[%c0_16, %c8], %81 {strides = array<i32>} : memref<16x32xf32, #tpu.memory_space<vmem>>, vector<8x8xf32>,
    %83 = vector.extract_strided_slice %76 {offsets = [2, 0, 0], sizes = [1, 8, 8], strides = [1, 1, 1]} : vector<8x8x8xf32> to vector<1x8x8xf32>
    %84 = vector.shape_cast %83 : vector<1x8x8xf32> to vector<8x8xf32>
    %c0_17 = arith.constant 0 : index
    %c16 = arith.constant 16 : index
    %85 = vector.load %arg16[%c0_17, %c16] : memref<16x32xf32, #tpu.memory_space<vmem>>, vector<8x8xf32>
    tpu.vector_store %arg16[%c0_17, %c16], %84 {strides = array<i32>} : memref<16x32xf32, #tpu.memory_space<vmem>>, vector<8x8xf32>,
    %86 = vector.extract_strided_slice %76 {offsets = [3, 0, 0], sizes = [1, 8, 8], strides = [1, 1, 1]} : vector<8x8x8xf32> to vector<1x8x8xf32>
    %87 = vector.shape_cast %86 : vector<1x8x8xf32> to vector<8x8xf32>
    %c0_18 = arith.constant 0 : index
    %c24 = arith.constant 24 : index
    %88 = vector.load %arg16[%c0_18, %c24] : memref<16x32xf32, #tpu.memory_space<vmem>>, vector<8x8xf32>
    tpu.vector_store %arg16[%c0_18, %c24], %87 {strides = array<i32>} : memref<16x32xf32, #tpu.memory_space<vmem>>, vector<8x8xf32>,
    %89 = vector.extract_strided_slice %76 {offsets = [4, 0, 0], sizes = [1, 8, 8], strides = [1, 1, 1]} : vector<8x8x8xf32> to vector<1x8x8xf32>
    %90 = vector.shape_cast %89 : vector<1x8x8xf32> to vector<8x8xf32>
    %c8_19 = arith.constant 8 : index
    %c0_20 = arith.constant 0 : index
    %91 = vector.load %arg16[%c8_19, %c0_20] : memref<16x32xf32, #tpu.memory_space<vmem>>, vector<8x8xf32>
    tpu.vector_store %arg16[%c8_19, %c0_20], %90 {strides = array<i32>} : memref<16x32xf32, #tpu.memory_space<vmem>>, vector<8x8xf32>,
    %92 = vector.extract_strided_slice %76 {offsets = [5, 0, 0], sizes = [1, 8, 8], strides = [1, 1, 1]} : vector<8x8x8xf32> to vector<1x8x8xf32>
    %93 = vector.shape_cast %92 : vector<1x8x8xf32> to vector<8x8xf32>
    %c8_21 = arith.constant 8 : index
    %c8_22 = arith.constant 8 : index
    %94 = vector.load %arg16[%c8_21, %c8_22] : memref<16x32xf32, #tpu.memory_space<vmem>>, vector<8x8xf32>
    tpu.vector_store %arg16[%c8_21, %c8_22], %93 {strides = array<i32>} : memref<16x32xf32, #tpu.memory_space<vmem>>, vector<8x8xf32>,
    %95 = vector.extract_strided_slice %76 {offsets = [6, 0, 0], sizes = [1, 8, 8], strides = [1, 1, 1]} : vector<8x8x8xf32> to vector<1x8x8xf32>
    %96 = vector.shape_cast %95 : vector<1x8x8xf32> to vector<8x8xf32>
    %c8_23 = arith.constant 8 : index
    %c16_24 = arith.constant 16 : index
    %97 = vector.load %arg16[%c8_23, %c16_24] : memref<16x32xf32, #tpu.memory_space<vmem>>, vector<8x8xf32>
    tpu.vector_store %arg16[%c8_23, %c16_24], %96 {strides = array<i32>} : memref<16x32xf32, #tpu.memory_space<vmem>>, vector<8x8xf32>,
    %98 = vector.extract_strided_slice %76 {offsets = [7, 0, 0], sizes = [1, 8, 8], strides = [1, 1, 1]} : vector<8x8x8xf32> to vector<1x8x8xf32>
    %99 = vector.shape_cast %98 : vector<1x8x8xf32> to vector<8x8xf32>
    %c8_25 = arith.constant 8 : index
    %c24_26 = arith.constant 24 : index
    %100 = vector.load %arg16[%c8_25, %c24_26] : memref<16x32xf32, #tpu.memory_space<vmem>>, vector<8x8xf32>
    tpu.vector_store %arg16[%c8_25, %c24_26], %99 {strides = array<i32>} : memref<16x32xf32, #tpu.memory_space<vmem>>, vector<8x8xf32>,
    %c0_27 = arith.constant 0 : index
    %c0_28 = arith.constant 0 : index
    %101 = vector.load %arg16[%c0_27, %c0_28] : memref<16x32xf32, #tpu.memory_space<vmem>>, vector<16x32xf32>
    %c0_29 = arith.constant 0 : index
    %c0_30 = arith.constant 0 : index
    %102 = vector.load %arg5[%c0_29, %c0_30] : memref<32x32xf32, #tpu.memory_space<vmem>>, vector<32x32xf32>
    %cst_31 = arith.constant dense<0.000000e+00> : vector<16x32xf32>
    %103 = tpu.matmul %101, %102, %cst_31 {dimension_numbers = #tpu.dot_dimension_numbers<[1], [1], [0], [0], [0, 0, 1, 0], [], []>, precision = #tpu.contract_precision<fp32>} : vector<16x32xf32>, vector<32x32xf32>, vector<16x32xf32> -> vector<16x32xf32>
    %c0_32 = arith.constant 0 : index
    %c0_33 = arith.constant 0 : index
    %104 = vector.load %arg6[%c0_32, %c0_33] : memref<1x32xf32, #tpu.memory_space<vmem>>, vector<1x32xf32>
    %105 = vector.broadcast %104 : vector<1x32xf32> to vector<16x32xf32>
    %106 = arith.addf %103, %105 : vector<16x32xf32>
    %107 = arith.addf %106, %4 : vector<16x32xf32>
    %cst_34 = arith.constant dense<0.000000e+00> : vector<16xf32>
    %108 = vector.multi_reduction <add>, %107, %cst_34 [1] : vector<16x32xf32> to vector<16xf32>
    %109 = vector.shape_cast %108 : vector<16xf32> to vector<16x1xf32>
    %cst_35 = arith.constant 3.200000e+01 : f32
    %110 = vector.broadcast %cst_35 : f32 to vector<16x1xf32>
    %111 = arith.divf %109, %110 : vector<16x1xf32>
    %112 = vector.broadcast %111 : vector<16x1xf32> to vector<16x32xf32>
    %113 = arith.subf %107, %112 : vector<16x32xf32>
    %114 = arith.mulf %113, %113 : vector<16x32xf32>
    %cst_36 = arith.constant dense<0.000000e+00> : vector<16xf32>
    %115 = vector.multi_reduction <add>, %114, %cst_36 [1] : vector<16x32xf32> to vector<16xf32>
    %116 = vector.shape_cast %115 : vector<16xf32> to vector<16x1xf32>
    %cst_37 = arith.constant 3.200000e+01 : f32
    %117 = vector.broadcast %cst_37 : f32 to vector<16x1xf32>
    %118 = arith.divf %116, %117 : vector<16x1xf32>
    %119 = vector.broadcast %111 : vector<16x1xf32> to vector<16x32xf32>
    %120 = arith.subf %107, %119 : vector<16x32xf32>
    %cst_38 = arith.constant 9.99999974E-6 : f32
    %121 = vector.broadcast %cst_38 : f32 to vector<16x1xf32>
    %122 = arith.addf %118, %121 : vector<16x1xf32>
    %123 = math.rsqrt %122 : vector<16x1xf32>
    %124 = vector.broadcast %123 : vector<16x1xf32> to vector<16x32xf32>
    %125 = arith.mulf %120, %124 : vector<16x32xf32>
    %c0_39 = arith.constant 0 : index
    %c0_40 = arith.constant 0 : index
    %126 = vector.load %arg7[%c0_39, %c0_40] : memref<2x32xf32, #tpu.memory_space<vmem>>, vector<2x32xf32>
    %c0_41 = arith.constant 0 : index
    %c0_42 = arith.constant 0 : index
    %127 = vector.load %arg8[%c0_41, %c0_42] : memref<2x32xf32, #tpu.memory_space<vmem>>, vector<2x32xf32>
    %128 = vector.extract_strided_slice %125 {offsets = [0, 0], sizes = [8, 32], strides = [1, 1]} : vector<16x32xf32> to vector<8x32xf32>
    %129 = vector.extract_strided_slice %126 {offsets = [0, 0], sizes = [1, 32], strides = [1, 1]} : vector<2x32xf32> to vector<1x32xf32>
    %130 = vector.broadcast %129 : vector<1x32xf32> to vector<8x32xf32>
    %131 = arith.mulf %128, %130 : vector<8x32xf32>
    %132 = vector.extract_strided_slice %127 {offsets = [0, 0], sizes = [1, 32], strides = [1, 1]} : vector<2x32xf32> to vector<1x32xf32>
    %133 = vector.broadcast %132 : vector<1x32xf32> to vector<8x32xf32>
    %134 = arith.addf %131, %133 : vector<8x32xf32>
    %135 = vector.extract_strided_slice %125 {offsets = [8, 0], sizes = [8, 32], strides = [1, 1]} : vector<16x32xf32> to vector<8x32xf32>
    %136 = vector.extract_strided_slice %126 {offsets = [1, 0], sizes = [1, 32], strides = [1, 1]} : vector<2x32xf32> to vector<1x32xf32>
    %137 = vector.broadcast %136 : vector<1x32xf32> to vector<8x32xf32>
    %138 = arith.mulf %135, %137 : vector<8x32xf32>
    %139 = vector.extract_strided_slice %127 {offsets = [1, 0], sizes = [1, 32], strides = [1, 1]} : vector<2x32xf32> to vector<1x32xf32>
    %140 = vector.broadcast %139 : vector<1x32xf32> to vector<8x32xf32>
    %141 = arith.addf %138, %140 : vector<8x32xf32>
    %142 = tpu.concatenate %134, %141 in 1 : vector<8x32xf32>, vector<8x32xf32> -> vector<8x64xf32>
    %c0_43 = arith.constant 0 : index
    %c0_44 = arith.constant 0 : index
    %143 = vector.load %arg9[%c0_43, %c0_44] : memref<64x64xf32, #tpu.memory_space<vmem>>, vector<64x64xf32>
    %cst_45 = arith.constant dense<0.000000e+00> : vector<8x64xf32>
    %144 = tpu.matmul %142, %143, %cst_45 {dimension_numbers = #tpu.dot_dimension_numbers<[1], [1], [0], [0], [0, 0, 1, 0], [], []>, precision = #tpu.contract_precision<fp32>} : vector<8x64xf32>, vector<64x64xf32>, vector<8x64xf32> -> vector<8x64xf32>
    %c0_46 = arith.constant 0 : index
    %c0_47 = arith.constant 0 : index
    %145 = vector.load %arg10[%c0_46, %c0_47] : memref<1x64xf32, #tpu.memory_space<vmem>>, vector<1x64xf32>
    %146 = vector.broadcast %145 : vector<1x64xf32> to vector<8x64xf32>
    %147 = arith.addf %144, %146 : vector<8x64xf32>
    %cst_48 = arith.constant 0.000000e+00 : f32
    %148 = vector.broadcast %cst_48 : f32 to vector<8x64xf32>
    %149 = arith.maximumf %147, %148 : vector<8x64xf32>
    %c0_49 = arith.constant 0 : index
    %c0_50 = arith.constant 0 : index
    %150 = vector.load %arg11[%c0_49, %c0_50] : memref<64x64xf32, #tpu.memory_space<vmem>>, vector<64x64xf32>
    %cst_51 = arith.constant dense<0.000000e+00> : vector<8x64xf32>
    %151 = tpu.matmul %149, %150, %cst_51 {dimension_numbers = #tpu.dot_dimension_numbers<[1], [1], [0], [0], [0, 0, 1, 0], [], []>, precision = #tpu.contract_precision<fp32>} : vector<8x64xf32>, vector<64x64xf32>, vector<8x64xf32> -> vector<8x64xf32>
    %c0_52 = arith.constant 0 : index
    %c0_53 = arith.constant 0 : index
    %152 = vector.load %arg12[%c0_52, %c0_53] : memref<1x64xf32, #tpu.memory_space<vmem>>, vector<1x64xf32>
    %153 = vector.broadcast %152 : vector<1x64xf32> to vector<8x64xf32>
    %154 = arith.addf %151, %153 : vector<8x64xf32>
    %155 = arith.addf %154, %142 : vector<8x64xf32>
    %cst_54 = arith.constant dense<0.000000e+00> : vector<8xf32>
    %156 = vector.multi_reduction <add>, %155, %cst_54 [1] : vector<8x64xf32> to vector<8xf32>
    %157 = vector.shape_cast %156 : vector<8xf32> to vector<8x1xf32>
    %cst_55 = arith.constant 6.400000e+01 : f32
    %158 = vector.broadcast %cst_55 : f32 to vector<8x1xf32>
    %159 = arith.divf %157, %158 : vector<8x1xf32>
    %160 = vector.broadcast %159 : vector<8x1xf32> to vector<8x64xf32>
    %161 = arith.subf %155, %160 : vector<8x64xf32>
    %162 = arith.mulf %161, %161 : vector<8x64xf32>
    %cst_56 = arith.constant dense<0.000000e+00> : vector<8xf32>
    %163 = vector.multi_reduction <add>, %162, %cst_56 [1] : vector<8x64xf32> to vector<8xf32>
    %164 = vector.shape_cast %163 : vector<8xf32> to vector<8x1xf32>
    %cst_57 = arith.constant 6.400000e+01 : f32
    %165 = vector.broadcast %cst_57 : f32 to vector<8x1xf32>
    %166 = arith.divf %164, %165 : vector<8x1xf32>
    %167 = vector.broadcast %159 : vector<8x1xf32> to vector<8x64xf32>
    %168 = arith.subf %155, %167 : vector<8x64xf32>
    %cst_58 = arith.constant 9.99999974E-6 : f32
    %169 = vector.broadcast %cst_58 : f32 to vector<8x1xf32>
    %170 = arith.addf %166, %169 : vector<8x1xf32>
    %171 = math.rsqrt %170 : vector<8x1xf32>
    %172 = vector.broadcast %171 : vector<8x1xf32> to vector<8x64xf32>
    %173 = arith.mulf %168, %172 : vector<8x64xf32>
    %c0_59 = arith.constant 0 : index
    %c0_60 = arith.constant 0 : index
    %174 = vector.load %arg13[%c0_59, %c0_60] : memref<1x64xf32, #tpu.memory_space<vmem>>, vector<1x64xf32>
    %175 = vector.broadcast %174 : vector<1x64xf32> to vector<8x64xf32>
    %176 = arith.mulf %173, %175 : vector<8x64xf32>
    %c0_61 = arith.constant 0 : index
    %c0_62 = arith.constant 0 : index
    %177 = vector.load %arg14[%c0_61, %c0_62] : memref<1x64xf32, #tpu.memory_space<vmem>>, vector<1x64xf32>
    %178 = vector.broadcast %177 : vector<1x64xf32> to vector<8x64xf32>
    %179 = arith.addf %176, %178 : vector<8x64xf32>
    %c0_63 = arith.constant 0 : index
    %c0_64 = arith.constant 0 : index
    %c0_65 = arith.constant 0 : index
    %180 = vector.load %arg15[%c0_63, %c0_64, %c0_65] : memref<1x8x64xf32, #tpu.memory_space<vmem>>, vector<1x8x64xf32>
    %181 = vector.shape_cast %180 : vector<1x8x64xf32> to vector<8x64xf32>
    %182 = vector.shape_cast %179 : vector<8x64xf32> to vector<1x8x64xf32>
    tpu.vector_store %arg15[%c0_63, %c0_64, %c0_65], %182 {strides = array<i32>} : memref<1x8x64xf32, #tpu.memory_space<vmem>>, vector<1x8x64xf32>,
    return
  }
  func.func @transform_0(%arg0: i32) -> (i32, i32, i32) {
    %c0_i32 = arith.constant 0 : i32
    %c0_i32_0 = arith.constant 0 : i32
    %c0_i32_1 = arith.constant 0 : i32
    return %arg0, %c0_i32, %c0_i32_0 : i32, i32, i32
  }
  func.func @transform_1(%arg0: i32) -> (i32, i32, i32) {
    %c0_i32 = arith.constant 0 : i32
    %c0_i32_0 = arith.constant 0 : i32
    %c0_i32_1 = arith.constant 0 : i32
    return %arg0, %c0_i32, %c0_i32_0 : i32, i32, i32
  }
  func.func @transform_2(%arg0: i32) -> (i32, i32) {
    %c0_i32 = arith.constant 0 : i32
    %c0_i32_0 = arith.constant 0 : i32
    %c0_i32_1 = arith.constant 0 : i32
    return %c0_i32, %c0_i32_0 : i32, i32
  }
  func.func @transform_3(%arg0: i32) -> (i32, i32) {
    %c0_i32 = arith.constant 0 : i32
    %c0_i32_0 = arith.constant 0 : i32
    %c0_i32_1 = arith.constant 0 : i32
    return %c0_i32, %c0_i32_0 : i32, i32
  }
  func.func @transform_4(%arg0: i32) -> (i32, i32) {
    %c0_i32 = arith.constant 0 : i32
    %c0_i32_0 = arith.constant 0 : i32
    %c0_i32_1 = arith.constant 0 : i32
    return %c0_i32, %c0_i32_0 : i32, i32
  }
  func.func @transform_5(%arg0: i32) -> (i32, i32) {
    %c0_i32 = arith.constant 0 : i32
    %c0_i32_0 = arith.constant 0 : i32
    %c0_i32_1 = arith.constant 0 : i32
    return %c0_i32, %c0_i32_0 : i32, i32
  }
  func.func @transform_6(%arg0: i32) -> (i32, i32) {
    %c0_i32 = arith.constant 0 : i32
    %c0_i32_0 = arith.constant 0 : i32
    %c0_i32_1 = arith.constant 0 : i32
    return %c0_i32, %c0_i32_0 : i32, i32
  }
  func.func @transform_7(%arg0: i32) -> (i32, i32) {
    %c0_i32 = arith.constant 0 : i32
    %c0_i32_0 = arith.constant 0 : i32
    %c0_i32_1 = arith.constant 0 : i32
    return %c0_i32, %c0_i32_0 : i32, i32
  }
  func.func @transform_8(%arg0: i32) -> (i32, i32) {
    %c0_i32 = arith.constant 0 : i32
    %c0_i32_0 = arith.constant 0 : i32
    %c0_i32_1 = arith.constant 0 : i32
    return %c0_i32, %c0_i32_0 : i32, i32
  }
  func.func @transform_9(%arg0: i32) -> (i32, i32) {
    %c0_i32 = arith.constant 0 : i32
    %c0_i32_0 = arith.constant 0 : i32
    %c0_i32_1 = arith.constant 0 : i32
    return %c0_i32, %c0_i32_0 : i32, i32
  }
  func.func @transform_10(%arg0: i32) -> (i32, i32) {
    %c0_i32 = arith.constant 0 : i32
    %c0_i32_0 = arith.constant 0 : i32
    %c0_i32_1 = arith.constant 0 : i32
    return %c0_i32, %c0_i32_0 : i32, i32
  }
  func.func @transform_11(%arg0: i32) -> (i32, i32) {
    %c0_i32 = arith.constant 0 : i32
    %c0_i32_0 = arith.constant 0 : i32
    %c0_i32_1 = arith.constant 0 : i32
    return %c0_i32, %c0_i32_0 : i32, i32
  }
  func.func @transform_12(%arg0: i32) -> (i32, i32) {
    %c0_i32 = arith.constant 0 : i32
    %c0_i32_0 = arith.constant 0 : i32
    %c0_i32_1 = arith.constant 0 : i32
    return %c0_i32, %c0_i32_0 : i32, i32
  }
  func.func @transform_13(%arg0: i32) -> (i32, i32) {
    %c0_i32 = arith.constant 0 : i32
    %c0_i32_0 = arith.constant 0 : i32
    %c0_i32_1 = arith.constant 0 : i32
    return %c0_i32, %c0_i32_0 : i32, i32
  }
  func.func @transform_14(%arg0: i32) -> (i32, i32, i32) {
    %c0_i32 = arith.constant 0 : i32
    %c0_i32_0 = arith.constant 0 : i32
    %c0_i32_1 = arith.constant 0 : i32
    return %arg0, %c0_i32, %c0_i32_0 : i32, i32, i32
  }
}

</mosaic_0001>

<bundles_post_ra>
// kernel: cross_attention_forward.1
= control target key start
LH: loop header
LB: loop body
LE: loop exit
PB: predicated region body
PF: predicated region fallthrough
CT: control target
= control target key end

     0   :  { %s6297_s0 = inlined_call_operand.hbm [shape: f32[2,8,32], index: 0, kind: input, shape index: {}]   ;;  %s6298_s1 = inlined_call_operand.hbm [shape: f32[2,8,32], index: 1, kind: input, shape index: {}]   ;;  %s6299_s2 = inlined_call_operand.vmem [shape: f32[96,32], index: 2, kind: input, shape index: {}]   ;;  %s6300_s3 = inlined_call_operand.vmem [shape: f32[1,96], index: 3, kind: input, shape index: {}]   ;;  %s6301_s4 = inlined_call_operand.hbm [shape: f32[32,32], index: 4, kind: input, shape index: {}]   ;;  %s6302_s5 = inlined_call_operand.hbm [shape: f32[1,32], index: 5, kind: input, shape index: {}]   ;;  %s6303_s6 = inlined_call_operand.vmem [shape: f32[2,32], index: 6, kind: input, shape index: {}]   ;;  %s6304_s7 = inlined_call_operand.vmem [shape: f32[2,32], index: 7, kind: input, shape index: {}]   ;;  %s6305_s8 = inlined_call_operand.vmem [shape: f32[64,64], index: 8, kind: input, shape index: {}]   ;;  %s6306_s9 = inlined_call_operand.hbm [shape: f32[1,64], index: 9, kind: input, shape index: {}]   ;;  %s6307_s10 = inlined_call_operand.vmem [shape: f32[64,64], index: 10, kind: input, shape index: {}]   ;;  %s6308_s11 = inlined_call_operand.hbm [shape: f32[1,64], index: 11, kind: input, shape index: {}]   ;;  %s6309_s12 = inlined_call_operand.vmem [shape: f32[1,64], index: 12, kind: input, shape index: {}]   ;;  %s6310_s13 = inlined_call_operand.vmem [shape: f32[1,64], index: 13, kind: input, shape index: {}]   ;;  %s6311_s14 = inlined_call_operand.hbm [shape: f32[2,8,64], index: 14, kind: output, shape index: {}]  }
   0x1   :  { %6321 = sst [smem:[#allocation28_spill]] %s6301_s4 }
   0x2   :  { %6322 = sst [smem:[#allocation29_spill]] %s6302_s5 }
   0x3   :  { %6323 = sst [smem:[#allocation30_spill]] %s6306_s9 }
   0x4   :  { %6324 = sst [smem:[#allocation31_spill]] %s6308_s11 }
   0x5   :  { %6325 = sst [smem:[#allocation32_spill]] %s6310_s13 }
   0x6   :  { %6326 = sst [smem:[#allocation33_spill]] %s6311_s14 }
   0x7   :  { %19 = vsyncpa [#allocation4], 0 }
   0x8   :  { %21 = vsyncpa [#allocation4 + $0x1], 0 }
   0x9   :  { %22 = vsyncpa [#allocation7], 0 }
   0xa   :  { %24 = vsyncpa [#allocation7 + $0x1], 0 }
   0xb   :  { %25 = vsyncpa [#allocation10], 0 }
   0xc   :  { %26 = vsyncpa [#allocation13], 0 }
   0xd   :  { %27 = vsyncpa [#allocation5], 0 }
   0xe   :  { %29 = vsyncpa [#allocation5 + $0x1], 0  ;;  %s5243_s29 = smov 0   ;;  %s5245_s30 = smov 0  }
   0xf   :  { %s5247_s15 = smov 0   ;;  %s5249_s16 = smov 0  }
  0x10 LB: > { %6327 = sst [smem:[#allocation21_spill]] %s5137_s29  ;;  %s5267_s20 = sadd.s32 4294967295, %s5149_s16   ;;  %s5149_s16 = sphi %s5249_s16, %s6352_s16   ;;  %s5145_s15 = sphi %s5247_s15, %s6354_s15   ;;  %s5141_s30 = sphi %s5245_s30, %s6356_s30   ;;  %s5137_s29 = sphi %s5243_s29, %s6355_s29  }
  0x11   : > { %6328 = sst [smem:[#allocation22_spill]] %s5145_s15  ;;  %p4710_p0 = scmp.ge.s32.totalorder %s5149_s16, 1 }
  0x12   : > { %6329 = sst [smem:[#allocation23_spill]] %s5149_s16  ;;  %p56_p1 = scmp.eq.s32.totalorder %s5267_s20, 0 }
  0x13   : > { %s6330_s4 = sld [smem:[#allocation28_spill]]  ;;  %p370_p2 = scmp.lt.s32.totalorder %s5149_s16, 3 }
  0x14   : > { %s5151_s22 = smov [#allocation8]   ;;  %s6332_s5 = sld [smem:[#allocation29_spill]] }
  0x15   : > { %p5272_p3 = pnand %p4710_p0, %p370_p2  ;;  %s389_s23 = sshll.u32 %s5151_s22, 4  ;;  %s390_s23 = int_to_ptr.vmem [resolvable:$true] %s389_s23 }
  0x16   : > { %s6334_s9 = sld [smem:[#allocation30_spill]]  ;;  %s5152_s22 = smov [#allocation9]  }
  0x17   : > { %p4754_p4 = pneg %p5272_p3  ;;  %s5153_s13 = smov 128  }
  0x18   : > { %s5154_s24 = smov 8   ;;  %s6335_s11 = sld [smem:[#allocation31_spill]] }
  0x19   : > { %s387_s19 = sshll.u32 %s6330_s4, 4  ;;  %p5284_p6 = pnand %p4754_p4, %p56_p1  ;;  %s388_s19 = int_to_ptr.hbm [resolvable:$true] %s387_s19 }
  0x1a   : > { %s402_s26 = sshll.u32 %s6332_s5, 4  ;;  %s404_s4 = sshll.u32 %s5152_s22, 4  ;;  %s403_s26 = int_to_ptr.hbm [resolvable:$true] %s402_s26  ;;  %s405_s4 = int_to_ptr.vmem [resolvable:$true] %s404_s4 }
  0x1b   : > { %4757 = dma.hbm_to_vmem [thread:$0]  (!%p5284_p6), %s388_s19, 512, %s390_s23, [#allocation7], %s5153_s13, %s5153_s13, %s5154_s24  }
  0x1c   : > { %s423_s18 = sshll.u32 %s6334_s9, 4  ;;  %s5155_s17 = smov [#allocation11]   ;;  %s424_s18 = int_to_ptr.hbm [resolvable:$true] %s423_s18 }
  0x1d   : > { %4760 = dma.hbm_to_vmem [thread:$0]  (!%p5284_p6), %s403_s26, 16, %s405_s4, [#allocation10]  }
  0x1e   : > { %s438_s28 = sshll.u32 %s6335_s11, 4  ;;  %s425_s22 = sshll.u32 %s5155_s17, 4  ;;  %s439_s28 = int_to_ptr.hbm [resolvable:$true] %s438_s28  ;;  %s426_s22 = int_to_ptr.vmem [resolvable:$true] %s425_s22 }
  0x1f   : > { %4763 = dma.hbm_to_vmem [thread:$0]  (!%p5284_p6), %s424_s18, 16, %s426_s22, [#allocation10]  }
  0x20   : > { %s5156_s13 = smov [#allocation12]   ;;  %s4709_s5 = sadd.s32 4294967294, %s5149_s16  }
  0x21   : > { %s440_s4 = sshll.u32 %s5156_s13, 4  ;;  %s5304_s19 = sadd.s32 1, %s5149_s16   ;;  %s441_s4 = int_to_ptr.vmem [resolvable:$true] %s440_s4 }
  0x22   : > { %4766 = dma.hbm_to_vmem [thread:$0]  (!%p5284_p6), %s439_s28, 16, %s441_s4, [#allocation13]  }
  0x23   : > { %6336 = sst [smem:[#allocation24_spill]] %s5304_s19  ;;  %s39_s23 = ssub.s32 %s5149_s16, %s5304_s19 }
  0x24   : > { %s42_s26 = sadd.s32 1, %s5145_s15  ;;  %p40_p7 = scmp.eq.s32.totalorder %s39_s23, 0 }
  0x25   : > { %p49_p8 = scmp.ne.s32.totalorder %s5145_s15, %s5141_s30  ;;  %p50_p9 = scmp.eq.s32.totalorder %s5149_s16, 0 }
  0x26   : > { %p55_p10 = scmp.ne.s32.totalorder %s5141_s30, %s5137_s29  ;;  %p357_p13 = scmp.eq.s32.totalorder %s5267_s20, 1 }
  0x27   : > { %s5315_s18 = scalar_select %p40_p7, %s5145_s15, %s42_s26  }
  0x28   : > { %p5317_p11 = por %p50_p9, %p49_p8  ;;  %p5323_p12 = por %p56_p1, %p55_p10 }
  0x29   : > { %6337 = sst [smem:[#allocation25_spill]] %s5315_s18  ;;  %p363_p0 = scmp.eq.s32.totalorder %s4709_s5, 1 }
  0x2a   : > { %p4782_p2 = scmp.lt.s32.totalorder %s5149_s16, 2  ;;  %s457_s25 = sand.u32 1, %s5145_s15  }
  0x2b   : > { %p5330_p4 = por %p357_p13, %p49_p8  ;;  %p5334_p6 = por %p363_p0, %p55_p10 }
  0x2c   : > { %s5338_s22 = sshll.u32 %s457_s25, 3  ;;  %s4717_s13 = sshll.u32 %s5149_s16, 3 }
  0x2d   : > { %s6340_s28 = scalar_select %p5330_p4, 1, 0 }
  0x2e   : > { %s6342_s17 = scalar_select %p5334_p6, 1, 0 }
  0x2f   : > { %6341 = sst [smem:[#allocation26_spill]] %s6340_s28  ;;  %s465_s26 = scalar_lea.hbm %s6297_s0, %s4717_s13 }
  0x30   : > { %6343 = sst [smem:[#allocation27_spill]] %s6342_s17  ;;  %s461_s9 = scalar_lea.vmem [#allocation3], %s5338_s22 }
  0x31   : > { %s469_s5 = sshll.u32 %s461_s9, 4  ;;  %s467_s11 = sshll.u32 %s465_s26, 4  ;;  %s470_s5 = int_to_ptr.vmem [resolvable:$true] %s469_s5  ;;  %s468_s11 = int_to_ptr.hbm [resolvable:$true] %s467_s11 }
  0x32   : > { %p5347_p7 = pnand %p4782_p2, %p5317_p11  ;;  %s484_s17 = scalar_lea.hbm %s6298_s1, %s4717_s13 }
  0x33   : > { %s476_s29 = sand.u32 1, %s5149_s16   ;;  %s458_s28 = scalar_lea.sflag [#allocation4], %s457_s25 }
  0x34   : > { %s5007_s4 = sshra.s32 %s468_s11, 4  ;;  %p5011_p9 = pneg %p5347_p7  ;;  %s5008_s4 = int_to_ptr.hbm [resolvable:$true] %s5007_s4 }
  0x35   : > { %s5009_s23 = scalar_lea.hbm %s5008_s4, 8  ;;  %s5014_s26 = scalar_lea.hbm %s6297_s0, 16 }
  0x36   : > { %p5010_p8 = scmp.ne.s32.totalorder %s5008_s4, %s5009_s23  ;;  %p5015_p13 = scmp.lt.s32.totalorder %s5008_s4, %s6297_s0 }
  0x37   : > { %p5016_p0 = scmp.lt.s32.totalorder %s5014_s26, %s5009_s23 }
  0x38   : > { %p5012_p10 = pnand %p5011_p9, %p5010_p8 }
  0x39   : > { %p5017_p2 = por %p5016_p0, %p5015_p13 }
  0x3a   : > { %p5013_p11 = pneg %p5012_p10 }
  0x3c   : > { %p5018_p5 = pnand %p5017_p2, %p5013_p11 }
  0x3e   : > { %5021 = shalt.err (!%p5018_p5)
}
  0x3f   : > { %4770 = dma.hbm_to_vmem [thread:$0]  (!%p5347_p7), %s468_s11, 128, %s470_s5, %s458_s28  }
  0x40   : > { %s486_s25 = sshll.u32 %s484_s17, 4  ;;  %s480_s13 = scalar_lea.vmem [#allocation6], %s5338_s22  ;;  %s487_s25 = int_to_ptr.hbm [resolvable:$true] %s486_s25 }
  0x41   : > { %s488_s16 = sshll.u32 %s480_s13, 4  ;;  %s477_s9 = scalar_lea.sflag [#allocation7], %s476_s29  ;;  %s489_s16 = int_to_ptr.vmem [resolvable:$true] %s488_s16 }
  0x42   : > { %s5037_s24 = sshra.s32 %s487_s25, 4  ;;  %s5044_s26 = scalar_lea.hbm %s6298_s1, 16  ;;  %s5038_s24 = int_to_ptr.hbm [resolvable:$true] %s5037_s24 }
  0x43   : > { %s5039_s14 = scalar_lea.hbm %s5038_s24, 8  ;;  %p5045_p5 = scmp.lt.s32.totalorder %s5038_s24, %s6298_s1 }
  0x44   : > { %p5040_p8 = scmp.ne.s32.totalorder %s5038_s24, %s5039_s14  ;;  %p5046_p13 = scmp.lt.s32.totalorder %s5044_s26, %s5039_s14 }
  0x46   : > { %p5042_p10 = pnand %p5040_p8, %p5011_p9  ;;  %p5047_p0 = por %p5046_p13, %p5045_p5 }
  0x48   : > { %p5043_p11 = pneg %p5042_p10 }
  0x4a   : > { %p5048_p2 = pnand %p5047_p0, %p5043_p11 }
  0x4c   : > { %5051 = shalt.err (!%p5048_p2)
}
  0x4d   : > { %4773 = dma.hbm_to_vmem [thread:$0]  (!%p5347_p7), %s487_s25, 128, %s489_s16, %s477_s9  }
  0x4e   : > { %497 = sbr.rel (%p5272_p3) target bundleno = 2501 (0x9c5), region = 76  ;;  %s5383_s29 = sand.u32 (!%p5272_p3), 1, %s5141_s30  }
  0x4f   : > { %s5386_s28 = sshll.u32 (!%p5272_p3), %s5383_s29, 3  ;;  %s500_s17 = scalar_lea.sflag (!%p5272_p3), [#allocation4], %s5383_s29 }
  0x50   : > { %s503_s14 = scalar_lea.vmem (!%p5272_p3), [#allocation3], %s5386_s28 }
  0x53   : > { %5112 = dma.done.wait (%p5323_p12), %s500_s17, 128  }
  0x54   : > { %5114 = vsyncadd (%p5323_p12), %s500_s17, 4294967168  ;;  %s509_s16 = sand.u32 1, %s5267_s20   ;;  %s513_s18 = scalar_lea.vmem [#allocation6], %s5386_s28 }
  0x55   : > { %s510_s21 = scalar_lea.sflag [#allocation7], %s509_s16 }
  0x56   : > { %5116 = dma.done.wait (%p5323_p12), %s510_s21, 128  }
  0x57   : > { %5118 = vsyncadd (%p5323_p12), %s510_s21, 4294967168 }
  0x58   : > { %5120 = dma.done.wait (%p56_p1), [#allocation7], 512  }
  0x59   : > { %5122 = vsyncadd (%p56_p1), [#allocation7], 4294966784 }
  0x5a   : > { %5124 = dma.done.wait (%p56_p1), [#allocation10], 32  }
  0x5b   : > { %5126 = vsyncadd (%p56_p1), [#allocation10], 4294967264 }
  0x5c   : > { %5128 = dma.done.wait (%p56_p1), [#allocation13], 16  }
  0x5d   : > { %5130 = vsyncadd (%p56_p1), [#allocation13], 4294967280  ;;  %vm602_vm0 = vcmask 261120   ;;  %v597_v0 = vld [vmem:[%s6299_s2 + $0x58] sm:$0xff]  ;;  %v596_v1 = vld [vmem:[%s6299_s2 + $0x50] sm:$0xff]  ;;  %s5157_s26 = smov 120  }
  0x5e   : > { %v595_v2 = vld [vmem:[%s6299_s2 + $0x48] sm:$0xff]  ;;  %v643_v3 = vsel %vm602_vm0, %v597_v0, 0  ;;  %v640_v4 = vsel %vm602_vm0, %v596_v1, 0  ;;  %v594_v6 = vld [vmem:[%s6299_s2 + $0x40] sm:$0xff]  ;;  %v593_v7 = vld [vmem:[%s6299_s2 + $0x38] sm:$0xff]  ;;  %s5158_s15 = smov 112  }
  0x5f   : > { %v637_v5 = vsel %vm602_vm0, %v595_v2, 0  ;;  %v5430_v8 = vand.u32 4294901760, %v643_v3  ;;  %v5432_v9 = vand.u32 4294901760, %v640_v4  ;;  %v634_v11 = vsel %vm602_vm0, %v594_v6, 0  ;;  %v592_v17 = vld [vmem:[%s6299_s2 + $0x30] sm:$0xff]  ;;  %v591_v26 = vld [vmem:[%s6299_s2 + $0x28] sm:$0xff] }
  0x60   : > { %v5434_v10 = vand.u32 4294901760, %v637_v5  ;;  %v5437_v12 = vand.u32 4294901760, %v634_v11  ;;  %v631_v15 = vsel %vm602_vm0, %v593_v7, 0  ;;  %v628_v21 = vsel %vm602_vm0, %v592_v17, 0  ;;  %v590_v34 = vld [vmem:[%s6299_s2 + $0x20] sm:$0xff]  ;;  %v589_v41 = vld [vmem:[%s6299_s2 + $0x18] sm:$0xff] }
  0x61   : > { %650 = vmatpush.xpose.msra.mxu0 %v5430_v8  ;;  %v5441_v13 = vsub.f32 %v643_v3, %v5430_v8  ;;  %v5444_v14 = vsub.f32 %v640_v4, %v5432_v9  ;;  %831 = vmatpush.xpose.msra.mxu3 %v5430_v8  ;;  %v5457_v20 = vand.u32 4294901760, %v631_v15  ;;  %v5476_v28 = vand.u32 4294901760, %v628_v21  ;;  %v588_v48 = vld [vmem:[%s6299_s2 + $0x10] sm:$0xff]  ;;  %v587_v55 = vld [vmem:[%s6299_s2 + $0x8] sm:$0xff]  ;;  %v586_v62 = vld [vmem:[%s6299_s2] sm:$0xff]  ;;  %s5159_s11 = smov 104  }
  0x62   : > { %v5448_v16 = vsub.f32 %v637_v5, %v5434_v10  ;;  %v5469_v25 = vsub.f32 %v634_v11, %v5437_v12  ;;  %v625_v29 = vsel %vm602_vm0, %v591_v26, 0  ;;  %v622_v40 = vsel %vm602_vm0, %v590_v34, 0  ;;  %v584_v17 = vld [vmem:[%s503_s14] sm:$0xff]  ;;  %s5160_s17 = smov 96   ;;  %s5161_s16 = smov 64  }
  0x63   : > { %v696_v18 = vand.u32 4294901760, %v5441_v13  ;;  %v702_v19 = vand.u32 4294901760, %v5444_v14  ;;  %781 = vmatpush.xpose.msra.mxu2 %v5441_v13  ;;  %v5485_v33 = vsub.f32 %v631_v15, %v5457_v20  ;;  %v5492_v35 = vand.u32 4294901760, %v625_v29  ;;  %s5162_s21 = smov 8   ;;  %s5163_s27 = smov 16  }
  0x64   : > { %v708_v24 = vand.u32 4294901760, %v5448_v16  ;;  %v714_v32 = vand.u32 4294901760, %v5469_v25  ;;  %v5495_v36 = vsub.f32 %v628_v21, %v5476_v28  ;;  %v5508_v42 = vand.u32 4294901760, %v622_v40  ;;  %s5164_s22 = smov 24   ;;  %s5166_s5 = smov 32  }
  0x65   : > { %652 = vmatpush.xpose.msra.mxu0 %v5432_v9  ;;  %v697_v22 = vsub.f32 %v5441_v13, %v696_v18  ;;  %v703_v23 = vsub.f32 %v5444_v14, %v702_v19  ;;  %833 = vmatpush.xpose.msra.mxu3 %v5432_v9  ;;  %v720_v39 = vand.u32 4294901760, %v5485_v33  ;;  %v619_v46 = vsel %vm602_vm0, %v589_v41, 0  ;;  %v585_v41 = vld [vmem:[%s513_s18] sm:$0xff]  ;;  %s6345_s9 = sld [smem:[#allocation33_spill]] }
  0x66   : > { %v709_v31 = vsub.f32 %v5448_v16, %v708_v24  ;;  %v715_v38 = vsub.f32 %v5469_v25, %v714_v32  ;;  %v726_v43 = vand.u32 4294901760, %v5495_v36  ;;  %v5517_v47 = vsub.f32 %v625_v29, %v5492_v35 }
  0x67   : > { %v698_v27 = vand.u32 4294901760, %v697_v22  ;;  %784 = vmatpush.xpose.msra.mxu2 %v5444_v14  ;;  %v704_v30 = vand.u32 4294901760, %v703_v23  ;;  %v721_v45 = vsub.f32 %v5485_v33, %v720_v39  ;;  %v5527_v50 = vand.u32 4294901760, %v619_v46 }
  0x68   : > { %v710_v37 = vand.u32 4294901760, %v709_v31  ;;  %v716_v44 = vand.u32 4294901760, %v715_v38  ;;  %v727_v49 = vsub.f32 %v5495_v36, %v726_v43  ;;  %v732_v52 = vand.u32 4294901760, %v5517_v47 }
  0x69   : > { %654 = vmatpush.xpose.msra.mxu0 %v5434_v10  ;;  %699 = vmatpush.xpose.msra.mxu1 %v698_v27  ;;  %v722_v51 = vand.u32 4294901760, %v721_v45  ;;  %v616_v53 = vsel %vm602_vm0, %v588_v48, 0  ;;  %v5533_v54 = vsub.f32 %v622_v40, %v5508_v42  ;;  %v613_v57 = vsel %vm602_vm0, %v587_v55, 0 }
  0x6a   : > { %835 = vmatpush.xpose.msra.mxu3 %v5434_v10  ;;  %v5540_v56 = vand.u32 4294901760, %v616_v53  ;;  %v728_v58 = vand.u32 4294901760, %v727_v49  ;;  %v733_v59 = vsub.f32 %v5517_v47, %v732_v52  ;;  %v5549_v61 = vsub.f32 %v619_v46, %v5527_v50 }
  0x6b   : > { %787 = vmatpush.xpose.msra.mxu2 %v5448_v16  ;;  %v738_v60 = vand.u32 4294901760, %v5533_v54  ;;  %v5556_v63 = vand.u32 4294901760, %v613_v57  ;;  %v610_v4 = vsel %vm602_vm0, %v586_v62, 0  ;;  %v604_v21 = vsel %vm602_vm0, %v584_v17, 0 }
  0x6c   : > { %v734_v0 = vand.u32 4294901760, %v733_v59  ;;  %v744_v2 = vand.u32 4294901760, %v5549_v61  ;;  %v5564_v3 = vsub.f32 %v616_v53, %v5540_v56  ;;  %v5576_v11 = vand.u32 4294901760, %v610_v4 }
  0x6d   : > { %656 = vmatpush.xpose.msra.mxu0 %v5437_v12  ;;  %705 = vmatpush.xpose.msra.mxu1 %v704_v30  ;;  %v739_v1 = vsub.f32 %v5533_v54, %v738_v60  ;;  %v5570_v5 = vsub.f32 %v613_v57, %v5556_v63  ;;  %v5584_v22 = vand.u32 4294901760, %v604_v21  ;;  %vm997_vm1 = vcmask 64512  }
  0x6e   : > { %837 = vmatpush.xpose.msra.mxu3 %v5437_v12  ;;  %v745_v7 = vsub.f32 %v5549_v61, %v744_v2  ;;  %v750_v15 = vand.u32 4294901760, %v5564_v3  ;;  %v761_v29 = vsub.f32 %v610_v4, %v5576_v11 }
  0x6f   : > { %790 = vmatpush.xpose.msra.mxu2 %v5469_v25  ;;  %v740_v6 = vand.u32 4294901760, %v739_v1  ;;  %v756_v23 = vand.u32 4294901760, %v5570_v5  ;;  %v674_v30 = vsub.f32 %v604_v21, %v5584_v22 }
  0x70   : > { %v746_v26 = vand.u32 4294901760, %v745_v7  ;;  %v751_v27 = vsub.f32 %v5564_v3, %v750_v15  ;;  %v762_v38 = vand.u32 4294901760, %v761_v29 }
  0x71   : > { %658 = vmatpush.xpose.msra.mxu0 %v5457_v20  ;;  %711 = vmatpush.xpose.msra.mxu1 %v710_v37  ;;  %v675_v31 = vand.u32 4294901760, %v674_v30  ;;  %v757_v37 = vsub.f32 %v5570_v5, %v756_v23 }
  0x72   : > { %839 = vmatpush.xpose.msra.mxu3 %v5457_v20  ;;  %v752_v34 = vand.u32 4294901760, %v751_v27  ;;  %v763_v49 = vsub.f32 %v761_v29, %v762_v38 }
  0x73   : > { %793 = vmatpush.xpose.msra.mxu2 %v5485_v33  ;;  %v676_v40 = vsub.f32 %v674_v30, %v675_v31  ;;  %v758_v48 = vand.u32 4294901760, %v757_v37 }
  0x74   : > { %v764_v55 = vand.u32 4294901760, %v763_v49 }
  0x75   : > { %660 = vmatpush.xpose.msra.mxu0 %v5476_v28  ;;  %717 = vmatpush.xpose.msra.mxu1 %v716_v44  ;;  %v607_v44 = vsel %vm602_vm0, %v585_v41, 0  ;;  %v677_v46 = vand.u32 4294901760, %v676_v40 }
  0x76   : > { %841 = vmatpush.xpose.msra.mxu3 %v5476_v28  ;;  %v681_v45 = vand.u32 4294901760, %v607_v44 }
  0x77   : > { %796 = vmatpush.xpose.msra.mxu2 %v5495_v36 }
  0x79   : > { %662 = vmatpush.xpose.msra.mxu0 %v5492_v35  ;;  %723 = vmatpush.xpose.msra.mxu1 %v722_v51  ;;  %v682_v51 = vsub.f32 %v607_v44, %v681_v45 }
  0x7a   : > { %843 = vmatpush.xpose.msra.mxu3 %v5492_v35 }
  0x7b   : > { %799 = vmatpush.xpose.msra.mxu2 %v5517_v47  ;;  %v683_v53 = vand.u32 4294901760, %v682_v51 }
  0x7d   : > { %664 = vmatpush.xpose.msra.mxu0 %v5508_v42  ;;  %729 = vmatpush.xpose.msra.mxu1 %v728_v58  ;;  %v684_v57 = vsub.f32 %v682_v51, %v683_v53 }
  0x7e   : > { %845 = vmatpush.xpose.msra.mxu3 %v5508_v42 }
  0x7f   : > { %802 = vmatpush.xpose.msra.mxu2 %v5533_v54  ;;  %v685_v58 = vand.u32 4294901760, %v684_v57 }
  0x81   : > { %666 = vmatpush.xpose.msra.mxu0 %v5527_v50  ;;  %735 = vmatpush.xpose.msra.mxu1 %v734_v0 }
  0x82   : > { %847 = vmatpush.xpose.msra.mxu3 %v5527_v50 }
  0x83   : > { %805 = vmatpush.xpose.msra.mxu2 %v5549_v61 }
  0x85   : > { %668 = vmatpush.xpose.msra.mxu0 %v5540_v56  ;;  %741 = vmatpush.xpose.msra.mxu1 %v740_v6 }
  0x86   : > { %849 = vmatpush.xpose.msra.mxu3 %v5540_v56 }
  0x87   : > { %808 = vmatpush.xpose.msra.mxu2 %v5564_v3 }
  0x89   : > { %670 = vmatpush.xpose.msra.mxu0 %v5556_v63  ;;  %747 = vmatpush.xpose.msra.mxu1 %v746_v26 }
  0x8a   : > { %851 = vmatpush.xpose.msra.mxu3 %v5556_v63 }
  0x8b   : > { %811 = vmatpush.xpose.msra.mxu2 %v5570_v5 }
  0x8d   : > { %672 = vmatpush.xpose.msra.mxu0 %v5576_v11  ;;  %753 = vmatpush.xpose.msra.mxu1 %v752_v34 }
  0x8e   : > { %853 = vmatpush.xpose.msra.mxu3 %v5576_v11 }
  0x8f   : > { %814 = vmatpush.xpose.msra.mxu2 %v761_v29 }
  0x90   : > { %678 = vmatmul.f32.vlgmr.msra.gmra.mxu0 %v677_v46 }
  0x91   : > { %874 = vmatpush.xpose.msrb.mxu0 %v696_v18  ;;  %759 = vmatpush.xpose.msra.mxu1 %v758_v48 }
  0x92   : > { %857 = vmatmul.f32.vlgmr.msra.gmra.mxu3 %v675_v31  ;;  %817 = vmatmul.f32.vlgmr.msra.gmra.mxu2 %v674_v30 }
  0x95   : > { %878 = vmatpush.xpose.msrb.mxu0 %v702_v19  ;;  %765 = vmatpush.xpose.msra.mxu1 %v764_v55 }
  0x98   : > { %686 = vmatmul.f32.gmra.mxu0 %v685_v58  ;;  %767 = vmatmul.f32.vlgmr.msra.gmra.mxu1 %v5584_v22 }
  0x99   : > { %882 = vmatpush.xpose.msrb.mxu0 %v708_v24  ;;  %933 = vmatpush.xpose.msrb.mxu1 %v5430_v8 }
  0x9a   : > { %863 = vmatmul.f32.gmra.mxu3 %v683_v53  ;;  %822 = vmatmul.f32.gmra.mxu2 %v682_v51 }
  0x9d   : > { %886 = vmatpush.xpose.msrb.mxu0 %v714_v32  ;;  %935 = vmatpush.xpose.msrb.mxu1 %v5432_v9 }
  0xa0   : > { %771 = vmatmul.f32.gmra.mxu1 %v681_v45 }
  0xa1   : > { %890 = vmatpush.xpose.msrb.mxu0 %v720_v39  ;;  %937 = vmatpush.xpose.msrb.mxu1 %v5434_v10  ;;  %v4837_v10 = vld [vmem:[%s6300_s3] ss:$0 sm:$0xff] }
  0xa5   : > { %894 = vmatpush.xpose.msrb.mxu0 %v726_v43  ;;  %939 = vmatpush.xpose.msrb.mxu1 %v5437_v12 }
  0xa9   : > { %898 = vmatpush.xpose.msrb.mxu0 %v732_v52  ;;  %941 = vmatpush.xpose.msrb.mxu1 %v5457_v20 }
  0xad   : > { %902 = vmatpush.xpose.msrb.mxu0 %v738_v60  ;;  %943 = vmatpush.xpose.msrb.mxu1 %v5476_v28 }
  0xb1   : > { %906 = vmatpush.xpose.msrb.mxu0 %v744_v2  ;;  %945 = vmatpush.xpose.msrb.mxu1 %v5492_v35 }
  0xb5   : > { %910 = vmatpush.xpose.msrb.mxu0 %v750_v15  ;;  %947 = vmatpush.xpose.msrb.mxu1 %v5508_v42 }
  0xb9   : > { %914 = vmatpush.xpose.msrb.mxu0 %v756_v23  ;;  %949 = vmatpush.xpose.msrb.mxu1 %v5527_v50 }
  0xbd   : > { %918 = vmatpush.xpose.msrb.mxu0 %v762_v38  ;;  %951 = vmatpush.xpose.msrb.mxu1 %v5540_v56 }
  0xc0   : > { %920 = vmatmul.f32.vlgmr.msrb.gmra.mxu0 %v5584_v22 }
  0xc1   : > { %953 = vmatpush.xpose.msrb.mxu1 %v5556_v63 }
  0xc5   : > { %955 = vmatpush.xpose.msrb.mxu1 %v5576_v11 }
  0xc8   : > { %924 = vmatmul.f32.gmra.mxu0 %v681_v45  ;;  %957 = vmatmul.f32.vlgmr.msrb.gmra.mxu1 %v5584_v22 }
  0xd0   : > { %961 = vmatmul.f32.gmra.mxu1 %v681_v45 }
 0x10d   : > { %v679_v8 = vpop.f32.mrf.mxu0 }
 0x10e   : > { %v680_v13 = vadd.f32 %v4837_v10, %v679_v8 }
 0x115   : > { %v768_v9 = vpop.f32.mrf.mxu1  ;;  %v687_v12 = vpop.f32.mrf.mxu0 }
 0x116   : > { %v818_v14 = vpop.f32.mrf.mxu2  ;;  %v769_v16 = vadd.f32 %v768_v9, %v680_v13  ;;  %v858_v19 = vpop.f32.mrf.mxu3  ;;  %v688_v20 = vadd.f32 %v4837_v10, %v687_v12 }
 0x118   : > { %v819_v24 = vadd.f32 %v818_v14, %v769_v16 }
 0x11a   : > { %v859_v28 = vadd.f32 %v858_v19, %v819_v24 }
 0x11d   : > { %v772_v18 = vpop.f32.mrf.mxu1 }
 0x11e   : > { %v773_v32 = vadd.f32 %v772_v18, %v688_v20  ;;  %v823_v33 = vpop.f32.mrf.mxu2  ;;  %v864_v43 = vpop.f32.mrf.mxu3 }
 0x120   : > { %v824_v39 = vadd.f32 %v823_v33, %v773_v32 }
 0x122   : > { %v865_v52 = vadd.f32 %v864_v43, %v824_v39 }
 0x13d   : > { %v921_v25 = vpop.f32.mrf.mxu0 }
 0x13e   : > { %v922_v35 = vadd.f32 %v921_v25, %v859_v28 }
 0x145   : > { %v958_v36 = vpop.f32.mrf.mxu1  ;;  %v925_v50 = vpop.f32.mrf.mxu0 }
 0x146   : > { %v5642_v42 = vadd.f32 %v958_v36, %v922_v35  ;;  %v926_v54 = vadd.f32 %v925_v50, %v865_v52 }
 0x148   : > { %v965_v47 = vmul.f32 0.35355338, %v5642_v42 }
 0x14a   : > { %968 = vrot.lane.b32.xlu2 %v965_v47, %s5157_s26  ;;  %v998_v0 = vsel %vm997_vm1, %v965_v47, 0 }
 0x14b   : > { %v1019_v1 = vand.u32 4294901760, %v998_v0 }
 0x14d   : > { %v962_v56 = vpop.f32.mrf.mxu1  ;;  %v1020_v4 = vsub.f32 %v998_v0, %v1019_v1 }
 0x14e   : > { %v5646_v59 = vadd.f32 %v962_v56, %v926_v54 }
 0x14f   : > { %v1021_v5 = vand.u32 4294901760, %v1020_v4 }
 0x150   : > { %984 = vrot.lane.b32.xlu1 %v5646_v59, %s5158_s15  ;;  %982 = vrot.lane.b32.xlu0 %v5646_v59, %s5157_s26  ;;  %v5665_v63 = vmul.f32 0.35355338, %v5646_v59 }
 0x151   : > { %v1022_v11 = vsub.f32 %v1020_v4, %v1021_v5 }
 0x152   : > { %986 = vrot.lane.b32.xlu2 %v5646_v59, %s5159_s11  ;;  %v1606_v18 = vsel %vm997_vm1, %v5665_v63, 0 }
 0x153   : > { %v1023_v21 = vand.u32 4294901760, %v1022_v11  ;;  %v5719_v19 = vand.u32 4294901760, %v1606_v18 }
 0x155   : > { %v5733_v35 = vsub.f32 %v1606_v18, %v5719_v19 }
 0x157   : > { %v1629_v52 = vand.u32 4294901760, %v5733_v35 }
 0x158   : > { %995 = vrot.lane.b32.xlu0 %v5646_v59, %s5160_s17 }
 0x15a   : > { %989 = vrot.lane.b32.xlu2 %v5642_v42, %s5157_s26 }
 0x162   : > { %991 = vrot.lane.b32.xlu2 %v5642_v42, %s5158_s15 }
 0x1a4   : > { %v969_v60 = vpop.permute.xlu2 %968 }
 0x1a5   : > { %v1150_v29 = vsel %vm997_vm1, %v969_v60, 0 }
 0x1a6   : > { %v5694_v30 = vand.u32 4294901760, %v1150_v29 }
 0x1a8   : > { %v1172_v31 = vsub.f32 %v1150_v29, %v5694_v30 }
 0x1aa   : > { %v1173_v34 = vand.u32 4294901760, %v1172_v31 }
 0x1ac   : > { %v5658_v61 = vpop.permute.xlu2 %986  ;;  %v1174_v40 = vsub.f32 %v1172_v31, %v1173_v34 }
 0x1ae   : > { %v1175_v51 = vand.u32 4294901760, %v1174_v40 }
 0x1b4   : > { %v5660_v62 = vpop.permute.xlu2 %989 }
 0x1b5   : > { %1756 = vrot.lane.b32.xlu2 %v5660_v62, %s5160_s17 }
 0x1bc   : > { %v5687_v27 = vpop.permute.xlu2 %991 }
 0x1bd   : > { %977 = vrot.lane.b32.xlu2 %v5665_v63, %s5158_s15 }
 0x1c2   : > { %v5669_v2 = vpop.permute.xlu1 %984  ;;  %v5671_v3 = vpop.permute.xlu0 %982 }
 0x1c3   : > { %1300 = vrot.lane.b32.xlu0 %v5669_v2, %s5160_s17  ;;  %1148 = vrot.lane.b32.xlu1 %v5671_v3, %s5160_s17 }
 0x1ca   : > { %v996_v6 = vpop.permute.xlu0 %995 }
 0x1cb   : > { %v1000_v7 = vsel %vm997_vm1, %v996_v6, 0  ;;  %970 = vrot.lane.b32.xlu1 %v965_v47, %s5158_s15  ;;  %1452 = vrot.lane.b32.xlu0 %v5658_v61, %s5160_s17  ;;  %s6347_s15 = sld [smem:[#allocation32_spill]] }
 0x1cc   : > { %v1017_v15 = vand.u32 4294901760, %v1000_v7 }
 0x1ce   : > { %v1044_v17 = vsub.f32 %v1000_v7, %v1017_v15  ;;  %1018 = vmatpush.xpose.msrb.mxu2 %v1017_v15 }
 0x1d0   : > { %v1045_v22 = vand.u32 4294901760, %v1044_v17 }
 0x1d1   : > { %1024 = vmatmul.f32.vlgmr.msrb.gmra.mxu2 %v1023_v21 }
 0x1d2   : > { %1071 = vmatpush.xpose.msra.mxu2 %v1044_v17  ;;  %v1046_v23 = vsub.f32 %v1044_v17, %v1045_v22 }
 0x1d3   : > { %972 = vrot.lane.b32.xlu1 %v965_v47, %s5159_s11  ;;  %993 = vrot.lane.b32.xlu0 %v5642_v42, %s5159_s11 }
 0x1d4   : > { %v1047_v26 = vand.u32 4294901760, %v1046_v23 }
 0x1d6   : > { %1120 = vmatpush.xpose.msrb.mxu2 %v1045_v22  ;;  %1048 = vmatpush.xpose.msrb.mxu3 %v1047_v26 }
 0x1d9   : > { %1050 = vmatmul.f32.vlgmr.msrb.gmra.mxu3 %v1019_v1  ;;  %1074 = vmatmul.f32.vlgmr.msra.gmra.mxu2 %v1020_v4 }
 0x1da   : > { %1094 = vmatpush.xpose.msra.mxu3 %v1017_v15 }
 0x1db   : > { %1604 = vrot.lane.b32.xlu1 %v5642_v42, %s5160_s17  ;;  %975 = vrot.lane.b32.xlu0 %v5665_v63, %s5157_s26 }
 0x1de   : > { %1142 = vmatpush.xpose.msrb.mxu3 %v1017_v15 }
 0x1e1   : > { %1098 = vmatmul.f32.vlgmr.msra.gmra.mxu3 %v1021_v5  ;;  %1122 = vmatmul.f32.vlgmr.msrb.gmra.mxu2 %v1019_v1 }
 0x1e3   : > { %1908 = vrot.lane.b32.xlu1 %v5687_v27, %s5160_s17 }
 0x1e9   : > { %1144 = vmatmul.f32.vlgmr.msrb.gmra.mxu3 %v1019_v1  ;;  %v1630_v1 = vsub.f32 %v5733_v35, %v1629_v52 }
 0x1eb   : > { %979 = vrot.lane.b32.xlu1 %v5665_v63, %s5159_s11  ;;  %v1631_v15 = vand.u32 4294901760, %v1630_v1 }
 0x20f   : > { %v1757_v50 = vpop.permute.xlu2 %1756 }
 0x210   : > { %v1760_v63 = vsel %vm997_vm1, %v1757_v50, 0 }
 0x211   : > { %v5751_v5 = vand.u32 4294901760, %v1760_v63 }
 0x213   : > { %v5758_v22 = vsub.f32 %v1760_v63, %v5751_v5 }
 0x217   : > { %v978_v23 = vpop.permute.xlu2 %977 }
 0x235   : > { %v1149_v37 = vpop.permute.xlu1 %1148  ;;  %v1301_v38 = vpop.permute.xlu0 %1300 }
 0x236   : > { %v1152_v41 = vsel %vm997_vm1, %v1149_v37, 0  ;;  %v1304_v44 = vsel %vm997_vm1, %v1301_v38, 0  ;;  %v1910_v37 = vsel %vm997_vm1, %v978_v23, 0 }
 0x237   : > { %v1169_v45 = vand.u32 4294901760, %v1152_v41  ;;  %v5699_v46 = vand.u32 4294901760, %v1304_v44 }
 0x239   : > { %v1196_v48 = vsub.f32 %v1152_v41, %v1169_v45  ;;  %v1348_v49 = vsub.f32 %v1304_v44, %v5699_v46  ;;  %1170 = vmatpush.xpose.msra.mxu2 %v1169_v45  ;;  %1446 = vmatpush.xpose.msra.mxu1 %v5699_v46  ;;  %v5770_v44 = vand.u32 4294901760, %v1910_v37 }
 0x23b   : > { %v1197_v53 = vand.u32 4294901760, %v1196_v48  ;;  %v1349_v55 = vand.u32 4294901760, %v1348_v49 }
 0x23c   : > { %1176 = vmatmul.f32.vlgmr.msra.gmra.mxu2 %v1175_v51  ;;  %v1932_v51 = vsub.f32 %v1910_v37, %v5770_v44 }
 0x23d   : > { %1223 = vmatpush.xpose.msrb.mxu2 %v1196_v48  ;;  %v1198_v57 = vsub.f32 %v1196_v48, %v1197_v53  ;;  %1424 = vmatpush.xpose.msra.mxu0 %v1349_v55  ;;  %v971_v58 = vpop.permute.xlu1 %970  ;;  %v1453_v8 = vpop.permute.xlu0 %1452  ;;  %v1350_v32 = vsub.f32 %v1348_v49, %v1349_v55 }
 0x23e   : > { %v1302_v9 = vsel %vm997_vm1, %v971_v58, 0  ;;  %v1456_v10 = vsel %vm997_vm1, %v1453_v8, 0 }
 0x23f   : > { %v1199_v12 = vand.u32 4294901760, %v1198_v57  ;;  %v5705_v13 = vand.u32 4294901760, %v1302_v9  ;;  %v5707_v14 = vand.u32 4294901760, %v1456_v10  ;;  %v1351_v43 = vand.u32 4294901760, %v1350_v32 }
 0x240   : > { %v1805_v32 = vand.u32 4294901760, %v5758_v22 }
 0x241   : > { %1272 = vmatpush.xpose.msra.mxu2 %v1197_v53  ;;  %v5710_v16 = vsub.f32 %v1456_v10, %v5707_v14  ;;  %1200 = vmatpush.xpose.msra.mxu3 %v1199_v12  ;;  %v5725_v25 = vsub.f32 %v1302_v9, %v5705_v13  ;;  %v1933_v9 = vand.u32 4294901760, %v1932_v51 }
 0x242   : > { %1426 = vmatmul.f32.vlgmr.msra.gmra.mxu0 %v5705_v13  ;;  %1448 = vmatmul.f32.vlgmr.msra.gmra.mxu1 %v5705_v13 }
 0x243   : > { %1550 = vmatpush.xpose.msrb.mxu1 %v5707_v14  ;;  %1527 = vmatpush.xpose.msrb.mxu0 %v5710_v16  ;;  %v1325_v39 = vand.u32 4294901760, %v5725_v25  ;;  %v1501_v7 = vand.u32 4294901760, %v5710_v16 }
 0x244   : > { %1202 = vmatmul.f32.vlgmr.msra.gmra.mxu3 %v5694_v30  ;;  %1226 = vmatmul.f32.vlgmr.msrb.gmra.mxu2 %v1172_v31 }
 0x245   : > { %1246 = vmatpush.xpose.msrb.mxu3 %v1169_v45  ;;  %1322 = vmatpush.xpose.msrb.mxu2 %v5699_v46  ;;  %v973_v20 = vpop.permute.xlu1 %972  ;;  %v5722_v24 = vpop.permute.xlu0 %993  ;;  %v1326_v56 = vsub.f32 %v5725_v25, %v1325_v39  ;;  %v1502_v31 = vsub.f32 %v5710_v16, %v1501_v7 }
 0x246   : > { %v1454_v28 = vsel %vm997_vm1, %v973_v20, 0  ;;  %2060 = vrot.lane.b32.xlu0 %v5722_v24, %s5160_s17  ;;  %v1934_v20 = vsub.f32 %v1932_v51, %v1933_v9 }
 0x247   : > { %v5730_v33 = vand.u32 4294901760, %v1454_v28  ;;  %v1327_v6 = vand.u32 4294901760, %v1326_v56  ;;  %v1503_v41 = vand.u32 4294901760, %v1502_v31 }
 0x249   : > { %1294 = vmatpush.xpose.msra.mxu3 %v1169_v45  ;;  %v1476_v36 = vsub.f32 %v1454_v28, %v5730_v33 }
 0x24b   : > { %v1477_v47 = vand.u32 4294901760, %v1476_v36  ;;  %1530 = vmatmul.f32.vlgmr.msrb.gmra.mxu0 %v1476_v36 }
 0x24c   : > { %1250 = vmatmul.f32.vlgmr.msrb.gmra.mxu3 %v1173_v34  ;;  %1274 = vmatmul.f32.vlgmr.msra.gmra.mxu2 %v5694_v30 }
 0x24d   : > { %1352 = vmatpush.xpose.msrb.mxu3 %v1351_v43  ;;  %1375 = vmatpush.xpose.msra.mxu2 %v1348_v49  ;;  %v1605_v54 = vpop.permute.xlu1 %1604  ;;  %v976_v40 = vpop.permute.xlu0 %975  ;;  %v1478_v49 = vsub.f32 %v1476_v36, %v1477_v47  ;;  %v1935_v43 = vand.u32 4294901760, %v1934_v20 }
 0x24e   : > { %v1608_v60 = vsel %vm997_vm1, %v1605_v54, 0  ;;  %1554 = vmatmul.f32.vlgmr.msrb.gmra.mxu1 %v1477_v47 }
 0x24f   : > { %v5744_v0 = vand.u32 4294901760, %v1608_v60  ;;  %v1479_v8 = vand.u32 4294901760, %v1478_v49 }
 0x251   : > { %v1652_v4 = vsub.f32 %v1608_v60, %v5744_v0  ;;  %1626 = vmatpush.xpose.msra.mxu0 %v5744_v0 }
 0x253   : > { %v1653_v11 = vand.u32 4294901760, %v1652_v4 }
 0x254   : > { %1296 = vmatmul.f32.vlgmr.msra.gmra.mxu3 %v5694_v30  ;;  %1328 = vmatmul.f32.vlgmr.msrb.gmra.mxu2 %v1327_v6  ;;  %v1025_v26 = vpop.f32.mrf.mxu2 }
 0x255   : > { %v1654_v17 = vsub.f32 %v1652_v4, %v1653_v11  ;;  %1398 = vmatpush.xpose.msra.mxu3 %v5699_v46  ;;  %1474 = vmatpush.xpose.msrb.mxu2 %v5707_v14  ;;  %v1909_v21 = vpop.permute.xlu1 %1908  ;;  %v1758_v46 = vsel %vm997_vm1, %v976_v40, 0 }
 0x256   : > { %1632 = vmatmul.f32.vlgmr.msra.gmra.mxu0 %v1631_v15  ;;  %v1912_v29 = vsel %vm997_vm1, %v1909_v21, 0  ;;  %v1779_v53 = vand.u32 4294901760, %v1758_v46 }
 0x257   : > { %v1655_v34 = vand.u32 4294901760, %v1654_v17  ;;  %1728 = vmatpush.xpose.msrb.mxu0 %v1653_v11  ;;  %v5762_v30 = vand.u32 4294901760, %v1912_v29 }
 0x258   : > { %v1780_v10 = vsub.f32 %v1758_v46, %v1779_v53 }
 0x259   : > { %v5767_v38 = vsub.f32 %v1912_v29, %v5762_v30  ;;  %1656 = vmatpush.xpose.msra.mxu1 %v1655_v34 }
 0x25b   : > { %1831 = vmatpush.xpose.msra.mxu0 %v5758_v22  ;;  %v1957_v48 = vand.u32 4294901760, %v5767_v38 }
 0x25c   : > { %v1051_v45 = vpop.f32.mrf.mxu3  ;;  %1354 = vmatmul.f32.vlgmr.msrb.gmra.mxu3 %v5705_v13  ;;  %1378 = vmatmul.f32.vlgmr.msra.gmra.mxu2 %v5725_v25  ;;  %v1075_v55 = vpop.f32.mrf.mxu2  ;;  %v1781_v25 = vand.u32 4294901760, %v1780_v10 }
 0x25d   : > { %1750 = vmatpush.xpose.msrb.mxu1 %v5744_v0  ;;  %1504 = vmatpush.xpose.msrb.mxu3 %v1503_v41  ;;  %v1958_v57 = vsub.f32 %v5767_v38, %v1957_v48  ;;  %v1052_v58 = vadd.f32 %v1051_v45, %v1025_v26 }
 0x25e   : > { %1576 = vmatpush.xpose.msra.mxu2 %v1501_v7  ;;  %1658 = vmatmul.f32.vlgmr.msra.gmra.mxu1 %v5719_v19  ;;  %v1782_v54 = vsub.f32 %v1780_v10, %v1781_v25 }
 0x25f   : > { %1730 = vmatmul.f32.vlgmr.msrb.gmra.mxu0 %v5719_v19  ;;  %v1959_v13 = vand.u32 4294901760, %v1958_v57  ;;  %v1076_v16 = vadd.f32 %v1075_v55, %v1052_v58 }
 0x260   : > { %1930 = vmatpush.xpose.msrb.mxu0 %v5762_v30  ;;  %v1783_v56 = vand.u32 4294901760, %v1782_v54 }
 0x261   : > { %1854 = vmatpush.xpose.msra.mxu1 %v5751_v5 }
 0x264   : > { %v1099_v12 = vpop.f32.mrf.mxu3  ;;  %1402 = vmatmul.f32.vlgmr.msra.gmra.mxu3 %v1325_v39  ;;  %1480 = vmatmul.f32.vlgmr.msrb.gmra.mxu2 %v1479_v8  ;;  %v1123_v28 = vpop.f32.mrf.mxu2 }
 0x265   : > { %1598 = vmatpush.xpose.msra.mxu3 %v5707_v14  ;;  %1679 = vmatpush.xpose.msrb.mxu2 %v1652_v4  ;;  %v1100_v18 = vadd.f32 %v1099_v12, %v1076_v16 }
 0x266   : > { %1752 = vmatmul.f32.vlgmr.msrb.gmra.mxu1 %v5719_v19  ;;  %v1806_v19 = vsub.f32 %v5758_v22, %v1805_v32 }
 0x267   : > { %1834 = vmatmul.f32.vlgmr.msra.gmra.mxu0 %v1780_v10  ;;  %1960 = vmatpush.xpose.msrb.mxu1 %v1959_v13  ;;  %v1124_v36 = vadd.f32 %v1123_v28, %v1100_v18 }
 0x268   : > { %2032 = vmatpush.xpose.msra.mxu0 %v1957_v48  ;;  %v1807_v50 = vand.u32 4294901760, %v1806_v19 }
 0x26c   : > { %v1145_v39 = vpop.f32.mrf.mxu3  ;;  %1506 = vmatmul.f32.vlgmr.msrb.gmra.mxu3 %v5730_v33  ;;  %1578 = vmatmul.f32.vlgmr.msra.gmra.mxu2 %v5730_v33 }
 0x26d   : > { %v5789_v14 = vadd.f32 %v1145_v39, %v1124_v36  ;;  %1702 = vmatpush.xpose.msrb.mxu3 %v5744_v0  ;;  %1778 = vmatpush.xpose.msra.mxu2 %v5751_v5 }
 0x26e   : > { %1858 = vmatmul.f32.vlgmr.msra.gmra.mxu1 %v1781_v25 }
 0x26f   : > { %1936 = vmatmul.f32.vlgmr.msrb.gmra.mxu0 %v1935_v43  ;;  %2054 = vmatpush.xpose.msra.mxu1 %v5762_v30  ;;  %v2212_v47 = vsel %vm997_vm1, %v5789_v14, -inf }
 0x270   : > { %2213 = vmax.xlane.f32.xlu2 %v2212_v47 }
 0x274   : > { %1600 = vmatmul.f32.vlgmr.msra.gmra.mxu3 %v5730_v33  ;;  %1682 = vmatmul.f32.vlgmr.msrb.gmra.mxu2 %v5733_v35  ;;  %v980_v33 = vpop.permute.xlu1 %979 }
 0x275   : > { %1808 = vmatpush.xpose.msra.mxu3 %v1807_v50  ;;  %1880 = vmatpush.xpose.msrb.mxu2 %v1805_v32  ;;  %v2062_v60 = vsel %vm997_vm1, %v980_v33, 0 }
 0x276   : > { %1962 = vmatmul.f32.vlgmr.msrb.gmra.mxu1 %v5770_v44  ;;  %v2083_v63 = vand.u32 4294901760, %v2062_v60 }
 0x277   : > { %2034 = vmatmul.f32.vlgmr.msra.gmra.mxu0 %v5770_v44 }
 0x278   : > { %v2084_v35 = vsub.f32 %v2062_v60, %v2083_v63 }
 0x27c   : > { %1706 = vmatmul.f32.vlgmr.msrb.gmra.mxu3 %v1629_v52  ;;  %1784 = vmatmul.f32.vlgmr.msra.gmra.mxu2 %v1783_v56  ;;  %v2085_v52 = vand.u32 4294901760, %v2084_v35 }
 0x27d   : > { %1902 = vmatpush.xpose.msrb.mxu3 %v5751_v5  ;;  %1983 = vmatpush.xpose.msra.mxu2 %v5767_v38 }
 0x27e   : > { %2056 = vmatmul.f32.vlgmr.msra.gmra.mxu1 %v5770_v44  ;;  %v2086_v1 = vsub.f32 %v2084_v35, %v2085_v52 }
 0x280   : > { %v2087_v7 = vand.u32 4294901760, %v2086_v1 }
 0x284   : > { %1810 = vmatmul.f32.vlgmr.msra.gmra.mxu3 %v1779_v53  ;;  %1882 = vmatmul.f32.vlgmr.msrb.gmra.mxu2 %v1779_v53 }
 0x285   : > { %2006 = vmatpush.xpose.msra.mxu3 %v5762_v30 }
 0x28c   : > { %1904 = vmatmul.f32.vlgmr.msrb.gmra.mxu3 %v1779_v53  ;;  %1986 = vmatmul.f32.vlgmr.msra.gmra.mxu2 %v1932_v51 }
 0x294   : > { %2010 = vmatmul.f32.vlgmr.msra.gmra.mxu3 %v1933_v9 }
 0x2b8   : > { %v2061_v0 = vpop.permute.xlu0 %2060 }
 0x2b9   : > { %v2064_v4 = vsel %vm997_vm1, %v2061_v0, 0 }
 0x2ba   : > { %v2081_v5 = vand.u32 4294901760, %v2064_v4 }
 0x2bc   : > { %v2108_v6 = vsub.f32 %v2064_v4, %v2081_v5  ;;  %2082 = vmatpush.xpose.msrb.mxu2 %v2081_v5  ;;  %2158 = vmatpush.xpose.msrb.mxu1 %v2081_v5 }
 0x2be   : > { %v2109_v11 = vand.u32 4294901760, %v2108_v6  ;;  %2135 = vmatpush.xpose.msrb.mxu0 %v2108_v6 }
 0x2bf   : > { %v1177_v15 = vpop.f32.mrf.mxu2  ;;  %2088 = vmatmul.f32.vlgmr.msrb.gmra.mxu2 %v2087_v7  ;;  %2162 = vmatmul.f32.vlgmr.msrb.gmra.mxu1 %v2085_v52  ;;  %v1427_v45 = vpop.f32.mrf.mxu0 }
 0x2c0   : > { %v2110_v17 = vsub.f32 %v2108_v6, %v2109_v11  ;;  %2184 = vmatpush.xpose.msra.mxu2 %v2109_v11  ;;  %v1449_v51 = vpop.f32.mrf.mxu1 }
 0x2c1   : > { %2138 = vmatmul.f32.vlgmr.msrb.gmra.mxu0 %v2084_v35 }
 0x2c2   : > { %v2111_v21 = vand.u32 4294901760, %v2110_v17 }
 0x2c4   : > { %2112 = vmatpush.xpose.msrb.mxu3 %v2111_v21 }
 0x2c7   : > { %v1203_v22 = vpop.f32.mrf.mxu3  ;;  %v1227_v23 = vpop.f32.mrf.mxu2  ;;  %2114 = vmatmul.f32.vlgmr.msrb.gmra.mxu3 %v2083_v63  ;;  %2186 = vmatmul.f32.vlgmr.msra.gmra.mxu2 %v2083_v63 }
 0x2c8   : > { %2206 = vmatpush.xpose.msra.mxu3 %v2081_v5  ;;  %v1204_v26 = vadd.f32 %v1203_v22, %v1177_v15  ;;  %v1531_v57 = vpop.f32.mrf.mxu0 }
 0x2ca   : > { %v1228_v34 = vadd.f32 %v1227_v23, %v1204_v26 }
 0x2cb   : > { %v1555_v16 = vpop.f32.mrf.mxu1 }
 0x2cf   : > { %v1251_v29 = vpop.f32.mrf.mxu3  ;;  %v1275_v31 = vpop.f32.mrf.mxu2  ;;  %2208 = vmatmul.f32.vlgmr.msra.gmra.mxu3 %v2083_v63 }
 0x2d0   : > { %v1252_v30 = vadd.f32 %v1251_v29, %v1228_v34 }
 0x2d2   : > { %v1276_v37 = vadd.f32 %v1275_v31, %v1252_v30 }
 0x2d3   : > { %v1633_v39 = vpop.f32.mrf.mxu0 }
 0x2d7   : > { %v1297_v38 = vpop.f32.mrf.mxu3  ;;  %v1329_v40 = vpop.f32.mrf.mxu2 }
 0x2d8   : > { %v5809_v41 = vadd.f32 %v1297_v38, %v1276_v37 }
 0x2da   : > { %v2215_v44 = vsel %vm997_vm1, %v5809_v41, -inf }
 0x2db   : > { %2216 = vmax.xlane.f32.xlu0 %v2215_v44  ;;  %v1659_v19 = vpop.f32.mrf.mxu1 }
 0x2dc   : > { %v1731_v63 = vpop.f32.mrf.mxu0  ;;  %v1660_v35 = vadd.f32 %v1659_v19, %v1633_v39 }
 0x2df   : > { %v1355_v46 = vpop.f32.mrf.mxu3  ;;  %v1379_v48 = vpop.f32.mrf.mxu2 }
 0x2e0   : > { %v1356_v49 = vadd.f32 %v1355_v46, %v1329_v40 }
 0x2e2   : > { %v1380_v58 = vadd.f32 %v1379_v48, %v1356_v49 }
 0x2e3   : > { %v2214_v53 = vpop.xlane.xlu2 %2213  ;;  %v1753_v52 = vpop.f32.mrf.mxu1 }
 0x2e4   : > { %v2236_v55 = vsub.f32 %v5789_v14, %v2214_v53  ;;  %v1835_v11 = vpop.f32.mrf.mxu0 }
 0x2e6   : > { %v2244_v8 = vmul.f32 1.442695, %v2236_v55 }
 0x2e7   : > { %v1403_v9 = vpop.f32.mrf.mxu3  ;;  %v1481_v10 = vpop.f32.mrf.mxu2 }
 0x2e8   : > { %v1404_v12 = vadd.f32 %v1403_v9, %v1380_v58  ;;  %4843 = vpow2.f32 %v2244_v8 }
 0x2ea   : > { %v1428_v13 = vadd.f32 %v1427_v45, %v1404_v12 }
 0x2eb   : > { %v1859_v17 = vpop.f32.mrf.mxu1 }
 0x2ec   : > { %v5814_v18 = vadd.f32 %v1449_v51, %v1428_v13  ;;  %v1937_v34 = vpop.f32.mrf.mxu0 }
 0x2ee   : > { %v2218_v20 = vsel %vm997_vm1, %v5814_v18, -inf  ;;  %v5818_v28 = vpop.eup %4843 }
 0x2ef   : > { %v1507_v32 = vpop.f32.mrf.mxu3  ;;  %v1579_v36 = vpop.f32.mrf.mxu2  ;;  %2219 = vmax.xlane.f32.xlu1 %v2218_v20  ;;  %v2260_v25 = vsel %vm997_vm1, %v5818_v28, 0.0 }
 0x2f0   : > { %v1508_v43 = vadd.f32 %v1507_v32, %v1481_v10  ;;  %2261 = vadd.xlane.f32.xlu0 %v2260_v25 }
 0x2f2   : > { %v1532_v14 = vadd.f32 %v1531_v57, %v1508_v43 }
 0x2f3   : > { %v1963_v38 = vpop.f32.mrf.mxu1 }
 0x2f4   : > { %v1556_v47 = vadd.f32 %v1555_v16, %v1532_v14  ;;  %v1964_v45 = vadd.f32 %v1963_v38, %v1937_v34  ;;  %v2035_v51 = vpop.f32.mrf.mxu0 }
 0x2f6   : > { %v1580_v50 = vadd.f32 %v1579_v36, %v1556_v47 }
 0x2f7   : > { %v1601_v54 = vpop.f32.mrf.mxu3  ;;  %v1683_v56 = vpop.f32.mrf.mxu2 }
 0x2f8   : > { %v5822_v33 = vadd.f32 %v1601_v54, %v1580_v50  ;;  %v1684_v0 = vadd.f32 %v1683_v56, %v1660_v35 }
 0x2fa   : > { %v2221_v60 = vsel %vm997_vm1, %v5822_v33, -inf }
 0x2fb   : > { %2222 = vmax.xlane.f32.xlu2 %v2221_v60  ;;  %v2057_v55 = vpop.f32.mrf.mxu1 }
 0x2ff   : > { %v1707_v1 = vpop.f32.mrf.mxu3  ;;  %v1785_v4 = vpop.f32.mrf.mxu2 }
 0x300   : > { %v1708_v5 = vadd.f32 %v1707_v1, %v1684_v0 }
 0x302   : > { %v1732_v6 = vadd.f32 %v1731_v63, %v1708_v5 }
 0x304   : > { %v5826_v7 = vadd.f32 %v1753_v52, %v1732_v6 }
 0x306   : > { %v2224_v15 = vsel %vm997_vm1, %v5826_v7, -inf }
 0x307   : > { %v1811_v21 = vpop.f32.mrf.mxu3  ;;  %2225 = vmax.xlane.f32.xlu2 %v2224_v15  ;;  %v1883_v23 = vpop.f32.mrf.mxu2 }
 0x308   : > { %v1812_v22 = vadd.f32 %v1811_v21, %v1785_v4 }
 0x30a   : > { %v1836_v26 = vadd.f32 %v1835_v11, %v1812_v22 }
 0x30c   : > { %v1860_v29 = vadd.f32 %v1859_v17, %v1836_v26 }
 0x30e   : > { %v1884_v31 = vadd.f32 %v1883_v23, %v1860_v29 }
 0x30f   : > { %v1905_v30 = vpop.f32.mrf.mxu3  ;;  %v1987_v44 = vpop.f32.mrf.mxu2 }
 0x310   : > { %v5830_v37 = vadd.f32 %v1905_v30, %v1884_v31  ;;  %v1988_v46 = vadd.f32 %v1987_v44, %v1964_v45 }
 0x312   : > { %v2227_v40 = vsel %vm997_vm1, %v5830_v37, -inf }
 0x313   : > { %2228 = vmax.xlane.f32.xlu1 %v2227_v40 }
 0x317   : > { %v2011_v48 = vpop.f32.mrf.mxu3 }
 0x318   : > { %v2012_v49 = vadd.f32 %v2011_v48, %v1988_v46 }
 0x31a   : > { %v2036_v53 = vadd.f32 %v2035_v51, %v2012_v49 }
 0x31c   : > { %v5834_v57 = vadd.f32 %v2057_v55, %v2036_v53 }
 0x31e   : > { %v2230_v58 = vsel %vm997_vm1, %v5834_v57, -inf }
 0x31f   : > { %2556 = vrot.lane.b32.xlu2 %v5671_v3, %s5161_s16  ;;  %2231 = vmax.xlane.f32.xlu0 %v2230_v58 }
 0x32c   : > { %2404 = vrot.lane.b32.xlu1 %v5646_v59, %s5161_s16 }
 0x33c   : > { %v2163_v16 = vpop.f32.mrf.mxu1 }
 0x33e   : > { %v2139_v12 = vpop.f32.mrf.mxu0 }
 0x342   : > { %v2089_v8 = vpop.f32.mrf.mxu2 }
 0x34a   : > { %v2115_v9 = vpop.f32.mrf.mxu3  ;;  %v2187_v43 = vpop.f32.mrf.mxu2 }
 0x34b   : > { %v2116_v10 = vadd.f32 %v2115_v9, %v2089_v8 }
 0x34d   : > { %v2140_v13 = vadd.f32 %v2139_v12, %v2116_v10 }
 0x34e   : > { %v2217_v20 = vpop.xlane.xlu0 %2216 }
 0x34f   : > { %v2164_v32 = vadd.f32 %v2163_v16, %v2140_v13  ;;  %v2237_v36 = vsub.f32 %v5809_v41, %v2217_v20 }
 0x351   : > { %v2188_v25 = vadd.f32 %v2187_v43, %v2164_v32  ;;  %v2246_v39 = vmul.f32 1.442695, %v2237_v36 }
 0x352   : > { %v2209_v14 = vpop.f32.mrf.mxu3 }
 0x353   : > { %4845 = vpow2.f32 %v2246_v39  ;;  %v5843_v3 = vadd.f32 %v2209_v14, %v2188_v25 }
 0x355   : > { %v2233_v59 = vsel %vm997_vm1, %v5843_v3, -inf }
 0x356   : > { %2234 = vmax.xlane.f32.xlu0 %v2233_v59 }
 0x359   : > { %v5847_v19 = vpop.eup %4845 }
 0x35a   : > { %v2263_v47 = vsel %vm997_vm1, %v5847_v19, 0.0 }
 0x35b   : > { %2264 = vadd.xlane.f32.xlu2 %v2263_v47 }
 0x362   : > { %v2220_v50 = vpop.xlane.xlu1 %2219 }
 0x363   : > { %v2238_v41 = vsub.f32 %v5814_v18, %v2220_v50  ;;  %v2262_v56 = vpop.xlane.xlu0 %2261 }
 0x364   : > { %vm2289_vm3 = vweird.f32 %v2262_v56  ;;  %v2293_v23 = vand.u32 2147483647, %v2262_v56 }
 0x365   : > { %v2248_v54 = vmul.f32 1.442695, %v2238_v41 }
 0x366   : > { %vm2294_vm5 = vcmp.eq.f32.partialorder %v2293_v23, 8.507059e+37 }
 0x367   : > { %4847 = vpow2.f32 %v2248_v54 }
 0x368   : > { %4849 = vrcp.f32 %v2262_v56 }
 0x36d   : > { %v5852_v60 = vpop.eup %4847 }
 0x36e   : > { %v2223_v63 = vpop.xlane.xlu2 %2222  ;;  %v2266_v35 = vsel %vm997_vm1, %v5852_v60, 0.0  ;;  %v4850_v0 = vpop.eup %4849 }
 0x36f   : > { %v2239_v52 = vsub.f32 %v5822_v33, %v2223_v63  ;;  %2267 = vadd.xlane.f32.xlu2 %v2266_v35  ;;  %v2285_v4 = vmul.f32 %v4850_v0, %v2262_v56  ;;  %vm2290_vm2 = vweird.f32 %v4850_v0  ;;  %v2295_v33 = vand.u32 2147483648, %v2262_v56 }
 0x370   : > { %vm2291_vm4 = vmor %vm2289_vm3, %vm2290_vm2 }
 0x371   : > { %v2250_v1 = vmul.f32 1.442695, %v2239_v52  ;;  %v2286_v5 = vsub.f32 1.0, %v2285_v4  ;;  %v2296_v29 = vor.u32 1.1754944e-38, %v2295_v33 }
 0x373   : > { %4851 = vpow2.f32 %v2250_v1  ;;  %v2287_v15 = vmul.f32 %v4850_v0, %v2286_v5 }
 0x375   : > { %v2288_v22 = vadd.f32 %v4850_v0, %v2287_v15 }
 0x377   : > { %v2292_v26 = vsel %vm2291_vm4, %v4850_v0, %v2288_v22 }
 0x378   : > { %v2297_v34 = vsel %vm2294_vm5, %v2296_v29, %v2292_v26 }
 0x379   : > { %v5857_v6 = vpop.eup %4851 }
 0x37a   : > { %v2226_v18 = vpop.xlane.xlu2 %2225  ;;  %v2269_v11 = vsel %vm997_vm1, %v5857_v6, 0.0 }
 0x37b   : > { %v2240_v17 = vsub.f32 %v5826_v7, %v2226_v18  ;;  %2270 = vadd.xlane.f32.xlu0 %v2269_v11  ;;  %v2298_v7 = vmul.f32 %v5818_v28, %v2297_v34 }
 0x37d   : > { %v2252_v21 = vmul.f32 1.442695, %v2240_v17  ;;  %v2408_v38 = vsel %vm997_vm1, %v2298_v7, 0 }
 0x37e   : > { %v2427_v44 = vand.u32 4294901760, %v2408_v38 }
 0x37f   : > { %4853 = vpow2.f32 %v2252_v21 }
 0x380   : > { %v2428_v46 = vsub.f32 %v2408_v38, %v2427_v44 }
 0x382   : > { %v2557_v40 = vpop.permute.xlu2 %2556  ;;  %v2429_v51 = vand.u32 4294901760, %v2428_v46 }
 0x383   : > { %v2577_v45 = vand.u32 4294901760, %v2557_v40 }
 0x385   : > { %v5862_v31 = vpop.eup %4853  ;;  %v2604_v48 = vsub.f32 %v2557_v40, %v2577_v45 }
 0x386   : > { %v2272_v30 = vsel %vm997_vm1, %v5862_v31, 0.0  ;;  %v2229_v49 = vpop.xlane.xlu1 %2228 }
 0x387   : > { %2860 = vrot.lane.b32.xlu2 %v5658_v61, %s5161_s16  ;;  %2273 = vadd.xlane.f32.xlu1 %v2272_v30  ;;  %v2605_v53 = vand.u32 4294901760, %v2604_v48  ;;  %v2430_v61 = vsub.f32 %v2428_v46, %v2429_v51 }
 0x389   : > { %v2606_v55 = vsub.f32 %v2604_v48, %v2605_v53  ;;  %v2431_v8 = vand.u32 4294901760, %v2430_v61 }
 0x38b   : > { %v2607_v9 = vand.u32 4294901760, %v2606_v55 }
 0x38f   : > { %3012 = vrot.lane.b32.xlu2 %v5642_v42, %s5161_s16  ;;  %2708 = vrot.lane.b32.xlu0 %v5669_v2, %s5161_s16 }
 0x392   : > { %v2232_v2 = vpop.xlane.xlu0 %2231 }
 0x393   : > { %v2242_v13 = vsub.f32 %v5834_v57, %v2232_v2 }
 0x395   : > { %v2256_v20 = vmul.f32 1.442695, %v2242_v13 }
 0x397   : > { %4855 = vpow2.f32 %v2256_v20 }
 0x39d   : > { %v5880_v36 = vpop.eup %4855 }
 0x39e   : > { %v2405_v58 = vpop.permute.xlu1 %2404 }
 0x39f   : > { %v2425_v28 = vand.u32 4294901760, %v2405_v58 }
 0x3a0   : > { %3164 = vrot.lane.b32.xlu1 %v5660_v62, %s5161_s16  ;;  %v2241_v62 = vsub.f32 %v5830_v37, %v2229_v49  ;;  %v2278_v37 = vsel %vm997_vm1, %v5880_v36, 0.0 }
 0x3a1   : > { %v2452_v42 = vsub.f32 %v2405_v58, %v2425_v28  ;;  %2426 = vmatpush.msra.mxu0 %v2425_v28  ;;  %2502 = vmatpush.msrb.mxu3 %v2425_v28 }
 0x3a2   : > { %2432 = vmatmul.f32.vlgmr.msra.gmra.mxu0 %v2431_v8  ;;  %2506 = vmatmul.f32.vlgmr.msrb.gmra.mxu3 %v2429_v51  ;;  %v2254_v32 = vmul.f32 1.442695, %v2241_v62 }
 0x3a3   : > { %v2453_v10 = vand.u32 4294901760, %v2452_v42  ;;  %2608 = vmatpush.msra.mxu3 %v2607_v9  ;;  %2479 = vmatpush.msrb.mxu2 %v2452_v42 }
 0x3a4   : > { %2482 = vmatmul.f32.vlgmr.msrb.gmra.mxu2 %v2428_v46  ;;  %4857 = vpow2.f32 %v2254_v32 }
 0x3a5   : > { %2702 = vmatpush.msrb.mxu3 %v2577_v45  ;;  %v2454_v12 = vsub.f32 %v2452_v42, %v2453_v10  ;;  %2578 = vmatpush.msra.mxu2 %v2577_v45 }
 0x3a6   : > { %2528 = vmatpush.msrb.mxu0 %v2453_v10 }
 0x3a7   : > { %2680 = vmatpush.msrb.mxu2 %v2605_v53  ;;  %v2455_v16 = vand.u32 4294901760, %v2454_v12 }
 0x3a8   : > { %2631 = vmatpush.msra.mxu0 %v2604_v48  ;;  %3316 = vrot.lane.b32.xlu1 %v5687_v27, %s5161_s16 }
 0x3a9   : > { %2456 = vmatpush.msra.mxu1 %v2455_v16 }
 0x3aa   : > { %2458 = vmatmul.f32.vlgmr.msra.gmra.mxu1 %v2427_v44  ;;  %2530 = vmatmul.f32.vlgmr.msrb.gmra.mxu0 %v2427_v44  ;;  %v5882_v57 = vpop.eup %4857 }
 0x3ab   : > { %2550 = vmatpush.msrb.mxu1 %v2425_v28  ;;  %v2275_v27 = vsel %vm997_vm1, %v5882_v57, 0.0 }
 0x3ad   : > { %2654 = vmatpush.msra.mxu1 %v2577_v45 }
 0x3b2   : > { %2552 = vmatmul.f32.vlgmr.msrb.gmra.mxu1 %v2427_v44 }
 0x3b8   : > { %2279 = vadd.xlane.f32.xlu2 %v2278_v37 }
 0x3b9   : > { %2276 = vadd.xlane.f32.xlu0 %v2275_v27 }
 0x3c9   : > { %v2235_v43 = vpop.xlane.xlu0 %2234 }
 0x3ca   : > { %v2243_v25 = vsub.f32 %v5843_v3, %v2235_v43 }
 0x3cc   : > { %v2258_v39 = vmul.f32 1.442695, %v2243_v25 }
 0x3ce   : > { %4859 = vpow2.f32 %v2258_v39  ;;  %v2265_v14 = vpop.xlane.xlu2 %2264 }
 0x3cf   : > { %4861 = vrcp.f32 %v2265_v14  ;;  %v2310_v56 = vand.u32 2147483648, %v2265_v14  ;;  %v2308_v35 = vand.u32 2147483647, %v2265_v14  ;;  %vm2304_vm7 = vweird.f32 %v2265_v14 }
 0x3d1   : > { %v2311_v3 = vor.u32 1.1754944e-38, %v2310_v56  ;;  %vm2309_vm9 = vcmp.eq.f32.partialorder %v2308_v35, 8.507059e+37 }
 0x3d4   : > { %v5889_v59 = vpop.eup %4859 }
 0x3d5   : > { %v4862_v47 = vpop.eup %4861  ;;  %v2281_v50 = vsel %vm997_vm1, %v5889_v59, 0.0 }
 0x3d6   : > { %v2300_v41 = vmul.f32 %v4862_v47, %v2265_v14  ;;  %2282 = vadd.xlane.f32.xlu0 %v2281_v50  ;;  %vm2305_vm6 = vweird.f32 %v4862_v47 }
 0x3d7   : > { %vm2306_vm8 = vmor %vm2304_vm7, %vm2305_vm6 }
 0x3d8   : > { %v2301_v54 = vsub.f32 1.0, %v2300_v41 }
 0x3da   : > { %v2302_v63 = vmul.f32 %v4862_v47, %v2301_v54 }
 0x3dc   : > { %v2303_v52 = vadd.f32 %v4862_v47, %v2302_v63 }
 0x3de   : > { %v2307_v0 = vsel %vm2306_vm8, %v4862_v47, %v2303_v52 }
 0x3df   : > { %v2312_v1 = vsel %vm2309_vm9, %v2311_v3, %v2307_v0 }
 0x3e0   : > { %v2313_v4 = vmul.f32 %v5847_v19, %v2312_v1 }
 0x3e2   : > { %v2268_v5 = vpop.xlane.xlu2 %2267  ;;  %v2560_v18 = vsel %vm997_vm1, %v2313_v4, 0 }
 0x3e3   : > { %4863 = vrcp.f32 %v2268_v5  ;;  %v2579_v11 = vand.u32 4294901760, %v2560_v18  ;;  %v2325_v29 = vand.u32 2147483648, %v2268_v5  ;;  %v2323_v34 = vand.u32 2147483647, %v2268_v5 }
 0x3e4   : > { %vm2319_vm11 = vweird.f32 %v2268_v5 }
 0x3e5   : > { %2610 = vmatmul.f32.vlgmr.msra.gmra.mxu3 %v2579_v11  ;;  %v2580_v15 = vsub.f32 %v2560_v18, %v2579_v11  ;;  %v2326_v38 = vor.u32 1.1754944e-38, %v2325_v29  ;;  %vm2324_vm13 = vcmp.eq.f32.partialorder %v2323_v34, 8.507059e+37 }
 0x3e7   : > { %2634 = vmatmul.f32.vlgmr.msra.gmra.mxu0 %v2580_v15  ;;  %v2581_v17 = vand.u32 4294901760, %v2580_v15 }
 0x3e9   : > { %v4864_v21 = vpop.eup %4863  ;;  %2658 = vmatmul.f32.vlgmr.msra.gmra.mxu1 %v2581_v17  ;;  %v2582_v33 = vsub.f32 %v2580_v15, %v2581_v17 }
 0x3ea   : > { %v2315_v22 = vmul.f32 %v4864_v21, %v2268_v5  ;;  %3468 = vrot.lane.b32.xlu0 %v5722_v24, %s5161_s16  ;;  %vm2320_vm10 = vweird.f32 %v4864_v21  ;;  %v2861_v40 = vpop.permute.xlu2 %2860  ;;  %s4563_s16 = scalar_lea.sflag [#allocation5], %s5383_s29 }
 0x3eb   : > { %v2583_v26 = vand.u32 4294901760, %v2582_v33  ;;  %vm2321_vm12 = vmor %vm2319_vm11, %vm2320_vm10  ;;  %v5898_v46 = vand.u32 4294901760, %v2861_v40 }
 0x3ec   : > { %v2316_v23 = vsub.f32 1.0, %v2315_v22 }
 0x3ed   : > { %2584 = vmatmul.f32.vlgmr.msra.gmra.mxu2 %v2583_v26  ;;  %2704 = vmatmul.f32.vlgmr.msrb.gmra.mxu3 %v2579_v11  ;;  %v2908_v61 = vsub.f32 %v2861_v40, %v5898_v46 }
 0x3ee   : > { %v2317_v19 = vmul.f32 %v4864_v21, %v2316_v23  ;;  %v2271_v30 = vpop.xlane.xlu0 %2270 }
 0x3ef   : > { %4865 = vrcp.f32 %v2271_v30  ;;  %v2340_v58 = vand.u32 2147483648, %v2271_v30  ;;  %v2338_v9 = vand.u32 2147483647, %v2271_v30  ;;  %vm2334_vm15 = vweird.f32 %v2271_v30 }
 0x3f0   : > { %v2318_v7 = vadd.f32 %v4864_v21, %v2317_v19 }
 0x3f1   : > { %v2341_v12 = vor.u32 1.1754944e-38, %v2340_v58  ;;  %vm2339_vm3 = vcmp.eq.f32.partialorder %v2338_v9, 8.507059e+37 }
 0x3f2   : > { %v2322_v44 = vsel %vm2321_vm12, %v4864_v21, %v2318_v7  ;;  %v3013_v27 = vpop.permute.xlu2 %3012 }
 0x3f3   : > { %v2327_v45 = vsel %vm2324_vm13, %v2326_v38, %v2322_v44  ;;  %v5909_v54 = vand.u32 4294901760, %v3013_v27 }
 0x3f4   : > { %v2328_v24 = vmul.f32 %v5852_v60, %v2327_v45  ;;  %v2909_v60 = vand.u32 4294901760, %v2908_v61 }
 0x3f5   : > { %v4866_v48 = vpop.eup %4865  ;;  %2682 = vmatmul.f32.vlgmr.msrb.gmra.mxu2 %v2579_v11  ;;  %v3060_v4 = vsub.f32 %v3013_v27, %v5909_v54 }
 0x3f6   : > { %v2330_v49 = vmul.f32 %v4866_v48, %v2271_v30  ;;  %v2712_v51 = vsel %vm997_vm1, %v2328_v24, 0  ;;  %vm2335_vm14 = vweird.f32 %v4866_v48  ;;  %v2910_v20 = vsub.f32 %v2908_v61, %v2909_v60 }
 0x3f7   : > { %v5901_v53 = vand.u32 4294901760, %v2712_v51  ;;  %vm2336_vm2 = vmor %vm2334_vm15, %vm2335_vm14  ;;  %v3061_v33 = vand.u32 4294901760, %v3060_v4 }
 0x3f8   : > { %v2331_v55 = vsub.f32 1.0, %v2330_v49  ;;  %v2911_v41 = vand.u32 4294901760, %v2910_v20 }
 0x3f9   : > { %v2732_v28 = vsub.f32 %v2712_v51, %v5901_v53  ;;  %v3062_v34 = vsub.f32 %v3060_v4, %v3061_v33 }
 0x3fa   : > { %v2332_v8 = vmul.f32 %v4866_v48, %v2331_v55  ;;  %v2274_v42 = vpop.xlane.xlu1 %2273 }
 0x3fb   : > { %4867 = vrcp.f32 %v2274_v42  ;;  %v2733_v10 = vand.u32 4294901760, %v2732_v28  ;;  %v2355_v35 = vand.u32 2147483648, %v2274_v42  ;;  %v2353_v3 = vand.u32 2147483647, %v2274_v42 }
 0x3fc   : > { %v2333_v2 = vadd.f32 %v4866_v48, %v2332_v8  ;;  %vm2349_vm5 = vweird.f32 %v2274_v42  ;;  %v3063_v40 = vand.u32 4294901760, %v3062_v34 }
 0x3fd   : > { %v2734_v16 = vsub.f32 %v2732_v28, %v2733_v10  ;;  %v2356_v11 = vor.u32 1.1754944e-38, %v2355_v35  ;;  %vm2354_vm7 = vcmp.eq.f32.partialorder %v2353_v3, 8.507059e+37 }
 0x3fe   : > { %v2337_v13 = vsel %vm2336_vm2, %v4866_v48, %v2333_v2 }
 0x3ff   : > { %v2342_v62 = vsel %vm2339_vm3, %v2341_v12, %v2337_v13  ;;  %v2735_v47 = vand.u32 4294901760, %v2734_v16 }
 0x400   : > { %v2343_v32 = vmul.f32 %v5857_v6, %v2342_v62 }
 0x401   : > { %v4868_v37 = vpop.eup %4867  ;;  %v2709_v43 = vpop.permute.xlu0 %2708 }
 0x402   : > { %v2345_v25 = vmul.f32 %v4868_v37, %v2274_v42  ;;  %v2729_v39 = vand.u32 4294901760, %v2709_v43  ;;  %v2864_v14 = vsel %vm997_vm1, %v2343_v32, 0  ;;  %vm2350_vm4 = vweird.f32 %v4868_v37 }
 0x403   : > { %v5907_v50 = vand.u32 4294901760, %v2864_v14  ;;  %vm2351_vm6 = vmor %vm2349_vm5, %vm2350_vm4 }
 0x404   : > { %v2346_v56 = vsub.f32 1.0, %v2345_v25  ;;  %v2756_v63 = vsub.f32 %v2709_v43, %v2729_v39  ;;  %2730 = vmatpush.msrb.mxu0 %v2729_v39  ;;  %2806 = vmatpush.msra.mxu3 %v2729_v39 }
 0x405   : > { %2736 = vmatmul.f32.vlgmr.msrb.gmra.mxu0 %v2735_v47  ;;  %2810 = vmatmul.f32.vlgmr.msra.gmra.mxu3 %v2733_v10  ;;  %v2884_v6 = vsub.f32 %v2864_v14, %v5907_v50 }
 0x406   : > { %v2347_v52 = vmul.f32 %v4868_v37, %v2346_v56  ;;  %v2757_v0 = vand.u32 4294901760, %v2756_v63  ;;  %2912 = vmatpush.msrb.mxu3 %v2911_v41  ;;  %2783 = vmatpush.msra.mxu2 %v2756_v63 }
 0x407   : > { %2786 = vmatmul.f32.vlgmr.msra.gmra.mxu2 %v2732_v28  ;;  %v2885_v1 = vand.u32 4294901760, %v2884_v6 }
 0x408   : > { %3006 = vmatpush.msra.mxu3 %v5898_v46  ;;  %v2348_v5 = vadd.f32 %v4868_v37, %v2347_v52  ;;  %v2758_v18 = vsub.f32 %v2756_v63, %v2757_v0  ;;  %2882 = vmatpush.msrb.mxu2 %v5898_v46 }
 0x409   : > { %2832 = vmatpush.msra.mxu0 %v2757_v0  ;;  %v2886_v21 = vsub.f32 %v2884_v6, %v2885_v1 }
 0x40a   : > { %2984 = vmatpush.msra.mxu2 %v2909_v60  ;;  %v2352_v15 = vsel %vm2351_vm6, %v4868_v37, %v2348_v5  ;;  %v2759_v17 = vand.u32 4294901760, %v2758_v18  ;;  %vm3625_vm6 = vcmask 130112  }
 0x40b   : > { %2935 = vmatpush.msrb.mxu0 %v2908_v61  ;;  %v2357_v22 = vsel %vm2354_vm7, %v2356_v11, %v2352_v15  ;;  %v2887_v26 = vand.u32 4294901760, %v2886_v21  ;;  %vm3637_vm7 = vcmask 261312  }
 0x40c   : > { %v2358_v23 = vmul.f32 %v5862_v31, %v2357_v22  ;;  %2760 = vmatpush.msrb.mxu1 %v2759_v17 }
 0x40d   : > { %2762 = vmatmul.f32.vlgmr.msrb.gmra.mxu1 %v5901_v53  ;;  %2834 = vmatmul.f32.vlgmr.msra.gmra.mxu0 %v5901_v53 }
 0x40e   : > { %2854 = vmatpush.msra.mxu1 %v2729_v39  ;;  %2914 = vmatmul.f32.vlgmr.msrb.gmra.mxu3 %v5907_v50  ;;  %v3016_v29 = vsel %vm997_vm1, %v2358_v23, 0 }
 0x40f   : > { %3034 = vmatpush.msra.mxu0 %v5909_v54  ;;  %3110 = vmatpush.msrb.mxu3 %v5909_v54  ;;  %v3035_v19 = vand.u32 4294901760, %v3016_v29 }
 0x410   : > { %2958 = vmatpush.msrb.mxu1 %v5898_v46  ;;  %2888 = vmatmul.f32.vlgmr.msrb.gmra.mxu2 %v2887_v26 }
 0x411   : > { %3087 = vmatpush.msrb.mxu2 %v3060_v4  ;;  %v3036_v31 = vsub.f32 %v3016_v29, %v3035_v19 }
 0x412   : > { %v3165_v30 = vpop.permute.xlu1 %3164 }
 0x413   : > { %v3185_v7 = vand.u32 4294901760, %v3165_v30  ;;  %v3037_v38 = vand.u32 4294901760, %v3036_v31 }
 0x415   : > { %v3212_v44 = vsub.f32 %v3165_v30, %v3185_v7  ;;  %2856 = vmatmul.f32.vlgmr.msra.gmra.mxu1 %v5901_v53  ;;  %2938 = vmatmul.f32.vlgmr.msrb.gmra.mxu0 %v2884_v6  ;;  %v3038_v24 = vsub.f32 %v3036_v31, %v3037_v38 }
 0x416   : > { %3008 = vmatmul.f32.vlgmr.msra.gmra.mxu3 %v5907_v50  ;;  %3064 = vmatpush.msra.mxu1 %v3063_v40 }
 0x417   : > { %v3213_v45 = vand.u32 4294901760, %v3212_v44  ;;  %3136 = vmatpush.msrb.mxu0 %v3061_v33  ;;  %v3039_v51 = vand.u32 4294901760, %v3038_v24 }
 0x418   : > { %2986 = vmatmul.f32.vlgmr.msra.gmra.mxu2 %v5907_v50 }
 0x419   : > { %v3214_v46 = vsub.f32 %v3212_v44, %v3213_v45  ;;  %3186 = vmatpush.msra.mxu2 %v3185_v7 }
 0x41a   : > { %v3317_v48 = vpop.permute.xlu1 %3316 }
 0x41b   : > { %v3215_v49 = vand.u32 4294901760, %v3214_v46  ;;  %v5926_v61 = vand.u32 4294901760, %v3317_v48 }
 0x41d   : > { %2962 = vmatmul.f32.vlgmr.msrb.gmra.mxu1 %v2885_v1  ;;  %3040 = vmatmul.f32.vlgmr.msra.gmra.mxu0 %v3039_v51  ;;  %v5930_v53 = vsub.f32 %v3317_v48, %v5926_v61 }
 0x41e   : > { %3114 = vmatmul.f32.vlgmr.msrb.gmra.mxu3 %v3037_v38  ;;  %3158 = vmatpush.msrb.mxu1 %v5909_v54 }
 0x41f   : > { %3216 = vmatpush.msra.mxu3 %v3215_v49  ;;  %3239 = vmatpush.msra.mxu0 %v3212_v44  ;;  %v2433_v55 = vpop.f32.mrf.mxu0  ;;  %v3365_v58 = vand.u32 4294901760, %v5930_v53 }
 0x420   : > { %3090 = vmatmul.f32.vlgmr.msrb.gmra.mxu2 %v3036_v31 }
 0x421   : > { %3310 = vmatpush.msrb.mxu3 %v3185_v7  ;;  %3288 = vmatpush.msrb.mxu2 %v3213_v45  ;;  %v3366_v8 = vsub.f32 %v5930_v53, %v3365_v58 }
 0x423   : > { %v3367_v12 = vand.u32 4294901760, %v3366_v8 }
 0x425   : > { %3066 = vmatmul.f32.vlgmr.msra.gmra.mxu1 %v3035_v19  ;;  %3138 = vmatmul.f32.vlgmr.msrb.gmra.mxu0 %v3035_v19  ;;  %v2507_v2 = vpop.f32.mrf.mxu3 }
 0x426   : > { %3262 = vmatpush.msra.mxu1 %v3185_v7  ;;  %3338 = vmatpush.msrb.mxu0 %v5926_v61 }
 0x427   : > { %v2459_v28 = vpop.f32.mrf.mxu1  ;;  %v2483_v42 = vpop.f32.mrf.mxu2 }
 0x428   : > { %v2460_v9 = vadd.f32 %v2459_v28, %v2433_v55  ;;  %v2531_v16 = vpop.f32.mrf.mxu0 }
 0x42a   : > { %v2484_v60 = vadd.f32 %v2483_v42, %v2460_v9 }
 0x42b   : > { %v2280_v10 = vpop.xlane.xlu2 %2279 }
 0x42c   : > { %v2508_v13 = vadd.f32 %v2507_v2, %v2484_v60  ;;  %4869 = vrcp.f32 %v2280_v10  ;;  %v2277_v62 = vpop.xlane.xlu0 %2276  ;;  %v2385_v47 = vand.u32 2147483648, %v2280_v10  ;;  %v2383_v54 = vand.u32 2147483647, %v2280_v10 }
 0x42d   : > { %4871 = vrcp.f32 %v2277_v62  ;;  %3160 = vmatmul.f32.vlgmr.msrb.gmra.mxu1 %v3035_v19  ;;  %v2370_v56 = vand.u32 2147483648, %v2277_v62  ;;  %v2368_v35 = vand.u32 2147483647, %v2277_v62  ;;  %vm2379_vm10 = vweird.f32 %v2280_v10 }
 0x42e   : > { %v2532_v20 = vadd.f32 %v2531_v16, %v2508_v13  ;;  %3368 = vmatpush.msrb.mxu1 %v3367_v12  ;;  %v2386_v52 = vor.u32 1.1754944e-38, %v2385_v47  ;;  %vm2364_vm12 = vweird.f32 %v2277_v62  ;;  %vm2384_vm13 = vcmp.eq.f32.partialorder %v2383_v54, 8.507059e+37 }
 0x42f   : > { %v2553_v32 = vpop.f32.mrf.mxu1  ;;  %v2371_v1 = vor.u32 1.1754944e-38, %v2370_v56  ;;  %vm2369_vm15 = vcmp.eq.f32.partialorder %v2368_v35, 8.507059e+37 }
 0x430   : > { %v2554_v37 = vadd.f32 %v2553_v32, %v2532_v20 }
 0x432   : > { %v4870_v27 = vpop.eup %4869  ;;  %3620 = vst.msk [vmem:[#allocation2] sm:$0xff] %vm997_vm1, %v2554_v37 }
 0x433   : > { %v4872_v43 = vpop.eup %4871  ;;  %v2375_v25 = vmul.f32 %v4870_v27, %v2280_v10  ;;  %vm2380_vm8 = vweird.f32 %v4870_v27 }
 0x434   : > { %v2360_v39 = vmul.f32 %v4872_v43, %v2277_v62  ;;  %vm2365_vm9 = vweird.f32 %v4872_v43  ;;  %vm2381_vm11 = vmor %vm2379_vm10, %vm2380_vm8 }
 0x435   : > { %v2376_v14 = vsub.f32 1.0, %v2375_v25  ;;  %vm2366_vm14 = vmor %vm2364_vm12, %vm2365_vm9  ;;  %vm3979_vm9 = vcmask 523264  }
 0x436   : > { %v2361_v50 = vsub.f32 1.0, %v2360_v39 }
 0x437   : > { %v2377_v41 = vmul.f32 %v4870_v27, %v2376_v14 }
 0x438   : > { %v2362_v63 = vmul.f32 %v4872_v43, %v2361_v50 }
 0x439   : > { %v2378_v6 = vadd.f32 %v4870_v27, %v2377_v41 }
 0x43a   : > { %v2363_v3 = vadd.f32 %v4872_v43, %v2362_v63 }
 0x43b   : > { %v2382_v0 = vsel %vm2381_vm11, %v4870_v27, %v2378_v6 }
 0x43c   : > { %v2387_v4 = vsel %vm2384_vm13, %v2386_v52, %v2382_v0  ;;  %v2367_v5 = vsel %vm2366_vm14, %v4872_v43, %v2363_v3 }
 0x43d   : > { %v2388_v18 = vmul.f32 %v5880_v36, %v2387_v4  ;;  %v2372_v11 = vsel %vm2369_vm15, %v2371_v1, %v2367_v5 }
 0x43e   : > { %v2373_v15 = vmul.f32 %v5882_v57, %v2372_v11 }
 0x43f   : > { %v3320_v17 = vsel %vm997_vm1, %v2388_v18, 0 }
 0x440   : > { %v3168_v21 = vsel %vm997_vm1, %v2373_v15, 0  ;;  %v3339_v22 = vand.u32 4294901760, %v3320_v17 }
 0x441   : > { %v3187_v33 = vand.u32 4294901760, %v3168_v21 }
 0x442   : > { %v3340_v23 = vsub.f32 %v3320_v17, %v3339_v22 }
 0x443   : > { %3218 = vmatmul.f32.vlgmr.msra.gmra.mxu3 %v3187_v33  ;;  %v3188_v26 = vsub.f32 %v3168_v21, %v3187_v33 }
 0x444   : > { %3414 = vmatpush.msra.mxu3 %v5926_v61  ;;  %v3341_v29 = vand.u32 4294901760, %v3340_v23 }
 0x445   : > { %3242 = vmatmul.f32.vlgmr.msra.gmra.mxu0 %v3188_v26  ;;  %v3189_v19 = vand.u32 4294901760, %v3188_v26 }
 0x446   : > { %3440 = vmatpush.msra.mxu0 %v3365_v58  ;;  %v3342_v57 = vsub.f32 %v3340_v23, %v3341_v29 }
 0x447   : > { %v3190_v36 = vsub.f32 %v3188_v26, %v3189_v19  ;;  %3266 = vmatmul.f32.vlgmr.msra.gmra.mxu1 %v3189_v19 }
 0x448   : > { %3462 = vmatpush.msra.mxu1 %v5926_v61  ;;  %v3343_v30 = vand.u32 4294901760, %v3342_v57 }
 0x449   : > { %v3191_v34 = vand.u32 4294901760, %v3190_v36  ;;  %v2283_v31 = vpop.xlane.xlu0 %2282 }
 0x44a   : > { %4873 = vrcp.f32 %v2283_v31  ;;  %v2400_v44 = vand.u32 2147483648, %v2283_v31  ;;  %v2398_v24 = vand.u32 2147483647, %v2283_v31  ;;  %vm2394_vm3 = vweird.f32 %v2283_v31 }
 0x44b   : > { %3192 = vmatmul.f32.vlgmr.msra.gmra.mxu2 %v3191_v34  ;;  %3312 = vmatmul.f32.vlgmr.msrb.gmra.mxu3 %v3187_v33 }
 0x44c   : > { %3391 = vmatpush.msra.mxu2 %v5930_v53  ;;  %v2401_v48 = vor.u32 1.1754944e-38, %v2400_v44  ;;  %vm2399_vm5 = vcmp.eq.f32.partialorder %v2398_v24, 8.507059e+37 }
 0x44d   : > { %3344 = vmatmul.f32.vlgmr.msrb.gmra.mxu0 %v3343_v30 }
 0x44f   : > { %3370 = vmatmul.f32.vlgmr.msrb.gmra.mxu1 %v3339_v22 }
 0x450   : > { %v4874_v7 = vpop.eup %4873 }
 0x451   : > { %v2390_v38 = vmul.f32 %v4874_v7, %v2283_v31  ;;  %vm2395_vm2 = vweird.f32 %v4874_v7 }
 0x452   : > { %vm2396_vm4 = vmor %vm2394_vm3, %vm2395_vm2 }
 0x453   : > { %v2391_v40 = vsub.f32 1.0, %v2390_v38  ;;  %3290 = vmatmul.f32.vlgmr.msrb.gmra.mxu2 %v3187_v33  ;;  %3418 = vmatmul.f32.vlgmr.msra.gmra.mxu3 %v3341_v29 }
 0x455   : > { %v2392_v45 = vmul.f32 %v4874_v7, %v2391_v40  ;;  %3442 = vmatmul.f32.vlgmr.msra.gmra.mxu0 %v3339_v22 }
 0x457   : > { %v2393_v46 = vadd.f32 %v4874_v7, %v2392_v45  ;;  %3464 = vmatmul.f32.vlgmr.msra.gmra.mxu1 %v3339_v22 }
 0x459   : > { %v2397_v49 = vsel %vm2396_vm4, %v4874_v7, %v2393_v46 }
 0x45a   : > { %v2402_v51 = vsel %vm2399_vm5, %v2401_v48, %v2397_v49 }
 0x45b   : > { %3394 = vmatmul.f32.vlgmr.msra.gmra.mxu2 %v3340_v23  ;;  %v2403_v61 = vmul.f32 %v5889_v59, %v2402_v51 }
 0x45c   : > { %v3469_v53 = vpop.permute.xlu0 %3468 }
 0x45d   : > { %v3489_v55 = vand.u32 4294901760, %v3469_v53  ;;  %v3472_v58 = vsel %vm997_vm1, %v2403_v61, 0 }
 0x45e   : > { %v3491_v28 = vand.u32 4294901760, %v3472_v58 }
 0x45f   : > { %v3516_v8 = vsub.f32 %v3469_v53, %v3489_v55  ;;  %3490 = vmatpush.msrb.mxu2 %v3489_v55  ;;  %3566 = vmatpush.msrb.mxu1 %v3489_v55 }
 0x460   : > { %v3492_v9 = vsub.f32 %v3472_v58, %v3491_v28 }
 0x461   : > { %v3517_v42 = vand.u32 4294901760, %v3516_v8  ;;  %3543 = vmatpush.msrb.mxu0 %v3516_v8 }
 0x462   : > { %3546 = vmatmul.f32.vlgmr.msrb.gmra.mxu0 %v3492_v9  ;;  %v3493_v60 = vand.u32 4294901760, %v3492_v9 }
 0x463   : > { %v3518_v2 = vsub.f32 %v3516_v8, %v3517_v42  ;;  %3592 = vmatpush.msra.mxu2 %v3517_v42 }
 0x464   : > { %v3494_v10 = vsub.f32 %v3492_v9, %v3493_v60  ;;  %3570 = vmatmul.f32.vlgmr.msrb.gmra.mxu1 %v3493_v60  ;;  %v2635_v20 = vpop.f32.mrf.mxu0 }
 0x465   : > { %v3519_v12 = vand.u32 4294901760, %v3518_v2 }
 0x466   : > { %v3495_v13 = vand.u32 4294901760, %v3494_v10  ;;  %v2659_v37 = vpop.f32.mrf.mxu1 }
 0x467   : > { %3520 = vmatpush.msrb.mxu3 %v3519_v12 }
 0x468   : > { %3496 = vmatmul.f32.vlgmr.msrb.gmra.mxu2 %v3495_v13  ;;  %3522 = vmatmul.f32.vlgmr.msrb.gmra.mxu3 %v3491_v28  ;;  %v2611_v59 = vpop.f32.mrf.mxu3 }
 0x469   : > { %3614 = vmatpush.msra.mxu3 %v3489_v55 }
 0x470   : > { %3594 = vmatmul.f32.vlgmr.msra.gmra.mxu2 %v3491_v28  ;;  %3616 = vmatmul.f32.vlgmr.msra.gmra.mxu3 %v3491_v28  ;;  %v2585_v62 = vpop.f32.mrf.mxu2  ;;  %v2705_v39 = vpop.f32.mrf.mxu3 }
 0x471   : > { %v2612_v16 = vadd.f32 %v2611_v59, %v2585_v62 }
 0x473   : > { %v2636_v32 = vadd.f32 %v2635_v20, %v2612_v16  ;;  %v3660_v20 = vld [vmem:[#allocation8 + $0x18] sm:$0xff] }
 0x475   : > { %v2660_v27 = vadd.f32 %v2659_v37, %v2636_v32  ;;  %v3681_v32 = vsel %vm602_vm0, %v3660_v20, 0 }
 0x476   : > { %v3695_v37 = vand.u32 4294901760, %v3681_v32 }
 0x478   : > { %v2683_v43 = vpop.f32.mrf.mxu2  ;;  %3813 = vmatpush.xpose.msrb.mxu3 %v3695_v37  ;;  %3696 = vmatpush.xpose.msra.mxu0 %v3695_v37 }
 0x479   : > { %v2684_v25 = vadd.f32 %v2683_v43, %v2660_v27 }
 0x47b   : > { %v2706_v14 = vadd.f32 %v2705_v39, %v2684_v25  ;;  %v3733_v25 = vsub.f32 %v3681_v32, %v3695_v37  ;;  %v3659_v39 = vld [vmem:[#allocation8 + $0x10] sm:$0xff] }
 0x47d   : > { %3622 = vrot.lane.b32.xlu2 %v2706_v14, %s5162_s21  ;;  %3779 = vmatpush.xpose.msrb.mxu2 %v3733_v25 }
 0x482   : > { %v2737_v47 = vpop.f32.mrf.mxu0 }
 0x488   : > { %v2811_v50 = vpop.f32.mrf.mxu3 }
 0x48a   : > { %v2763_v41 = vpop.f32.mrf.mxu1  ;;  %v2787_v54 = vpop.f32.mrf.mxu2 }
 0x48b   : > { %v2764_v56 = vadd.f32 %v2763_v41, %v2737_v47  ;;  %v2835_v63 = vpop.f32.mrf.mxu0  ;;  %v3678_v47 = vsel %vm602_vm0, %v3659_v39, 0  ;;  %v3734_v41 = vand.u32 4294901760, %v3733_v25 }
 0x48d   : > { %v2788_v35 = vadd.f32 %v2787_v54, %v2764_v56  ;;  %v3697_v54 = vand.u32 4294901760, %v3678_v47 }
 0x48f   : > { %v2812_v6 = vadd.f32 %v2811_v50, %v2788_v35  ;;  %v3739_v35 = vsub.f32 %v3678_v47, %v3697_v54  ;;  %3815 = vmatpush.xpose.msrb.mxu3 %v3697_v54  ;;  %3698 = vmatpush.xpose.msra.mxu0 %v3697_v54 }
 0x491   : > { %v2836_v52 = vadd.f32 %v2835_v63, %v2812_v6  ;;  %v2915_v3 = vpop.f32.mrf.mxu3  ;;  %v3735_v63 = vsub.f32 %v3733_v25, %v3734_v41  ;;  %v3658_v6 = vld [vmem:[#allocation8 + $0x8] sm:$0xff]  ;;  %3782 = vmatpush.xpose.msrb.mxu2 %v3739_v35 }
 0x492   : > { %v2857_v0 = vpop.f32.mrf.mxu1 }
 0x493   : > { %v2858_v1 = vadd.f32 %v2857_v0, %v2836_v52  ;;  %v2889_v4 = vpop.f32.mrf.mxu2  ;;  %v2939_v5 = vpop.f32.mrf.mxu0  ;;  %v3675_v52 = vsel %vm602_vm0, %v3658_v6, 0  ;;  %v3736_v0 = vand.u32 4294901760, %v3735_v63  ;;  %v4885_v63 = vld [vmem:[%s503_s14] sm:$0xff] }
 0x494   : > { %v2916_v18 = vadd.f32 %v2915_v3, %v2889_v4  ;;  %v3699_v4 = vand.u32 4294901760, %v3675_v52 }
 0x495   : > { %3628 = vrot.lane.b32.xlu1 %v2858_v1, %s5163_s27  ;;  %v3740_v1 = vand.u32 4294901760, %v3739_v35  ;;  %3737 = vmatpush.xpose.msra.mxu1 %v3736_v0 }
 0x496   : > { %v2940_v11 = vadd.f32 %v2939_v5, %v2916_v18  ;;  %3817 = vmatpush.xpose.msrb.mxu3 %v3699_v4  ;;  %3700 = vmatpush.xpose.msra.mxu0 %v3699_v4 }
 0x499   : > { %v3009_v22 = vpop.f32.mrf.mxu3 }
 0x49a   : > { %v2963_v15 = vpop.f32.mrf.mxu1 }
 0x49b   : > { %v2964_v17 = vadd.f32 %v2963_v15, %v2940_v11  ;;  %v2987_v21 = vpop.f32.mrf.mxu2  ;;  %v3041_v23 = vpop.f32.mrf.mxu0  ;;  %v3741_v11 = vsub.f32 %v3739_v35, %v3740_v1  ;;  %v3745_v15 = vsub.f32 %v3675_v52, %v3699_v4 }
 0x49d   : > { %v2988_v33 = vadd.f32 %v2987_v21, %v2964_v17  ;;  %v3657_v17 = vld [vmem:[#allocation8] sm:$0xff]  ;;  %3785 = vmatpush.xpose.msrb.mxu2 %v3745_v15 }
 0x49f   : > { %v3010_v26 = vadd.f32 %v3009_v22, %v2988_v33  ;;  %v3672_v22 = vsel %vm602_vm0, %v3657_v17, 0  ;;  %v5165_v17 = vmov 32.0  }
 0x4a0   : > { %4875 = vrcp.f32 %v5165_v17  ;;  %v3967_v17 = vld [vmem:[%s6305_s8] sm:$0xff] }
 0x4a1   : > { %3634 = vrot.lane.b32.xlu1 %v3010_v26, %s5164_s22  ;;  %v3115_v34 = vpop.f32.mrf.mxu3  ;;  %v3746_v26 = vand.u32 4294901760, %v3745_v15 }
 0x4a2   : > { %v3067_v29 = vpop.f32.mrf.mxu1 }
 0x4a3   : > { %v3068_v19 = vadd.f32 %v3067_v29, %v3041_v23  ;;  %v3091_v36 = vpop.f32.mrf.mxu2  ;;  %v3139_v30 = vpop.f32.mrf.mxu0  ;;  %v3742_v23 = vand.u32 4294901760, %v3741_v11  ;;  %v3701_v29 = vand.u32 4294901760, %v3672_v22 }
 0x4a5   : > { %v3092_v57 = vadd.f32 %v3091_v36, %v3068_v19  ;;  %3743 = vmatpush.xpose.msra.mxu1 %v3742_v23  ;;  %v3747_v36 = vsub.f32 %v3745_v15, %v3746_v26  ;;  %3819 = vmatpush.xpose.msrb.mxu3 %v3701_v29 }
 0x4a6   : > { %3702 = vmatpush.xpose.msra.mxu0 %v3701_v29 }
 0x4a7   : > { %v3116_v31 = vadd.f32 %v3115_v34, %v3092_v57  ;;  %v3751_v57 = vsub.f32 %v3672_v22, %v3701_v29  ;;  %v3748_v34 = vand.u32 4294901760, %v3747_v36 }
 0x4a9   : > { %v3140_v7 = vadd.f32 %v3139_v30, %v3116_v31  ;;  %v3752_v31 = vand.u32 4294901760, %v3751_v57  ;;  %3788 = vmatpush.xpose.msrb.mxu2 %v3751_v57  ;;  %3749 = vmatpush.xpose.msra.mxu1 %v3748_v34 }
 0x4aa   : > { %v3161_v38 = vpop.f32.mrf.mxu1  ;;  %3848 = vmatpush.xpose.msrb.mxu0 %v3734_v41 }
 0x4ab   : > { %v3162_v40 = vadd.f32 %v3161_v38, %v3140_v7  ;;  %v3753_v30 = vsub.f32 %v3751_v57, %v3752_v31 }
 0x4ad   : > { %3639 = vst.msk [vmem:[#allocation2 + $0x8] sm:$0xff] %vm997_vm1, %v3162_v40  ;;  %v3754_v7 = vand.u32 4294901760, %v3753_v30  ;;  %vm3631_vm1 = vcmask 195712  }
 0x4ae   : > { %3852 = vmatpush.xpose.msrb.mxu0 %v3740_v1 }
 0x4af   : > { %3755 = vmatpush.xpose.msra.mxu1 %v3754_v7 }
 0x4b2   : > { %3856 = vmatpush.xpose.msrb.mxu0 %v3746_v26 }
 0x4b3   : > { %3883 = vmatpush.xpose.msrb.mxu1 %v3695_v37 }
 0x4b6   : > { %3860 = vmatpush.xpose.msrb.mxu0 %v3752_v31 }
 0x4b7   : > { %3885 = vmatpush.xpose.msrb.mxu1 %v3697_v54 }
 0x4bb   : > { %3887 = vmatpush.xpose.msrb.mxu1 %v3699_v4 }
 0x4bf   : > { %3889 = vmatpush.xpose.msrb.mxu1 %v3701_v29 }
 0x4c2   : > { %v3243_v45 = vpop.f32.mrf.mxu0 }
 0x4c4   : > { %v3267_v48 = vpop.f32.mrf.mxu1 }
 0x4c6   : > { %v3219_v44 = vpop.f32.mrf.mxu3 }
 0x4ca   : > { %v3345_v58 = vpop.f32.mrf.mxu0 }
 0x4cc   : > { %v3371_v9 = vpop.f32.mrf.mxu1 }
 0x4cd   : > { %v3372_v42 = vadd.f32 %v3371_v9, %v3345_v58 }
 0x4ce   : > { %v3193_v24 = vpop.f32.mrf.mxu2  ;;  %v3313_v61 = vpop.f32.mrf.mxu3 }
 0x4cf   : > { %v3220_v46 = vadd.f32 %v3219_v44, %v3193_v24 }
 0x4d1   : > { %v3244_v49 = vadd.f32 %v3243_v45, %v3220_v46 }
 0x4d2   : > { %v3443_v13 = vpop.f32.mrf.mxu0 }
 0x4d3   : > { %v3268_v51 = vadd.f32 %v3267_v48, %v3244_v49 }
 0x4d4   : > { %v3465_v62 = vpop.f32.mrf.mxu1 }
 0x4d6   : > { %v3291_v53 = vpop.f32.mrf.mxu2  ;;  %v3419_v10 = vpop.f32.mrf.mxu3 }
 0x4d7   : > { %v3292_v55 = vadd.f32 %v3291_v53, %v3268_v51  ;;  %v3623_v28 = vpop.permute.xlu2 %3622 }
 0x4d8   : > { %3626 = vst.msk [vmem:[#allocation2] sm:$0xff] %vm3625_vm6, %v3623_v28 }
 0x4d9   : > { %v3314_v8 = vadd.f32 %v3313_v61, %v3292_v55 }
 0x4db   : > { %3641 = vrot.lane.b32.xlu0 %v3314_v8, %s5162_s21 }
 0x4de   : > { %v3395_v60 = vpop.f32.mrf.mxu2 }
 0x4df   : > { %v3396_v2 = vadd.f32 %v3395_v60, %v3372_v42  ;;  %v3547_v50 = vpop.f32.mrf.mxu0 }
 0x4e1   : > { %v3420_v12 = vadd.f32 %v3419_v10, %v3396_v2  ;;  %v3571_v3 = vpop.f32.mrf.mxu1 }
 0x4e3   : > { %v3444_v59 = vadd.f32 %v3443_v13, %v3420_v12  ;;  %v4838_v12 = vld [vmem:[#allocation9] ss:$0 sm:$0xff] }
 0x4e5   : > { %v3466_v16 = vadd.f32 %v3465_v62, %v3444_v59 }
 0x4e7   : > { %3646 = vrot.lane.b32.xlu1 %v3466_v16, %s5163_s27 }
 0x4eb   : > { %v3497_v27 = vpop.f32.mrf.mxu2  ;;  %v3523_v43 = vpop.f32.mrf.mxu3 }
 0x4ec   : > { %v3524_v14 = vadd.f32 %v3523_v43, %v3497_v27 }
 0x4ee   : > { %v3548_v56 = vadd.f32 %v3547_v50, %v3524_v14 }
 0x4f0   : > { %v3572_v5 = vadd.f32 %v3571_v3, %v3548_v56 }
 0x4f3   : > { %v3595_v18 = vpop.f32.mrf.mxu2  ;;  %v3617_v33 = vpop.f32.mrf.mxu3 }
 0x4f4   : > { %v3596_v21 = vadd.f32 %v3595_v18, %v3572_v5  ;;  %v4886_v18 = vld [vmem:[%s513_s18] sm:$0xff]  ;;  %s4729_s18 = sshll.u32 %s5267_s20, 3  ;;  %s583_s20 = scalar_lea.vmem [#allocation14], %s5386_s28 }
 0x4f5   : > { %s4573_s24 = scalar_lea.hbm %s6345_s9, %s4729_s18  ;;  %s4575_s11 = sshll.u32 %s583_s20, 4  ;;  %s4576_s11 = int_to_ptr.vmem [resolvable:$true] %s4575_s11 }
 0x4f6   : > { %v3618_v19 = vadd.f32 %v3617_v33, %v3596_v21  ;;  %v4876_v21 = vpop.eup %4875  ;;  %s4577_s17 = sshll.u32 %s4573_s24, 4  ;;  %s5087_s28 = scalar_lea.hbm %s6345_s9, 16  ;;  %s4578_s17 = int_to_ptr.hbm [resolvable:$true] %s4577_s17 }
 0x4f7   : > { %v3908_v22 = vmul.f32 32.0, %v4876_v21  ;;  %vm3912_vm8 = vweird.f32 %v4876_v21  ;;  %s5081_s21 = sshra.s32 %s4578_s17, 4  ;;  %s5082_s21 = int_to_ptr.hbm [resolvable:$true] %s5081_s21 }
 0x4f8   : > { %3651 = vrot.lane.b32.xlu2 %v3618_v19, %s5164_s22  ;;  %s5083_s27 = scalar_lea.hbm %s5082_s21, 8  ;;  %p5088_p7 = scmp.lt.s32.totalorder %s5082_s21, %s6345_s9 }
 0x4f9   : > { %v3909_v33 = vsub.f32 1.0, %v3908_v22  ;;  %p5084_p1 = scmp.ne.s32.totalorder %s5082_s21, %s5083_s27  ;;  %p5089_p9 = scmp.lt.s32.totalorder %s5087_s28, %s5083_s27 }
 0x4fb   : > { %v3910_v23 = vmul.f32 %v4876_v21, %v3909_v33  ;;  %v3953_v33 = vld [vmem:[%s6304_s7] sm:$0x3]  ;;  %p5085_p3 = pnand %p5084_p1, %p5330_p4  ;;  %p5090_p8 = por %p5089_p9, %p5088_p7 }
 0x4fd   : > { %v3911_v26 = vadd.f32 %v4876_v21, %v3910_v23  ;;  %p5086_p12 = pneg %p5085_p3 }
 0x4ff   : > { %v3913_v29 = vsel %vm3912_vm8, %v4876_v21, %v3911_v26  ;;  %p5091_p10 = pnand %p5090_p8, %p5086_p12 }
 0x507   : > { %v3629_v38 = vpop.permute.xlu1 %3628 }
 0x508   : > { %3632 = vst.msk [vmem:[#allocation2] sm:$0xff] %vm3631_vm1, %v3629_v38 }
 0x513   : > { %v3635_v40 = vpop.permute.xlu1 %3634 }
 0x514   : > { %3638 = vst.msk [vmem:[#allocation2] sm:$0xff] %vm3637_vm7, %v3635_v40 }
 0x51b   : > { %v3655_v44 = vld [vmem:[#allocation2] sm:$0xff] }
 0x51c   : > { %v3666_v45 = vsel %vm602_vm0, %v3655_v44, 0 }
 0x51d   : > { %v3703_v24 = vand.u32 4294901760, %v3666_v45 }
 0x51f   : > { %3757 = vmatmul.f32.vlgmr.msra.gmra.mxu1 %v3703_v24  ;;  %v3704_v46 = vsub.f32 %v3666_v45, %v3703_v24 }
 0x521   : > { %3791 = vmatmul.f32.vlgmr.msrb.gmra.mxu2 %v3704_v46  ;;  %v3705_v48 = vand.u32 4294901760, %v3704_v46 }
 0x523   : > { %3823 = vmatmul.f32.vlgmr.msrb.gmra.mxu3 %v3705_v48  ;;  %v3706_v49 = vsub.f32 %v3704_v46, %v3705_v48  ;;  %v3974_v48 = vld [vmem:[%s6305_s8 + $0x38] sm:$0xff] }
 0x525   : > { %v3707_v51 = vand.u32 4294901760, %v3706_v49  ;;  %v3973_v49 = vld [vmem:[%s6305_s8 + $0x30] sm:$0xff] }
 0x527   : > { %3708 = vmatmul.f32.vlgmr.msra.gmra.mxu0 %v3707_v51  ;;  %v3972_v51 = vld [vmem:[%s6305_s8 + $0x28] sm:$0xff] }
 0x54d   : > { %v3642_v61 = vpop.permute.xlu0 %3641 }
 0x54e   : > { %3644 = vst.msk [vmem:[#allocation2 + $0x8] sm:$0xff] %vm3625_vm6, %v3642_v61  ;;  %v4005_v61 = vsel %vm3979_vm9, %v3974_v48, 0 }
 0x552   : > { %v3652_v55 = vpop.permute.xlu2 %3651 }
 0x559   : > { %v3647_v53 = vpop.permute.xlu1 %3646 }
 0x55a   : > { %3649 = vst.msk [vmem:[#allocation2 + $0x8] sm:$0xff] %vm3631_vm1, %v3647_v53  ;;  %v4002_v53 = vsel %vm3979_vm9, %v3973_v49, 0 }
 0x55b   : > { %3654 = vst.msk [vmem:[#allocation2 + $0x8] sm:$0xff] %vm3637_vm7, %v3652_v55  ;;  %v3999_v55 = vsel %vm3979_vm9, %v3972_v51, 0 }
 0x562   : > { %v3656_v58 = vld [vmem:[#allocation2 + $0x8] sm:$0xff] }
 0x563   : > { %v3669_v28 = vsel %vm602_vm0, %v3656_v58, 0  ;;  %v3971_v58 = vld [vmem:[%s6305_s8 + $0x20] sm:$0xff] }
 0x564   : > { %v3711_v8 = vand.u32 4294901760, %v3669_v28 }
 0x566   : > { %3761 = vmatmul.f32.gmra.mxu1 %v3711_v8  ;;  %v3712_v9 = vsub.f32 %v3669_v28, %v3711_v8  ;;  %v3970_v28 = vld [vmem:[%s6305_s8 + $0x18] sm:$0xff] }
 0x568   : > { %3796 = vmatmul.f32.gmra.mxu2 %v3712_v9  ;;  %v3713_v42 = vand.u32 4294901760, %v3712_v9 }
 0x56a   : > { %3829 = vmatmul.f32.gmra.mxu3 %v3713_v42  ;;  %v3714_v60 = vsub.f32 %v3712_v9, %v3713_v42  ;;  %v6007_v9 = vand.u32 4294901760, %v4002_v53  ;;  %v6009_v42 = vand.u32 4294901760, %v3999_v55 }
 0x56c   : > { %v3715_v2 = vand.u32 4294901760, %v3714_v60  ;;  %v3996_v60 = vsel %vm3979_vm9, %v3971_v58, 0 }
 0x56e   : > { %3716 = vmatmul.f32.gmra.mxu0 %v3715_v2  ;;  %3891 = vmatmul.f32.vlgmr.msrb.gmra.mxu1 %v3703_v24 }
 0x576   : > { %3862 = vmatmul.f32.vlgmr.msrb.gmra.mxu0 %v3703_v24  ;;  %3895 = vmatmul.f32.gmra.mxu1 %v3711_v8 }
 0x57e   : > { %3866 = vmatmul.f32.gmra.mxu0 %v3711_v8  ;;  %v6005_v8 = vand.u32 4294901760, %v4005_v61 }
 0x580   : > { %4016 = vmatpush.xpose.msra.mxu2 %v6005_v8  ;;  %4148 = vmatpush.xpose.msra.mxu1 %v6005_v8 }
 0x584   : > { %4018 = vmatpush.xpose.msra.mxu2 %v6007_v9  ;;  %4150 = vmatpush.xpose.msra.mxu1 %v6007_v9 }
 0x588   : > { %4020 = vmatpush.xpose.msra.mxu2 %v6009_v42  ;;  %4152 = vmatpush.xpose.msra.mxu1 %v6009_v42 }
 0x59c   : > { %v3758_v10 = vpop.f32.mrf.mxu1 }
 0x5a4   : > { %v3709_v13 = vpop.f32.mrf.mxu0  ;;  %v3792_v32 = vpop.f32.mrf.mxu2 }
 0x5a5   : > { %v3710_v59 = vadd.f32 %v4838_v12, %v3709_v13 }
 0x5a6   : > { %v3824_v43 = vpop.f32.mrf.mxu3 }
 0x5a7   : > { %v3759_v16 = vadd.f32 %v3758_v10, %v3710_v59  ;;  %v6012_v10 = vand.u32 4294901760, %v3996_v60  ;;  %v6016_v59 = vsub.f32 %v4005_v61, %v6005_v8 }
 0x5a9   : > { %v3793_v37 = vadd.f32 %v3792_v32, %v3759_v16  ;;  %v6023_v16 = vsub.f32 %v3999_v55, %v6009_v42  ;;  %4111 = vmatpush.xpose.msra.mxu0 %v6016_v59  ;;  %4022 = vmatpush.xpose.msra.mxu2 %v6012_v10 }
 0x5aa   : > { %4154 = vmatpush.xpose.msra.mxu1 %v6012_v10 }
 0x5ab   : > { %v3825_v25 = vadd.f32 %v3824_v43, %v3793_v37  ;;  %v4050_v37 = vand.u32 4294901760, %v6016_v59  ;;  %v3969_v43 = vld [vmem:[%s6305_s8 + $0x10] sm:$0xff] }
 0x5e3   : > { %v3762_v62 = vpop.f32.mrf.mxu1 }
 0x5eb   : > { %v3717_v20 = vpop.f32.mrf.mxu0  ;;  %v3892_v14 = vpop.f32.mrf.mxu1 }
 0x5ec   : > { %v3718_v27 = vadd.f32 %v4838_v12, %v3717_v20  ;;  %v3797_v41 = vpop.f32.mrf.mxu2  ;;  %v3993_v12 = vsel %vm3979_vm9, %v3970_v28, 0 }
 0x5ed   : > { %v3830_v6 = vpop.f32.mrf.mxu3 }
 0x5ee   : > { %v3763_v39 = vadd.f32 %v3762_v62, %v3718_v27  ;;  %v6019_v62 = vsub.f32 %v4002_v53, %v6007_v9 }
 0x5f0   : > { %v3798_v54 = vadd.f32 %v3797_v41, %v3763_v39  ;;  %v4056_v27 = vand.u32 4294901760, %v6019_v62  ;;  %v6036_v39 = vsub.f32 %v3996_v60, %v6012_v10  ;;  %v4062_v41 = vand.u32 4294901760, %v6023_v16  ;;  %4114 = vmatpush.xpose.msra.mxu0 %v6019_v62 }
 0x5f2   : > { %v3831_v52 = vadd.f32 %v3830_v6, %v3798_v54  ;;  %v3968_v54 = vld [vmem:[%s6305_s8 + $0x8] sm:$0xff] }
 0x5f3   : > { %v3863_v47 = vpop.f32.mrf.mxu0  ;;  %v3896_v4 = vpop.f32.mrf.mxu1 }
 0x5f4   : > { %v3864_v50 = vadd.f32 %v3863_v47, %v3825_v25  ;;  %v4051_v47 = vsub.f32 %v6016_v59, %v4050_v37  ;;  %4117 = vmatpush.xpose.msra.mxu0 %v6023_v16 }
 0x5f6   : > { %v3893_v56 = vadd.f32 %v3892_v14, %v3864_v50  ;;  %v6038_v14 = vand.u32 4294901760, %v3993_v12  ;;  %v4057_v50 = vsub.f32 %v6019_v62, %v4056_v27 }
 0x5f8   : > { %v3899_v35 = vadd.f32 %v4885_v63, %v3893_v56  ;;  %v3990_v63 = vsel %vm3979_vm9, %v3969_v43, 0  ;;  %4120 = vmatpush.xpose.msra.mxu0 %v6036_v39  ;;  %4024 = vmatpush.xpose.msra.mxu2 %v6038_v14  ;;  %v3960_v43 = vperm.slane %v3953_v33, 1 }
 0x5f9   : > { %4156 = vmatpush.xpose.msra.mxu1 %v6038_v14 }
 0x5fa   : > { %v3901_v3 = vsel %vm602_vm0, %v3899_v35, 0.0 }
 0x5fb   : > { %v3867_v0 = vpop.f32.mrf.mxu0  ;;  %3902 = vadd.xlane.f32.xlu1 %v3901_v3  ;;  %v3987_v3 = vsel %vm3979_vm9, %v3968_v54, 0 }
 0x5fc   : > { %v3868_v1 = vadd.f32 %v3867_v0, %v3831_v52  ;;  %v4068_v52 = vand.u32 4294901760, %v6036_v39  ;;  %v4058_v0 = vand.u32 4294901760, %v4057_v50  ;;  %v6082_v26 = vand.u32 4294901760, %v3987_v3 }
 0x5fe   : > { %v3897_v5 = vadd.f32 %v3896_v4, %v3868_v1  ;;  %v4063_v1 = vsub.f32 %v6023_v16, %v4062_v41  ;;  %v6062_v4 = vsub.f32 %v3993_v12, %v6038_v14  ;;  %v4069_v23 = vsub.f32 %v6036_v39, %v4068_v52  ;;  %v4249_v16 = vld [vmem:[%s6307_s10 + $0x20] sm:$0xff] }
 0x600   : > { %v3900_v11 = vadd.f32 %v4886_v18, %v3897_v5  ;;  %v6064_v5 = vand.u32 4294901760, %v3990_v63  ;;  %4123 = vmatpush.xpose.msra.mxu0 %v6062_v4 }
 0x602   : > { %v3904_v15 = vsel %vm602_vm0, %v3900_v11, 0.0  ;;  %4026 = vmatpush.xpose.msra.mxu2 %v6064_v5  ;;  %4158 = vmatpush.xpose.msra.mxu1 %v6064_v5 }
 0x603   : > { %3905 = vadd.xlane.f32.xlu0 %v3904_v15 }
 0x606   : > { %4028 = vmatpush.xpose.msra.mxu2 %v6082_v26  ;;  %4160 = vmatpush.xpose.msra.mxu1 %v6082_v26 }
 0x66e   : > { %v3903_v19 = vpop.xlane.xlu1 %3902 }
 0x66f   : > { %v3914_v36 = vmul.f32 %v3913_v29, %v3903_v19  ;;  %v4064_v19 = vand.u32 4294901760, %v4063_v1 }
 0x671   : > { %v5974_v57 = vsub.f32 %v3899_v35, %v3914_v36  ;;  %v4052_v35 = vand.u32 4294901760, %v4051_v47  ;;  %v4074_v36 = vand.u32 4294901760, %v6062_v4 }
 0x673   : > { %v3918_v34 = vmul.f32 %v5974_v57, %v5974_v57  ;;  %4053 = vmatpush.xpose.msra.mxu3 %v4052_v35  ;;  %v4075_v48 = vsub.f32 %v6062_v4, %v4074_v36 }
 0x675   : > { %v3920_v31 = vsel %vm602_vm0, %v3918_v34, 0.0  ;;  %v6087_v34 = vsub.f32 %v3990_v63, %v6064_v5  ;;  %v4076_v28 = vand.u32 4294901760, %v4075_v48 }
 0x676   : > { %3921 = vadd.xlane.f32.xlu0 %v3920_v31  ;;  %v3906_v30 = vpop.xlane.xlu0 %3905 }
 0x677   : > { %v3915_v7 = vmul.f32 %v3913_v29, %v3906_v30  ;;  %4059 = vmatpush.xpose.msra.mxu3 %v4058_v0  ;;  %v4080_v49 = vand.u32 4294901760, %v6087_v34  ;;  %4126 = vmatpush.xpose.msra.mxu0 %v6087_v34 }
 0x679   : > { %v5979_v38 = vsub.f32 %v3900_v11, %v3915_v7  ;;  %v3952_v11 = vld [vmem:[%s6303_s6] sm:$0x3]  ;;  %v3984_v7 = vsel %vm3979_vm9, %v3967_v17, 0  ;;  %v4081_v60 = vsub.f32 %v6087_v34, %v4080_v49 }
 0x67a   : > { %v4029_v51 = vand.u32 4294901760, %v3984_v7  ;;  %v3958_v58 = vperm.slane %v3952_v11, 1 }
 0x67b   : > { %v3919_v40 = vmul.f32 %v5979_v38, %v5979_v38  ;;  %4065 = vmatpush.xpose.msra.mxu3 %v4064_v19 }
 0x67c   : > { %v4091_v12 = vsub.f32 %v3984_v7, %v4029_v51  ;;  %4030 = vmatpush.xpose.msra.mxu2 %v4029_v51  ;;  %4162 = vmatpush.xpose.msra.mxu1 %v4029_v51 }
 0x67d   : > { %v3923_v44 = vsel %vm602_vm0, %v3919_v40, 0.0 }
 0x67e   : > { %3924 = vadd.xlane.f32.xlu2 %v3923_v44  ;;  %v3956_v44 = vperm.slane %v3953_v33, 0  ;;  %v4092_v50 = vand.u32 4294901760, %v4091_v12 }
 0x680   : > { %v4093_v63 = vsub.f32 %v4091_v12, %v4092_v50  ;;  %4181 = vmatpush.xpose.msrb.mxu2 %v4050_v37 }
 0x684   : > { %4185 = vmatpush.xpose.msrb.mxu2 %v4056_v27 }
 0x688   : > { %4189 = vmatpush.xpose.msrb.mxu2 %v4062_v41  ;;  %v4248_v41 = vld [vmem:[%s6307_s10 + $0x18] sm:$0xff] }
 0x689   : > { %v4270_v4 = vsel %vm3979_vm9, %v4248_v41, 0 }
 0x68c   : > { %4193 = vmatpush.xpose.msrb.mxu2 %v4068_v52 }
 0x690   : > { %4197 = vmatpush.xpose.msrb.mxu2 %v4074_v36 }
 0x694   : > { %4201 = vmatpush.xpose.msrb.mxu2 %v4080_v49 }
 0x6e9   : > { %v3922_v45 = vpop.xlane.xlu0 %3921 }
 0x6ea   : > { %v3926_v24 = vmul.f32 %v3922_v45, %v3913_v29 }
 0x6ec   : > { %v5984_v46 = vadd.f32 1e-05, %v3926_v24  ;;  %v4070_v24 = vand.u32 4294901760, %v4069_v23 }
 0x6ee   : > { %4877 = vrsqrt.f32 %v5984_v46  ;;  %vm3936_vm11 = vweird.f32 %v5984_v46  ;;  %4071 = vmatpush.xpose.msra.mxu3 %v4070_v24 }
 0x6f1   : > { %v3925_v2 = vpop.xlane.xlu2 %3924 }
 0x6f2   : > { %v3927_v13 = vmul.f32 %v3925_v2, %v3913_v29  ;;  %v3954_v29 = vperm.slane %v3952_v11, 0  ;;  %4077 = vmatpush.xpose.msra.mxu3 %v4076_v28 }
 0x6f4   : > { %v4878_v20 = vpop.eup %4877  ;;  %v6026_v32 = vadd.f32 1e-05, %v3927_v13 }
 0x6f5   : > { %v3931_v25 = vmul.f32 %v4878_v20, %v5984_v46  ;;  %vm3937_vm10 = vweird.f32 %v4878_v20  ;;  %v4085_v46 = vsub.f32 %v3987_v3, %v6082_v26 }
 0x6f6   : > { %4879 = vrsqrt.f32 %v6026_v32  ;;  %vm3938_vm12 = vmor %vm3936_vm11, %vm3937_vm10  ;;  %vm3946_vm14 = vweird.f32 %v6026_v32 }
 0x6f7   : > { %v3932_v56 = vmul.f32 %v4878_v20, %v3931_v25  ;;  %v4086_v2 = vand.u32 4294901760, %v4085_v46  ;;  %4129 = vmatpush.xpose.msra.mxu0 %v4085_v46 }
 0x6f9   : > { %v3933_v6 = vmul.f32 0.5, %v3932_v56  ;;  %v4087_v47 = vsub.f32 %v4085_v46, %v4086_v2  ;;  %4205 = vmatpush.xpose.msrb.mxu2 %v4086_v2 }
 0x6fb   : > { %v3934_v18 = vsub.f32 1.5, %v3933_v6  ;;  %v4088_v56 = vand.u32 4294901760, %v4087_v47  ;;  %4132 = vmatpush.xpose.msra.mxu0 %v4091_v12 }
 0x6fc   : > { %v4880_v15 = vpop.eup %4879 }
 0x6fd   : > { %v3935_v21 = vmul.f32 %v4878_v20, %v3934_v18  ;;  %v3941_v22 = vmul.f32 %v4880_v15, %v6026_v32  ;;  %vm3947_vm13 = vweird.f32 %v4880_v15  ;;  %v4082_v32 = vand.u32 4294901760, %v4081_v60  ;;  %4209 = vmatpush.xpose.msrb.mxu2 %v4092_v50  ;;  %v4246_v60 = vld [vmem:[%s6307_s10 + $0x8] sm:$0xff] }
 0x6fe   : > { %vm3948_vm15 = vmor %vm3946_vm14, %vm3947_vm13  ;;  %v4264_v2 = vsel %vm3979_vm9, %v4246_v60, 0 }
 0x6ff   : > { %v3939_v31 = vsel %vm3938_vm12, %v4878_v20, %v3935_v21  ;;  %v3942_v30 = vmul.f32 %v4880_v15, %v3941_v22  ;;  %4083 = vmatpush.xpose.msra.mxu3 %v4082_v32  ;;  %v6182_v21 = vand.u32 4294901760, %v4270_v4  ;;  %v4304_v12 = vand.u32 4294901760, %v4264_v2 }
 0x700   : > { %v3950_v40 = vmul.f32 %v3939_v31, %v5974_v57 }
 0x701   : > { %v3943_v45 = vmul.f32 0.5, %v3942_v30  ;;  %v6199_v30 = vsub.f32 %v4270_v4, %v6182_v21 }
 0x702   : > { %v3955_v61 = vmul.f32 %v3954_v29, %v3950_v40 }
 0x703   : > { %v3944_v53 = vsub.f32 1.5, %v3943_v45  ;;  %4089 = vmatpush.xpose.msra.mxu3 %v4088_v56  ;;  %v4351_v24 = vand.u32 4294901760, %v6199_v30 }
 0x704   : > { %v6101_v57 = vadd.f32 %v3956_v44, %v3955_v61 }
 0x705   : > { %v3945_v55 = vmul.f32 %v4880_v15, %v3944_v53  ;;  %v4352_v61 = vsub.f32 %v6199_v30, %v4351_v24 }
 0x707   : > { %v3949_v13 = vsel %vm3948_vm15, %v4880_v15, %v3945_v55  ;;  %v4353_v55 = vand.u32 4294901760, %v4352_v61 }
 0x708   : > { %v3951_v20 = vmul.f32 %v3949_v13, %v5979_v38  ;;  %v4094_v38 = vand.u32 4294901760, %v4093_v63  ;;  %v4362_v13 = vsub.f32 %v4264_v2, %v4304_v12 }
 0x70a   : > { %v3959_v25 = vmul.f32 %v3958_v58, %v3951_v20  ;;  %4095 = vmatpush.xpose.msra.mxu3 %v4094_v38  ;;  %v4245_v20 = vld [vmem:[%s6307_s10] sm:$0xff] }
 0x70c   : > { %v3961_v54 = vadd.f32 %v3960_v43, %v3959_v25  ;;  %v4261_v43 = vsel %vm3979_vm9, %v4245_v20, 0  ;;  %v4363_v25 = vand.u32 4294901760, %v4362_v13 }
 0x70d   : > { %v4306_v32 = vand.u32 4294901760, %v4261_v43 }
 0x70e   : > { %3963 = vrot.lane.b32.xlu1 %v3961_v54, %s5166_s5  ;;  %4224 = vmatpush.xpose.msrb.mxu3 %v6005_v8  ;;  %v4252_v8 = vld [vmem:[%s6307_s10 + $0x38] sm:$0xff]  ;;  %v4364_v47 = vsub.f32 %v4362_v13, %v4363_v25 }
 0x70f   : > { %v4368_v50 = vsub.f32 %v4261_v43, %v4306_v32 }
 0x710   : > { %v4365_v54 = vand.u32 4294901760, %v4364_v47 }
 0x711   : > { %v4369_v56 = vand.u32 4294901760, %v4368_v50 }
 0x712   : > { %4226 = vmatpush.xpose.msrb.mxu3 %v6007_v9  ;;  %v4251_v9 = vld [vmem:[%s6307_s10 + $0x30] sm:$0xff] }
 0x713   : > { %v4279_v59 = vsel %vm3979_vm9, %v4251_v9, 0  ;;  %v4370_v63 = vsub.f32 %v4368_v50, %v4369_v56 }
 0x714   : > { %v6145_v27 = vand.u32 4294901760, %v4279_v59 }
 0x715   : > { %v4371_v38 = vand.u32 4294901760, %v4370_v63 }
 0x716   : > { %4228 = vmatpush.xpose.msrb.mxu3 %v6009_v42  ;;  %v4250_v42 = vld [vmem:[%s6307_s10 + $0x28] sm:$0xff]  ;;  %v6157_v6 = vsub.f32 %v4279_v59, %v6145_v27 }
 0x717   : > { %v4276_v62 = vsel %vm3979_vm9, %v4250_v42, 0 }
 0x718   : > { %v6147_v39 = vand.u32 4294901760, %v4276_v62  ;;  %v4333_v1 = vand.u32 4294901760, %v6157_v6 }
 0x71a   : > { %4230 = vmatpush.xpose.msrb.mxu3 %v6012_v10  ;;  %v4282_v10 = vsel %vm3979_vm9, %v4252_v8, 0  ;;  %v6161_v52 = vsub.f32 %v4276_v62, %v6147_v39  ;;  %v4334_v11 = vsub.f32 %v6157_v6, %v4333_v1  ;;  %v4839_v8 = vld [vmem:[#allocation11] ss:$0 sm:$0xff] }
 0x71b   : > { %v6143_v37 = vand.u32 4294901760, %v4282_v10 }
 0x71c   : > { %v4339_v15 = vand.u32 4294901760, %v6161_v52  ;;  %v4335_v29 = vand.u32 4294901760, %v4334_v11 }
 0x71d   : > { %v6154_v35 = vsub.f32 %v4282_v10, %v6143_v37  ;;  %4293 = vmatpush.xpose.msrb.mxu0 %v6143_v37 }
 0x71e   : > { %4232 = vmatpush.xpose.msrb.mxu3 %v6038_v14  ;;  %v4273_v14 = vsel %vm3979_vm9, %v4249_v16, 0  ;;  %v4340_v34 = vsub.f32 %v6161_v52, %v4339_v15 }
 0x71f   : > { %v6163_v3 = vand.u32 4294901760, %v4273_v14  ;;  %v4327_v0 = vand.u32 4294901760, %v6154_v35 }
 0x720   : > { %v4341_v44 = vand.u32 4294901760, %v4340_v34 }
 0x721   : > { %v4328_v18 = vsub.f32 %v6154_v35, %v4327_v0  ;;  %4295 = vmatpush.xpose.msrb.mxu0 %v6145_v27  ;;  %v6180_v17 = vsub.f32 %v4273_v14, %v6163_v3 }
 0x722   : > { %4234 = vmatpush.xpose.msrb.mxu3 %v6064_v5  ;;  %v4247_v5 = vld [vmem:[%s6307_s10 + $0x10] sm:$0xff] }
 0x723   : > { %v4267_v22 = vsel %vm3979_vm9, %v4247_v5, 0  ;;  %v4329_v33 = vand.u32 4294901760, %v4328_v18  ;;  %v4345_v31 = vand.u32 4294901760, %v6180_v17  ;;  %v4840_v18 = vld [vmem:[#allocation12] ss:$0 sm:$0xff] }
 0x724   : > { %v6190_v19 = vand.u32 4294901760, %v4267_v22 }
 0x725   : > { %4330 = vmatpush.xpose.msrb.mxu1 %v4329_v33  ;;  %4297 = vmatpush.xpose.msrb.mxu0 %v6147_v39  ;;  %v4346_v45 = vsub.f32 %v6180_v17, %v4345_v31 }
 0x726   : > { %4236 = vmatpush.xpose.msrb.mxu3 %v6082_v26  ;;  %v6207_v46 = vsub.f32 %v4267_v22, %v6190_v19 }
 0x728   : > { %v4357_v53 = vand.u32 4294901760, %v6207_v46 }
 0x729   : > { %4336 = vmatpush.xpose.msrb.mxu1 %v4335_v29  ;;  %4299 = vmatpush.xpose.msrb.mxu0 %v6163_v3 }
 0x72a   : > { %4238 = vmatpush.xpose.msrb.mxu3 %v4029_v51  ;;  %v4347_v51 = vand.u32 4294901760, %v4346_v45  ;;  %v4358_v58 = vsub.f32 %v6207_v46, %v4357_v53 }
 0x72c   : > { %v4359_v28 = vand.u32 4294901760, %v4358_v58 }
 0x72d   : > { %4342 = vmatpush.xpose.msrb.mxu1 %v4341_v44  ;;  %4301 = vmatpush.xpose.msrb.mxu0 %v6182_v21 }
 0x731   : > { %4348 = vmatpush.xpose.msrb.mxu1 %v4347_v51  ;;  %4303 = vmatpush.xpose.msrb.mxu0 %v6190_v19 }
 0x735   : > { %4354 = vmatpush.xpose.msrb.mxu1 %v4353_v55  ;;  %4305 = vmatpush.xpose.msrb.mxu0 %v4304_v12 }
 0x739   : > { %4360 = vmatpush.xpose.msrb.mxu1 %v4359_v28  ;;  %4307 = vmatpush.xpose.msrb.mxu0 %v4306_v32 }
 0x73d   : > { %4366 = vmatpush.xpose.msrb.mxu1 %v4365_v54 }
 0x741   : > { %4372 = vmatpush.xpose.msrb.mxu1 %v4371_v38 }
 0x780   : > { %v3964_v23 = vpop.permute.xlu1 %3963 }
 0x781   : > { %v6187_v26 = vsel %vm602_vm0, %v6101_v57, %v3964_v23 }
 0x782   : > { %v3981_v36 = vsel %vm3979_vm9, %v6187_v26, 0 }
 0x783   : > { %v4031_v7 = vand.u32 4294901760, %v3981_v36 }
 0x785   : > { %v4032_v40 = vsub.f32 %v3981_v36, %v4031_v7  ;;  %4097 = vmatmul.f32.vlgmr.msra.gmra.mxu3 %v4031_v7 }
 0x786   : > { %4425 = vmatpush.xpose.msra.mxu3 %v6143_v37 }
 0x787   : > { %v4033_v48 = vand.u32 4294901760, %v4032_v40  ;;  %4135 = vmatmul.f32.vlgmr.msra.gmra.mxu0 %v4032_v40 }
 0x788   : > { %4458 = vmatpush.xpose.msra.mxu0 %v4327_v0 }
 0x789   : > { %v4034_v49 = vsub.f32 %v4032_v40, %v4033_v48  ;;  %4166 = vmatmul.f32.vlgmr.msra.gmra.mxu1 %v4033_v48  ;;  %v5167_v40 = vmov 64.0  }
 0x78a   : > { %4427 = vmatpush.xpose.msra.mxu3 %v6145_v27  ;;  %4501 = vmatpush.xpose.msra.mxu1 %v6143_v37  ;;  %4881 = vrcp.f32 %v5167_v40 }
 0x78b   : > { %v4035_v57 = vand.u32 4294901760, %v4034_v49 }
 0x78c   : > { %4462 = vmatpush.xpose.msra.mxu0 %v4333_v1 }
 0x78d   : > { %4036 = vmatmul.f32.vlgmr.msra.gmra.mxu2 %v4035_v57  ;;  %4240 = vmatmul.f32.vlgmr.msrb.gmra.mxu3 %v4031_v7 }
 0x78e   : > { %4388 = vmatpush.xpose.msra.mxu2 %v6154_v35  ;;  %4429 = vmatpush.xpose.msra.mxu3 %v6147_v39 }
 0x78f   : > { %4503 = vmatpush.xpose.msra.mxu1 %v6145_v27 }
 0x790   : > { %4466 = vmatpush.xpose.msra.mxu0 %v4339_v15  ;;  %v4882_v44 = vpop.eup %4881 }
 0x791   : > { %v4526_v45 = vmul.f32 64.0, %v4882_v44  ;;  %vm4530_vm0 = vweird.f32 %v4882_v44 }
 0x792   : > { %4391 = vmatpush.xpose.msra.mxu2 %v6157_v6  ;;  %4431 = vmatpush.xpose.msra.mxu3 %v6163_v3 }
 0x793   : > { %4505 = vmatpush.xpose.msra.mxu1 %v6147_v39 }
 0x794   : > { %4470 = vmatpush.xpose.msra.mxu0 %v4345_v31 }
 0x795   : > { %4211 = vmatmul.f32.vlgmr.msrb.gmra.mxu2 %v4031_v7 }
 0x796   : > { %4394 = vmatpush.xpose.msra.mxu2 %v6161_v52  ;;  %4433 = vmatpush.xpose.msra.mxu3 %v6182_v21 }
 0x797   : > { %4507 = vmatpush.xpose.msra.mxu1 %v6163_v3 }
 0x798   : > { %4474 = vmatpush.xpose.msra.mxu0 %v4351_v24  ;;  %v4527_v24 = vsub.f32 1.0, %v4526_v45 }
 0x79a   : > { %4397 = vmatpush.xpose.msra.mxu2 %v6180_v17  ;;  %4435 = vmatpush.xpose.msra.mxu3 %v6190_v19 }
 0x79b   : > { %4509 = vmatpush.xpose.msra.mxu1 %v6182_v21 }
 0x79c   : > { %4478 = vmatpush.xpose.msra.mxu0 %v4357_v53 }
 0x79e   : > { %4400 = vmatpush.xpose.msra.mxu2 %v6199_v30  ;;  %4437 = vmatpush.xpose.msra.mxu3 %v4304_v12 }
 0x79f   : > { %4511 = vmatpush.xpose.msra.mxu1 %v6190_v19 }
 0x7a0   : > { %4482 = vmatpush.xpose.msra.mxu0 %v4363_v25  ;;  %v4841_v25 = vld [vmem:[%s6309_s12] ss:$0 sm:$0xff] }
 0x7a2   : > { %4403 = vmatpush.xpose.msra.mxu2 %v6207_v46  ;;  %4439 = vmatpush.xpose.msra.mxu3 %v4306_v32  ;;  %v4528_v46 = vmul.f32 %v4882_v44, %v4527_v24 }
 0x7a3   : > { %4513 = vmatpush.xpose.msra.mxu1 %v4304_v12 }
 0x7a4   : > { %4486 = vmatpush.xpose.msra.mxu0 %v4369_v56  ;;  %v4529_v48 = vadd.f32 %v4882_v44, %v4528_v46 }
 0x7a6   : > { %4406 = vmatpush.xpose.msra.mxu2 %v4362_v13  ;;  %v4531_v49 = vsel %vm4530_vm0, %v4882_v44, %v4529_v48 }
 0x7a7   : > { %4515 = vmatpush.xpose.msra.mxu1 %v4306_v32 }
 0x7aa   : > { %4409 = vmatpush.xpose.msra.mxu2 %v4368_v50  ;;  %v4842_v50 = vld [vmem:[%s6347_s15] ss:$0 sm:$0xff] }
 0x804   : > { %v4136_v62 = vpop.f32.mrf.mxu0 }
 0x806   : > { %v4167_v37 = vpop.f32.mrf.mxu1 }
 0x808   : > { %v4098_v9 = vpop.f32.mrf.mxu3 }
 0x810   : > { %v4037_v42 = vpop.f32.mrf.mxu2  ;;  %v4241_v41 = vpop.f32.mrf.mxu3 }
 0x811   : > { %v4038_v10 = vadd.f32 %v4839_v8, %v4037_v42 }
 0x813   : > { %v4099_v59 = vadd.f32 %v4098_v9, %v4038_v10 }
 0x815   : > { %v4137_v16 = vadd.f32 %v4136_v62, %v4099_v59 }
 0x817   : > { %v4168_v27 = vadd.f32 %v4167_v37, %v4137_v16 }
 0x818   : > { %v4212_v39 = vpop.f32.mrf.mxu2 }
 0x819   : > { %v4213_v14 = vadd.f32 %v4212_v39, %v4168_v27 }
 0x81b   : > { %v4242_v35 = vadd.f32 %v4241_v41, %v4213_v14 }
 0x81d   : > { %v4244_v6 = vmax.f32 %v4242_v35, 0.0 }
 0x81f   : > { %v4258_v52 = vsel %vm3979_vm9, %v4244_v6, 0 }
 0x820   : > { %v4308_v3 = vand.u32 4294901760, %v4258_v52 }
 0x822   : > { %v4309_v0 = vsub.f32 %v4258_v52, %v4308_v3  ;;  %4374 = vmatmul.f32.vlgmr.msrb.gmra.mxu1 %v4308_v3 }
 0x824   : > { %v4310_v1 = vand.u32 4294901760, %v4309_v0  ;;  %4412 = vmatmul.f32.vlgmr.msra.gmra.mxu2 %v4309_v0 }
 0x826   : > { %v4311_v4 = vsub.f32 %v4309_v0, %v4310_v1  ;;  %4443 = vmatmul.f32.vlgmr.msra.gmra.mxu3 %v4310_v1 }
 0x828   : > { %v4312_v5 = vand.u32 4294901760, %v4311_v4 }
 0x82a   : > { %4313 = vmatmul.f32.vlgmr.msrb.gmra.mxu0 %v4312_v5  ;;  %4517 = vmatmul.f32.vlgmr.msra.gmra.mxu1 %v4308_v3 }
 0x832   : > { %4488 = vmatmul.f32.vlgmr.msra.gmra.mxu0 %v4308_v3 }
 0x89f   : > { %v4375_v11 = vpop.f32.mrf.mxu1 }
 0x8a7   : > { %v4314_v15 = vpop.f32.mrf.mxu0  ;;  %v4413_v22 = vpop.f32.mrf.mxu2 }
 0x8a8   : > { %v4315_v17 = vadd.f32 %v4840_v18, %v4314_v15  ;;  %v4518_v34 = vpop.f32.mrf.mxu1 }
 0x8a9   : > { %v4444_v23 = vpop.f32.mrf.mxu3 }
 0x8aa   : > { %v4376_v21 = vadd.f32 %v4375_v11, %v4315_v17 }
 0x8ac   : > { %v4414_v33 = vadd.f32 %v4413_v22, %v4376_v21 }
 0x8ae   : > { %v4445_v29 = vadd.f32 %v4444_v23, %v4414_v33 }
 0x8af   : > { %v4489_v19 = vpop.f32.mrf.mxu0 }
 0x8b0   : > { %v4490_v36 = vadd.f32 %v4489_v19, %v4445_v29 }
 0x8b2   : > { %v4519_v31 = vadd.f32 %v4518_v34, %v4490_v36 }
 0x8b4   : > { %v4521_v30 = vadd.f32 %v4519_v31, %v6187_v26 }
 0x8b6   : > { %v4522_v7 = vsel %vm3979_vm9, %v4521_v30, 0.0 }
 0x8b7   : > { %4523 = vadd.xlane.f32.xlu2 %v4522_v7 }
 0x92a   : > { %v4524_v51 = vpop.xlane.xlu2 %4523 }
 0x92b   : > { %v4532_v61 = vmul.f32 %v4531_v49, %v4524_v51 }
 0x92d   : > { %v4533_v53 = vsub.f32 %v4521_v30, %v4532_v61 }
 0x92f   : > { %v4534_v57 = vmul.f32 %v4533_v53, %v4533_v53 }
 0x931   : > { %v4535_v55 = vsel %vm3979_vm9, %v4534_v57, 0.0 }
 0x932   : > { %4536 = vadd.xlane.f32.xlu0 %v4535_v55 }
 0x9a5   : > { %v4537_v26 = vpop.xlane.xlu0 %4536 }
 0x9a6   : > { %v4538_v58 = vmul.f32 %v4537_v26, %v4531_v49 }
 0x9a8   : > { %v4539_v28 = vadd.f32 1e-05, %v4538_v58 }
 0x9aa   : > { %4883 = vrsqrt.f32 %v4539_v28  ;;  %vm4546_vm3 = vweird.f32 %v4539_v28 }
 0x9b0   : > { %v4884_v60 = vpop.eup %4883 }
 0x9b1   : > { %v4541_v2 = vmul.f32 %v4884_v60, %v4539_v28  ;;  %vm4547_vm2 = vweird.f32 %v4884_v60 }
 0x9b2   : > { %vm4548_vm4 = vmor %vm4546_vm3, %vm4547_vm2 }
 0x9b3   : > { %v4542_v12 = vmul.f32 %v4884_v60, %v4541_v2 }
 0x9b5   : > { %v4543_v13 = vmul.f32 0.5, %v4542_v12 }
 0x9b7   : > { %v4544_v20 = vsub.f32 1.5, %v4543_v13 }
 0x9b9   : > { %v4545_v43 = vmul.f32 %v4884_v60, %v4544_v20 }
 0x9bb   : > { %v4549_v32 = vsel %vm4548_vm4, %v4884_v60, %v4545_v43 }
 0x9bc   : > { %v4550_v47 = vmul.f32 %v4549_v32, %v4533_v53 }
 0x9be   : > { %v4555_v54 = vmul.f32 %v4841_v25, %v4550_v47 }
 0x9c0   : > { %v4560_v56 = vadd.f32 %v4842_v50, %v4555_v54 }
 0x9c2   : > { %4561 = vst.msk [vmem:[%s583_s20] sm:$0xff] %vm3979_vm9, %v4560_v56 }
 0x9c3   : > { %5094 = shalt.err (!%p5091_p10)
}
 0x9c4   : > { %4752 = dma.vmem_to_hbm [thread:$0]  (%p5330_p4), %s4576_s11, 128, %s4578_s17, %s4563_s16  }
 0x9c5 PF: > { %s6348_s29 = sld [smem:[#allocation21_spill]] }
 0x9c6   : > { %s6350_s25 = sld [smem:[#allocation23_spill]] }
 0x9cb   : > { %s4589_s13 = sand.u32 1, %s6348_s29  }
 0x9cc   : > { %p6351_p11 = scmp.ge.s32.totalorder %s6350_s25, 2  ;;  %s4590_s24 = scalar_lea.sflag [#allocation5], %s4589_s13 }
 0x9ce   : > { %p4775_p5 = pnand %p6351_p11, %p5334_p6 }
 0x9d0   : > { %p4776_p13 = pneg %p4775_p5 }
 0x9d2   : > { %5132 = dma.done.wait (%p4776_p13), %s4590_s24, 128  }
 0x9d3   : > { %5134 = vsyncadd (%p4776_p13), %s4590_s24, 4294967168  ;;  %s6352_s16 = sld [smem:[#allocation24_spill]]  ;;  %s6355_s29 = smov %s5141_s30 }
 0x9d4   : > { %s6353_s23 = sld [smem:[#allocation22_spill]] }
 0x9d5   : > { %s6354_s15 = sld [smem:[#allocation25_spill]] }
 0x9d9   : > { %p32_p0 = scmp.ge.s32.totalorder %s6352_s16, 4  }
 0x9da   : > { %s6356_s30 = smov %s6353_s23 }
 0x9db   :  { %34 = sbr.rel (!%p32_p0) target bundleno = 16 (0x10), region = 150 }
 0x9e0   :  { %4596 = vsyncpa [#allocation4], 1 }
 0x9e1   :  { %4598 = vsyncpa [#allocation4 + $0x1], 1 }
 0x9e2   :  { %4599 = vsyncpa [#allocation7], 1 }
 0x9e3   :  { %4601 = vsyncpa [#allocation7 + $0x1], 1 }
 0x9e4   :  { %4602 = vsyncpa [#allocation10], 1 }
 0x9e5   :  { %4603 = vsyncpa [#allocation13], 1 }
 0x9e6   :  { %4604 = vsyncpa [#allocation5], 1 }
 0x9e7   :  { %4606 = vsyncpa [#allocation5 + $0x1], 1 }

</bundles_post_ra>
